<compile_context>
chip_gen: v7x
topology: tpu7x:2x2x1
jax: 0.10.0
libtpu: 0.0.40
codegen_flags: <defaults>
</compile_context>

<pallas_src>
import jax
import jax.numpy as jnp
from jax.experimental import pallas as pl
from jax.experimental.pallas import tpu as pltpu

KH = 5  # conv kernel height/width


def net_kernel(x_ref, w1_ref, b1_ref, w2_ref, b2_ref, wfc_ref, bfc_ref, o_ref):
    """Entire Net forward for one batch block.

    x_ref:   (BB, 28, 28)   input, Ci == 1 squeezed, lanes = W
    w1_ref:  (140, 256)     conv1 band, rows = (kh, w), cols = (parity, j, co) padded
    b1_ref:  (1, 256)       conv1 bias per column (0 on pad columns)
    w2_ref:  (640, 256)     conv2 band, rows = (kh, j*10+ci) padded to 128/kh
    b2_ref:  (1, 256)
    wfc_ref: (4, 128, 10)   fc weight, rows permuted to (h, (w, c)) and K-padded
    bfc_ref: (1, 10)
    o_ref:   (BB, 10)
    """
    B, H1, W1 = x_ref.shape                     # (BB, 28, 28)
    N1 = w1_ref.shape[1]                        # 256
    HALF1 = N1 // 2                             # 128
    OH1 = H1 - KH + 1                           # 24

    # ---- conv1 (1 -> 10, 5x5 valid): one banded GEMM, K = 5*28 = 140 ----
    x = x_ref[...]
    lhs1 = jnp.concatenate([x[:, kh:kh + OH1, :] for kh in range(KH)], axis=-1)
    lhs1 = lhs1.reshape(B * OH1, KH * W1).astype(jnp.bfloat16)   # OH1 % 8 == 0
    c1 = jnp.dot(lhs1, w1_ref[...], preferred_element_type=jnp.float32)
    c1 = (c1 + b1_ref[...]).reshape(B, OH1, N1)                  # f32
    # 2x2/2 max-pool + ReLU: even/odd ow are the two lane-aligned column
    # halves (pure VPU max); H-pool is a sublane-pair max.
    c1 = jnp.maximum(c1[:, :, :HALF1], c1[:, :, HALF1:])         # (B, 24, 128)
    c1 = jnp.max(c1.reshape(B, OH1 // 2, 2, HALF1), axis=2)      # (B, 12, 128)
    a1 = jnp.maximum(c1, 0.0).astype(jnp.bfloat16)               # lanes = (w, c) + pad

    # ---- conv2 (10 -> 20, 5x5 valid): one banded GEMM, K = 5*128 = 640 ----
    H2 = a1.shape[1]                            # 12
    K2 = a1.shape[2]                            # 128
    N2 = w2_ref.shape[1]                        # 256
    HALF2 = N2 // 2                             # 128
    OH2 = H2 - KH + 1                           # 8
    lhs2 = jnp.concatenate([a1[:, kh:kh + OH2, :] for kh in range(KH)], axis=-1)
    lhs2 = lhs2.reshape(B * OH2, KH * K2)                        # OH2 % 8 == 0
    c2 = jnp.dot(lhs2, w2_ref[...], preferred_element_type=jnp.float32)
    c2 = (c2 + b2_ref[...]).reshape(B, OH2, N2)
    c2 = jnp.maximum(c2[:, :, :HALF2], c2[:, :, HALF2:])         # (B, 8, 128)
    c2 = jnp.max(c2.reshape(B, OH2 // 2, 2, HALF2), axis=2)      # (B, 4, 128)
    a2 = jnp.maximum(c2, 0.0).astype(jnp.bfloat16)               # lanes = (w, c) + pad

    # ---- flatten ((h, (w, c)) layout; FC rows pre-permuted/padded on host) ----
    out = jnp.dot(a2[:, 0, :], wfc_ref[0], preferred_element_type=jnp.float32)
    for h in range(1, a2.shape[1]):
        out = out + jnp.dot(a2[:, h, :], wfc_ref[h],
                            preferred_element_type=jnp.float32)
    o_ref[...] = (out + bfc_ref[...]).astype(o_ref.dtype)


def make_band(w_oihw, width, k_pad, n_pad):
    """Banded conv weights for row-window GEMMs: (KH, k_pad, n_pad).

    band[kh, w*Ci + ci, p*(n_pad//2) + j*Co + co] = w[co, ci, kh, w - (2j+p)]
    when 0 <= w - (2j+p) < KW, else 0.  The even/odd (p) column split makes the
    2x2 max-pool along W a plain elementwise max; the K/N pads are zero rows /
    columns so padded lanes never contribute.
    """
    Co, Ci, kh_, KW = w_oihw.shape
    OW = width - KW + 1
    half_valid = (OW // 2) * Co
    half_pad = n_pad // 2
    w_t = jnp.transpose(w_oihw, (2, 3, 1, 0))                    # (KH, KW, Ci, Co)
    cols = [jnp.pad(w_t, ((0, 0), (ow, width - KW - ow), (0, 0), (0, 0)))
            for ow in range(OW)]                                 # each (KH, W, Ci, Co)
    band = jnp.stack(cols, axis=3)                               # (KH, W, Ci, OW, Co)
    band = band.reshape(kh_, width, Ci, OW // 2, 2, Co)          # ow = 2j + parity
    band = jnp.transpose(band, (0, 1, 2, 4, 3, 5))               # (KH, W, Ci, p, j, Co)
    band = band.reshape(kh_, width * Ci, 2, half_valid)
    band = jnp.pad(band, ((0, 0), (0, k_pad - width * Ci), (0, 0),
                          (0, half_pad - half_valid)))
    return band.reshape(kh_, k_pad, n_pad)


def pack_params(w1, b1, w2, b2, wfc, bfc):
    """One-time host-side weight repacking (hoisted out of the per-call path)."""
    N1, N2 = 256, 256
    band1 = make_band(w1, width=28, k_pad=28, n_pad=N1)          # (5, 28, 256)
    band2 = make_band(w2, width=12, k_pad=128, n_pad=N2)         # (5, 128, 256)
    w1p = band1.reshape(KH * 28, N1).astype(jnp.bfloat16)        # (140, 256)
    w2p = band2.reshape(KH * 128, N2).astype(jnp.bfloat16)       # (640, 256)

    # Bias per (parity, j, co) column; pad columns get zero bias.
    half1 = jnp.pad(jnp.tile(b1, 12), (0, N1 // 2 - 120))        # (128,)
    b1p = jnp.concatenate([half1, half1])[None, :]               # (1, 256) f32
    half2 = jnp.pad(jnp.tile(b2, 4), (0, N2 // 2 - 80))          # (128,)
    b2p = jnp.concatenate([half2, half2])[None, :]               # (1, 256) f32

    # fc.weight cols are in PyTorch (C,H,W) view order; permute to (H,(W,C)) so
    # the kernel's pooled (h, (w, c)) activation feeds the FC with no in-kernel
    # transpose; pad K 80 -> 128 with zero rows (the padded lanes are zero too).
    wfc3 = jnp.transpose(wfc.reshape(10, 20, 4, 4), (2, 3, 1, 0)).reshape(4, 80, 10)
    wfcp = jnp.pad(wfc3, ((0, 0), (0, 48), (0, 0))).astype(jnp.bfloat16)
    bfcp = bfc[None, :]
    return w1p, b1p, w2p, b2p, wfcp, bfcp


def _round_up(n, m):
    return (n + m - 1) // m * m


# TODO(synk): the source forward applies self.conv2 twice, which is not runnable
# in PyTorch (the 2nd call feeds 20 channels to a 10-in-channel conv). We
# implement the evident intent (conv1 -> pool -> relu -> conv2 -> pool -> relu
# -> fc), the only pipeline consistent with fc = Linear(320, 10) on 28x28 input.
@jax.jit
def net_forward(x_nchw, w1p, b1p, w2p, b2p, wfcp, bfcp):
    B = x_nchw.shape[0]
    # Batch block: multiple of 8 (sublane-clean stores), capped at 128 so the
    # per-step VMEM footprint stays well inside v7x's 64 MiB.
    block_b = min(128, _round_up(B, 8))
    b_pad = _round_up(B, block_b)
    x3 = x_nchw.reshape(B, 28, 28)               # squeeze Ci == 1; lane dim = W
    if b_pad != B:
        x3 = jnp.pad(x3, ((0, b_pad - B), (0, 0), (0, 0)))

    const2 = lambda i: (0, 0)
    out = pl.pallas_call(
        net_kernel,
        out_shape=jax.ShapeDtypeStruct((b_pad, 10), jnp.float32),
        grid=(b_pad // block_b,),
        in_specs=[
            pl.BlockSpec((block_b, 28, 28), lambda i: (i, 0, 0)),   # x (pipelined)
            pl.BlockSpec(w1p.shape, const2),                        # grid-invariant weights
            pl.BlockSpec(b1p.shape, const2),
            pl.BlockSpec(w2p.shape, const2),
            pl.BlockSpec(b2p.shape, const2),
            pl.BlockSpec(wfcp.shape, lambda i: (0, 0, 0)),
            pl.BlockSpec(bfcp.shape, const2),
        ],
        out_specs=pl.BlockSpec((block_b, 10), lambda i: (i, 0)),
        compiler_params=pltpu.CompilerParams(
            dimension_semantics=("parallel",),      # megacore-shard the batch grid
            vmem_limit_bytes=32 << 20),
    )(x3, w1p, b1p, w2p, b2p, wfcp, bfcp)
    return out[:B]


def ref_forward(x_nchw, w1, b1, w2, b2, wfc, bfc):
    def conv(x, w, b):
        y = jax.lax.conv_general_dilated(
            x, w, window_strides=(1, 1), padding='VALID',
            dimension_numbers=('NCHW', 'OIHW', 'NCHW'))
        return y + b.reshape(1, -1, 1, 1)

    def pool(x):
        return jax.lax.reduce_window(x, -jnp.inf, jax.lax.max,
                                     (1, 1, 2, 2), (1, 1, 2, 2), 'VALID')

    x = jax.nn.relu(pool(conv(x_nchw, w1, b1)))
    x = jax.nn.relu(pool(conv(x, w2, b2)))
    x = x.reshape(x.shape[0], -1)
    return x @ wfc.T + bfc


if __name__ == "__main__":
    key = jax.random.PRNGKey(0)
    kx, k1, k2, k3, k4, k5, k6 = jax.random.split(key, 7)

    x = jax.random.normal(kx, (2, 1, 28, 28), dtype=jnp.float32)

    # Deterministic synthetic parameters (PyTorch-convention shapes).
    w1 = jax.random.normal(k1, (10, 1, 5, 5), dtype=jnp.float32) * 0.1    # conv1.weight
    b1 = jax.random.normal(k2, (10,), dtype=jnp.float32) * 0.1            # conv1.bias
    w2 = jax.random.normal(k3, (20, 10, 5, 5), dtype=jnp.float32) * 0.05  # conv2.weight
    b2 = jax.random.normal(k4, (20,), dtype=jnp.float32) * 0.05           # conv2.bias
    wfc = jax.random.normal(k5, (10, 320), dtype=jnp.float32) * 0.05      # fc.weight
    bfc = jax.random.normal(k6, (10,), dtype=jnp.float32) * 0.05          # fc.bias

    # Weight repacking runs once, outside the jitted per-call path.
    packed = pack_params(w1, b1, w2, b2, wfc, bfc)
    packed = jax.block_until_ready(packed)

    out = net_forward(x, *packed)
    out = jax.block_until_ready(out)

    ref = ref_forward(x, w1, b1, w2, b2, wfc, bfc)
    assert out.shape == (2, 10), out.shape
    # bf16 MXU operands (f32 accumulation) -> loosened tolerance vs the f32 ref.
    assert jnp.allclose(out, ref, rtol=5e-2, atol=5e-2), (out, ref)

    print("KERNEL_OK")
</pallas_src>

<mosaic_0001>
module attributes {stable_mosaic.version = 11 : i64} {
  func.func @net_kernel(%arg0: i32, %arg1: memref<8x28x28xf32, #tpu.memory_space<vmem>>, %arg2: memref<140x256xbf16, #tpu.memory_space<vmem>>, %arg3: memref<1x256xf32, #tpu.memory_space<vmem>>, %arg4: memref<640x256xbf16, #tpu.memory_space<vmem>>, %arg5: memref<1x256xf32, #tpu.memory_space<vmem>>, %arg6: memref<4x128x10xbf16, #tpu.memory_space<vmem>>, %arg7: memref<1x10xf32, #tpu.memory_space<vmem>>, %arg8: memref<8x10xf32, #tpu.memory_space<vmem>>) attributes {dimension_semantics = [#tpu.dimension_semantics<parallel>], iteration_bounds = array<i64: 1>, scalar_prefetch = 0 : i64, scratch_operands = 0 : i64, tpu.core_type = #tpu.core_type<tc>, window_params = [{transform_indices = @transform_0, window_bounds = array<i64: 8, 28, 28>}, {pipeline_mode = #tpu.pipeline_mode<synchronous>, transform_indices = @transform_1, window_bounds = array<i64: 140, 256>}, {pipeline_mode = #tpu.pipeline_mode<synchronous>, transform_indices = @transform_2, window_bounds = array<i64: 1, 256>}, {pipeline_mode = #tpu.pipeline_mode<synchronous>, transform_indices = @transform_3, window_bounds = array<i64: 640, 256>}, {pipeline_mode = #tpu.pipeline_mode<synchronous>, transform_indices = @transform_4, window_bounds = array<i64: 1, 256>}, {pipeline_mode = #tpu.pipeline_mode<synchronous>, transform_indices = @transform_5, window_bounds = array<i64: 4, 128, 10>}, {pipeline_mode = #tpu.pipeline_mode<synchronous>, transform_indices = @transform_6, window_bounds = array<i64: 1, 10>}, {transform_indices = @transform_7, window_bounds = array<i64: 8, 10>}]} {
    %c0 = arith.constant 0 : index
    %c0_0 = arith.constant 0 : index
    %c0_1 = arith.constant 0 : index
    %0 = vector.load %arg1[%c0, %c0_0, %c0_1] : memref<8x28x28xf32, #tpu.memory_space<vmem>>, vector<8x28x28xf32>
    %1 = vector.extract_strided_slice %0 {offsets = [0, 0, 0], sizes = [8, 24, 28], strides = [1, 1, 1]} : vector<8x28x28xf32> to vector<8x24x28xf32>
    %2 = vector.extract_strided_slice %0 {offsets = [0, 1, 0], sizes = [8, 24, 28], strides = [1, 1, 1]} : vector<8x28x28xf32> to vector<8x24x28xf32>
    %3 = vector.extract_strided_slice %0 {offsets = [0, 2, 0], sizes = [8, 24, 28], strides = [1, 1, 1]} : vector<8x28x28xf32> to vector<8x24x28xf32>
    %4 = vector.extract_strided_slice %0 {offsets = [0, 3, 0], sizes = [8, 24, 28], strides = [1, 1, 1]} : vector<8x28x28xf32> to vector<8x24x28xf32>
    %5 = vector.extract_strided_slice %0 {offsets = [0, 4, 0], sizes = [8, 24, 28], strides = [1, 1, 1]} : vector<8x28x28xf32> to vector<8x24x28xf32>
    %6 = tpu.concatenate %1, %2, %3, %4, %5 in 2 : vector<8x24x28xf32>, vector<8x24x28xf32>, vector<8x24x28xf32>, vector<8x24x28xf32>, vector<8x24x28xf32> -> vector<8x24x140xf32>
    %7 = vector.shape_cast %6 : vector<8x24x140xf32> to vector<192x140xf32>
    %8 = arith.truncf %7 : vector<192x140xf32> to vector<192x140xbf16>
    %c0_2 = arith.constant 0 : index
    %c0_3 = arith.constant 0 : index
    %9 = vector.load %arg2[%c0_2, %c0_3] : memref<140x256xbf16, #tpu.memory_space<vmem>>, vector<140x256xbf16>
    %cst = arith.constant dense<0.000000e+00> : vector<192x256xf32>
    %10 = tpu.matmul %8, %9, %cst {dimension_numbers = #tpu.dot_dimension_numbers<[1], [0], [0], [1], [0, 0, 1, 1], [], []>} : vector<192x140xbf16>, vector<140x256xbf16>, vector<192x256xf32> -> vector<192x256xf32>
    %c0_4 = arith.constant 0 : index
    %c0_5 = arith.constant 0 : index
    %11 = vector.load %arg3[%c0_4, %c0_5] : memref<1x256xf32, #tpu.memory_space<vmem>>, vector<1x256xf32>
    %12 = vector.broadcast %11 : vector<1x256xf32> to vector<192x256xf32>
    %13 = arith.addf %10, %12 : vector<192x256xf32>
    %14 = vector.shape_cast %13 : vector<192x256xf32> to vector<8x24x256xf32>
    %15 = vector.extract_strided_slice %14 {offsets = [0, 0, 0], sizes = [8, 24, 128], strides = [1, 1, 1]} : vector<8x24x256xf32> to vector<8x24x128xf32>
    %16 = vector.extract_strided_slice %14 {offsets = [0, 0, 128], sizes = [8, 24, 128], strides = [1, 1, 1]} : vector<8x24x256xf32> to vector<8x24x128xf32>
    %17 = arith.maximumf %15, %16 : vector<8x24x128xf32>
    %18 = vector.shape_cast %17 : vector<8x24x128xf32> to vector<8x12x2x128xf32>
    %cst_6 = arith.constant dense<0xFF800000> : vector<8x12x128xf32>
    %19 = vector.multi_reduction <maximumf>, %18, %cst_6 [2] : vector<8x12x2x128xf32> to vector<8x12x128xf32>
    %cst_7 = arith.constant 0.000000e+00 : f32
    %20 = vector.broadcast %cst_7 : f32 to vector<8x12x128xf32>
    %21 = arith.maximumf %19, %20 : vector<8x12x128xf32>
    %22 = arith.truncf %21 : vector<8x12x128xf32> to vector<8x12x128xbf16>
    %23 = vector.extract_strided_slice %22 {offsets = [0, 0, 0], sizes = [8, 8, 128], strides = [1, 1, 1]} : vector<8x12x128xbf16> to vector<8x8x128xbf16>
    %24 = vector.extract_strided_slice %22 {offsets = [0, 1, 0], sizes = [8, 8, 128], strides = [1, 1, 1]} : vector<8x12x128xbf16> to vector<8x8x128xbf16>
    %25 = vector.extract_strided_slice %22 {offsets = [0, 2, 0], sizes = [8, 8, 128], strides = [1, 1, 1]} : vector<8x12x128xbf16> to vector<8x8x128xbf16>
    %26 = vector.extract_strided_slice %22 {offsets = [0, 3, 0], sizes = [8, 8, 128], strides = [1, 1, 1]} : vector<8x12x128xbf16> to vector<8x8x128xbf16>
    %27 = vector.extract_strided_slice %22 {offsets = [0, 4, 0], sizes = [8, 8, 128], strides = [1, 1, 1]} : vector<8x12x128xbf16> to vector<8x8x128xbf16>
    %28 = tpu.concatenate %23, %24, %25, %26, %27 in 2 : vector<8x8x128xbf16>, vector<8x8x128xbf16>, vector<8x8x128xbf16>, vector<8x8x128xbf16>, vector<8x8x128xbf16> -> vector<8x8x640xbf16>
    %29 = vector.shape_cast %28 : vector<8x8x640xbf16> to vector<64x640xbf16>
    %c0_8 = arith.constant 0 : index
    %c0_9 = arith.constant 0 : index
    %30 = vector.load %arg4[%c0_8, %c0_9] : memref<640x256xbf16, #tpu.memory_space<vmem>>, vector<640x256xbf16>
    %cst_10 = arith.constant dense<0.000000e+00> : vector<64x256xf32>
    %31 = tpu.matmul %29, %30, %cst_10 {dimension_numbers = #tpu.dot_dimension_numbers<[1], [0], [0], [1], [0, 0, 1, 1], [], []>} : vector<64x640xbf16>, vector<640x256xbf16>, vector<64x256xf32> -> vector<64x256xf32>
    %c0_11 = arith.constant 0 : index
    %c0_12 = arith.constant 0 : index
    %32 = vector.load %arg5[%c0_11, %c0_12] : memref<1x256xf32, #tpu.memory_space<vmem>>, vector<1x256xf32>
    %33 = vector.broadcast %32 : vector<1x256xf32> to vector<64x256xf32>
    %34 = arith.addf %31, %33 : vector<64x256xf32>
    %35 = vector.shape_cast %34 : vector<64x256xf32> to vector<8x8x256xf32>
    %36 = vector.extract_strided_slice %35 {offsets = [0, 0, 0], sizes = [8, 8, 128], strides = [1, 1, 1]} : vector<8x8x256xf32> to vector<8x8x128xf32>
    %37 = vector.extract_strided_slice %35 {offsets = [0, 0, 128], sizes = [8, 8, 128], strides = [1, 1, 1]} : vector<8x8x256xf32> to vector<8x8x128xf32>
    %38 = arith.maximumf %36, %37 : vector<8x8x128xf32>
    %39 = vector.shape_cast %38 : vector<8x8x128xf32> to vector<8x4x2x128xf32>
    %cst_13 = arith.constant dense<0xFF800000> : vector<8x4x128xf32>
    %40 = vector.multi_reduction <maximumf>, %39, %cst_13 [2] : vector<8x4x2x128xf32> to vector<8x4x128xf32>
    %cst_14 = arith.constant 0.000000e+00 : f32
    %41 = vector.broadcast %cst_14 : f32 to vector<8x4x128xf32>
    %42 = arith.maximumf %40, %41 : vector<8x4x128xf32>
    %43 = arith.truncf %42 : vector<8x4x128xf32> to vector<8x4x128xbf16>
    %44 = vector.extract_strided_slice %43 {offsets = [0, 0, 0], sizes = [8, 1, 128], strides = [1, 1, 1]} : vector<8x4x128xbf16> to vector<8x1x128xbf16>
    %45 = vector.shape_cast %44 : vector<8x1x128xbf16> to vector<8x128xbf16>
    %c0_15 = arith.constant 0 : index
    %c0_16 = arith.constant 0 : index
    %c0_17 = arith.constant 0 : index
    %46 = vector.load %arg6[%c0_15, %c0_16, %c0_17] : memref<4x128x10xbf16, #tpu.memory_space<vmem>>, vector<1x128x10xbf16>
    %47 = vector.shape_cast %46 : vector<1x128x10xbf16> to vector<128x10xbf16>
    %cst_18 = arith.constant dense<0.000000e+00> : vector<8x10xf32>
    %48 = tpu.matmul %45, %47, %cst_18 {dimension_numbers = #tpu.dot_dimension_numbers<[1], [0], [0], [1], [0, 0, 1, 1], [], []>} : vector<8x128xbf16>, vector<128x10xbf16>, vector<8x10xf32> -> vector<8x10xf32>
    %49 = vector.extract_strided_slice %43 {offsets = [0, 1, 0], sizes = [8, 1, 128], strides = [1, 1, 1]} : vector<8x4x128xbf16> to vector<8x1x128xbf16>
    %50 = vector.shape_cast %49 : vector<8x1x128xbf16> to vector<8x128xbf16>
    %c1 = arith.constant 1 : index
    %c0_19 = arith.constant 0 : index
    %c0_20 = arith.constant 0 : index
    %51 = vector.load %arg6[%c1, %c0_19, %c0_20] : memref<4x128x10xbf16, #tpu.memory_space<vmem>>, vector<1x128x10xbf16>
    %52 = vector.shape_cast %51 : vector<1x128x10xbf16> to vector<128x10xbf16>
    %cst_21 = arith.constant dense<0.000000e+00> : vector<8x10xf32>
    %53 = tpu.matmul %50, %52, %cst_21 {dimension_numbers = #tpu.dot_dimension_numbers<[1], [0], [0], [1], [0, 0, 1, 1], [], []>} : vector<8x128xbf16>, vector<128x10xbf16>, vector<8x10xf32> -> vector<8x10xf32>
    %54 = arith.addf %48, %53 : vector<8x10xf32>
    %55 = vector.extract_strided_slice %43 {offsets = [0, 2, 0], sizes = [8, 1, 128], strides = [1, 1, 1]} : vector<8x4x128xbf16> to vector<8x1x128xbf16>
    %56 = vector.shape_cast %55 : vector<8x1x128xbf16> to vector<8x128xbf16>
    %c2 = arith.constant 2 : index
    %c0_22 = arith.constant 0 : index
    %c0_23 = arith.constant 0 : index
    %57 = vector.load %arg6[%c2, %c0_22, %c0_23] : memref<4x128x10xbf16, #tpu.memory_space<vmem>>, vector<1x128x10xbf16>
    %58 = vector.shape_cast %57 : vector<1x128x10xbf16> to vector<128x10xbf16>
    %cst_24 = arith.constant dense<0.000000e+00> : vector<8x10xf32>
    %59 = tpu.matmul %56, %58, %cst_24 {dimension_numbers = #tpu.dot_dimension_numbers<[1], [0], [0], [1], [0, 0, 1, 1], [], []>} : vector<8x128xbf16>, vector<128x10xbf16>, vector<8x10xf32> -> vector<8x10xf32>
    %60 = arith.addf %54, %59 : vector<8x10xf32>
    %61 = vector.extract_strided_slice %43 {offsets = [0, 3, 0], sizes = [8, 1, 128], strides = [1, 1, 1]} : vector<8x4x128xbf16> to vector<8x1x128xbf16>
    %62 = vector.shape_cast %61 : vector<8x1x128xbf16> to vector<8x128xbf16>
    %c3 = arith.constant 3 : index
    %c0_25 = arith.constant 0 : index
    %c0_26 = arith.constant 0 : index
    %63 = vector.load %arg6[%c3, %c0_25, %c0_26] : memref<4x128x10xbf16, #tpu.memory_space<vmem>>, vector<1x128x10xbf16>
    %64 = vector.shape_cast %63 : vector<1x128x10xbf16> to vector<128x10xbf16>
    %cst_27 = arith.constant dense<0.000000e+00> : vector<8x10xf32>
    %65 = tpu.matmul %62, %64, %cst_27 {dimension_numbers = #tpu.dot_dimension_numbers<[1], [0], [0], [1], [0, 0, 1, 1], [], []>} : vector<8x128xbf16>, vector<128x10xbf16>, vector<8x10xf32> -> vector<8x10xf32>
    %66 = arith.addf %60, %65 : vector<8x10xf32>
    %c0_28 = arith.constant 0 : index
    %c0_29 = arith.constant 0 : index
    %67 = vector.load %arg7[%c0_28, %c0_29] : memref<1x10xf32, #tpu.memory_space<vmem>>, vector<1x10xf32>
    %68 = vector.broadcast %67 : vector<1x10xf32> to vector<8x10xf32>
    %69 = arith.addf %66, %68 : vector<8x10xf32>
    %c0_30 = arith.constant 0 : index
    %c0_31 = arith.constant 0 : index
    %70 = vector.load %arg8[%c0_30, %c0_31] : memref<8x10xf32, #tpu.memory_space<vmem>>, vector<8x10xf32>
    tpu.vector_store %arg8[%c0_30, %c0_31], %69 {strides = array<i32>} : memref<8x10xf32, #tpu.memory_space<vmem>>, vector<8x10xf32>,
    return
  }
  func.func @transform_0(%arg0: i32) -> (i32, i32, i32) {
    %c0_i32 = arith.constant 0 : i32
    %c0_i32_0 = arith.constant 0 : i32
    %c0_i32_1 = arith.constant 0 : i32
    return %arg0, %c0_i32, %c0_i32_0 : i32, i32, i32
  }
  func.func @transform_1(%arg0: i32) -> (i32, i32) {
    %c0_i32 = arith.constant 0 : i32
    %c0_i32_0 = arith.constant 0 : i32
    %c0_i32_1 = arith.constant 0 : i32
    return %c0_i32, %c0_i32_0 : i32, i32
  }
  func.func @transform_2(%arg0: i32) -> (i32, i32) {
    %c0_i32 = arith.constant 0 : i32
    %c0_i32_0 = arith.constant 0 : i32
    %c0_i32_1 = arith.constant 0 : i32
    return %c0_i32, %c0_i32_0 : i32, i32
  }
  func.func @transform_3(%arg0: i32) -> (i32, i32) {
    %c0_i32 = arith.constant 0 : i32
    %c0_i32_0 = arith.constant 0 : i32
    %c0_i32_1 = arith.constant 0 : i32
    return %c0_i32, %c0_i32_0 : i32, i32
  }
  func.func @transform_4(%arg0: i32) -> (i32, i32) {
    %c0_i32 = arith.constant 0 : i32
    %c0_i32_0 = arith.constant 0 : i32
    %c0_i32_1 = arith.constant 0 : i32
    return %c0_i32, %c0_i32_0 : i32, i32
  }
  func.func @transform_5(%arg0: i32) -> (i32, i32, i32) {
    %c0_i32 = arith.constant 0 : i32
    %c0_i32_0 = arith.constant 0 : i32
    %c0_i32_1 = arith.constant 0 : i32
    %c0_i32_2 = arith.constant 0 : i32
    return %c0_i32, %c0_i32_0, %c0_i32_1 : i32, i32, i32
  }
  func.func @transform_6(%arg0: i32) -> (i32, i32) {
    %c0_i32 = arith.constant 0 : i32
    %c0_i32_0 = arith.constant 0 : i32
    %c0_i32_1 = arith.constant 0 : i32
    return %c0_i32, %c0_i32_0 : i32, i32
  }
  func.func @transform_7(%arg0: i32) -> (i32, i32) {
    %c0_i32 = arith.constant 0 : i32
    %c0_i32_0 = arith.constant 0 : i32
    return %arg0, %c0_i32 : i32, i32
  }
}

</mosaic_0001>

<bundles_post_ra>
// kernel: net_forward.1
= control target key start
LH: loop header
LB: loop body
LE: loop exit
PB: predicated region body
PF: predicated region fallthrough
CT: control target
= control target key end

     0   :  { %vm91_vm0 = vcmask 1046528   ;;  %vm349_vm1 = vcmask 1044480   ;;  %vm220_vm2 = vcmask 1045504   ;;  %vm478_vm3 = vcmask 1043456   ;;  %s5492_s13 = smov 28   ;;  %s5493_s14 = smov 84   ;;  %s8242_s0 = inlined_call_operand.vmem [shape: f32[8,28,28], index: 0, kind: input, shape index: {}]   ;;  %s8243_s1 = inlined_call_operand.vmem [shape: bf16[140,256], index: 1, kind: input, shape index: {}]   ;;  %s8244_s3 = inlined_call_operand.vmem [shape: bf16[640,256], index: 3, kind: input, shape index: {}]   ;;  %s8245_s2 = inlined_call_operand.vmem [shape: f32[1,256], index: 2, kind: input, shape index: {}]   ;;  %s8246_s5 = inlined_call_operand.vmem [shape: bf16[4,128,10], index: 5, kind: input, shape index: {}]   ;;  %s8247_s4 = inlined_call_operand.vmem [shape: f32[1,256], index: 4, kind: input, shape index: {}]   ;;  %s8248_s6 = inlined_call_operand.vmem [shape: f32[1,10], index: 6, kind: input, shape index: {}]   ;;  %s8249_s7 = inlined_call_operand.vmem [shape: f32[8,10], index: 7, kind: output, shape index: {}]  }
   0x1   :  { %v27_v0 = vld [vmem:[%s8242_s0] sm:$0xff]  ;;  %v28_v1 = vld [vmem:[%s8242_s0 + $0x8] sm:$0xff]  ;;  %v5549_v2 = vld [vmem:[%s8242_s0 + $0x10] sm:$0xff]  ;;  %s5494_s19 = smov 56   ;;  %s5495_s20 = smov 112   ;;  %vm607_vm4 = vcmask 228352  }
   0x2   :  { %v92_v3 = vrot.slane %v27_v0, 1  ;;  %v93_v4 = vrot.slane %v28_v1, 1  ;;  %v95_v5 = vrot.slane %v5549_v2, 1  ;;  %v350_v6 = vrot.slane %v27_v0, 3  ;;  %v30_v15 = vld [vmem:[%s8242_s0 + $0x18] sm:$0xf] }
   0x3   :  { %v351_v7 = vrot.slane %v28_v1, 3  ;;  %v353_v8 = vrot.slane %v5549_v2, 3  ;;  %v221_v9 = vrot.slane %v27_v0, 2  ;;  %v222_v10 = vrot.slane %v28_v1, 2  ;;  %v31_v16 = vld [vmem:[%s8242_s0 + $0x20] sm:$0xff]  ;;  %v5565_v17 = vld [vmem:[%s8242_s0 + $0x28] sm:$0xff] }
   0x4   :  { %v94_v11 = vsel %vm91_vm0, %v92_v3, %v93_v4  ;;  %v96_v12 = vsel %vm91_vm0, %v93_v4, %v95_v5  ;;  %v224_v13 = vrot.slane %v5549_v2, 2  ;;  %v479_v14 = vrot.slane %v27_v0, 4  ;;  %v5583_v38 = vld [vmem:[%s8242_s0 + $0x30] sm:$0xff]  ;;  %v34_v43 = vld [vmem:[%s8242_s0 + $0x38] sm:$0xf]  ;;  %v5599_v52 = vld [vmem:[%s8242_s0 + $0x40] sm:$0xff] }
   0x5   :  { %v5063_v18 = vpack.i.bf16 %v96_v12, %v94_v11  ;;  %v352_v19 = vsel %vm349_vm1, %v350_v6, %v351_v7  ;;  %v354_v20 = vsel %vm349_vm1, %v351_v7, %v353_v8  ;;  %v223_v21 = vsel %vm220_vm2, %v221_v9, %v222_v10  ;;  %v5607_v57 = vld [vmem:[%s8242_s0 + $0x48] sm:$0xff]  ;;  %v5624_v3 = vld [vmem:[%s8242_s0 + $0x50] sm:$0xff] }
   0x6   :  { %v5073_v22 = vpack.i.bf16 %v354_v20, %v352_v19  ;;  %v225_v23 = vsel %vm220_vm2, %v222_v10, %v224_v13  ;;  %v480_v24 = vrot.slane %v28_v1, 4  ;;  %v482_v25 = vrot.slane %v5549_v2, 4  ;;  %v5303_v61 = vld [vmem:[%s8243_s1 + $0x4] ss:$8 sps:$4 sm:$0xff]   ;;  %v5305_v62 = vld [vmem:[%s8243_s1] ss:$8 sps:$4 sm:$0xff]  }
   0x7   :  { %5064 = vrot.lane.b32.xlu0 %v5063_v18, %s5492_s13  ;;  %v5068_v26 = vpack.i.bf16 %v225_v23, %v223_v21  ;;  %v97_v27 = vrot.slane %v30_v15, 1  ;;  %v99_v28 = vrot.slane %v31_v16, 1  ;;  %v100_v29 = vrot.slane %v5565_v17, 1  ;;  %v5306_v4 = vld [vmem:[%s8243_s1 + $0x14] ss:$8 sps:$4 sm:$0xff]   ;;  %892 = vmatprep.subr.bf16.mxu0 %v5303_v61 }
   0x8   :  { %5074 = vrot.lane.b32.xlu1 %v5073_v22, %s5493_s14  ;;  %v481_v30 = vsel %vm478_vm3, %v479_v14, %v480_v24  ;;  %v483_v31 = vsel %vm478_vm3, %v480_v24, %v482_v25  ;;  %v226_v32 = vrot.slane %v30_v15, 2  ;;  %v228_v33 = vrot.slane %v31_v16, 2  ;;  %893 = vmatpush1.bf16.msra.mxu0 %v5305_v62  ;;  %v5308_v11 = vld [vmem:[%s8243_s1 + $0x10] ss:$8 sps:$4 sm:$0xff]   ;;  %v5654_v22 = vld [vmem:[%s8242_s0 + $0x60] sm:$0xff] }
   0x9   :  { %v5078_v34 = vpack.i.bf16 %v483_v31, %v481_v30  ;;  %v98_v35 = vsel %vm91_vm0, %v95_v5, %v97_v27  ;;  %v101_v36 = vsel %vm91_vm0, %v99_v28, %v100_v29  ;;  %v229_v37 = vrot.slane %v5565_v17, 2  ;;  %894 = vmatprep.subr.bf16.mxu0 %v5306_v4  ;;  %v5664_v27 = vld [vmem:[%s8242_s0 + $0x68] sm:$0xff] }
   0xa   :  { %v5083_v39 = vpack.i.bf16 %v101_v36, %v98_v35  ;;  %v227_v40 = vsel %vm220_vm2, %v224_v13, %v226_v32  ;;  %v355_v41 = vrot.slane %v30_v15, 3  ;;  %v357_v42 = vrot.slane %v31_v16, 3  ;;  %v5311_v32 = vld [vmem:[%s8243_s1 + $0x20] ss:$8 sps:$4 sm:$0xff]  }
   0xb   :  { %5069 = vrot.lane.b32.xlu0 %v5068_v26, %s5494_s19  ;;  %v230_v44 = vsel %vm220_vm2, %v228_v33, %v229_v37  ;;  %v358_v45 = vrot.slane %v5565_v17, 3  ;;  %v484_v46 = vrot.slane %v30_v15, 4  ;;  %v486_v47 = vrot.slane %v31_v16, 4  ;;  %v5641_v16 = vld [vmem:[%s8242_s0 + $0x58] sm:$0xf] }
   0xc   :  { %5079 = vrot.lane.b32.xlu1 %v5078_v34, %s5495_s20  ;;  %v5088_v48 = vpack.i.bf16 %v230_v44, %v227_v40  ;;  %v356_v49 = vsel %vm349_vm1, %v353_v8, %v355_v41  ;;  %v487_v50 = vrot.slane %v5565_v17, 4  ;;  %v102_v51 = vrot.slane %v5583_v38, 1  ;;  %v5309_v17 = vld [vmem:[%s8243_s1 + $0x24] ss:$8 sps:$4 sm:$0xff]   ;;  %895 = vmatpush1.bf16.msra.mxu0 %v5308_v11  ;;  %v5312_v33 = vld [vmem:[%s8243_s1 + $0x34] ss:$8 sps:$4 sm:$0xff]  }
   0xd   :  { %v359_v53 = vsel %vm349_vm1, %v357_v42, %v358_v45  ;;  %v485_v54 = vsel %vm478_vm3, %v482_v25, %v484_v46  ;;  %v104_v55 = vrot.slane %v34_v43, 1  ;;  %v231_v56 = vrot.slane %v5583_v38, 2  ;;  %896 = vmatprep.subr.bf16.mxu0 %v5309_v17  ;;  %v5314_v46 = vld [vmem:[%s8243_s1 + $0x30] ss:$8 sps:$4 sm:$0xff]   ;;  %v5741_v11 = vld [vmem:[%s8242_s0 + $0x80] sm:$0xff] }
   0xe   :  { %v5093_v58 = vpack.i.bf16 %v359_v53, %v356_v49  ;;  %v488_v59 = vsel %vm478_vm3, %v486_v47, %v487_v50  ;;  %v233_v60 = vrot.slane %v34_v43, 2  ;;  %v103_v63 = vsel %vm91_vm0, %v100_v29, %v102_v51 }
   0xf   :  { %5084 = vrot.lane.b32.xlu0 %v5083_v39, %s5492_s13  ;;  %v105_v0 = vsel %vm91_vm0, %v102_v51, %v104_v55  ;;  %v232_v1 = vsel %vm220_vm2, %v229_v37, %v231_v56  ;;  %v360_v2 = vrot.slane %v5583_v38, 3  ;;  %v5098_v5 = vpack.i.bf16 %v488_v59, %v485_v54  ;;  %v5315_v51 = vld [vmem:[%s8243_s1 + $0x44] ss:$8 sps:$4 sm:$0xff]  }
  0x10   :  { %5089 = vrot.lane.b32.xlu1 %v5088_v48, %s5494_s19  ;;  %v234_v6 = vsel %vm220_vm2, %v231_v56, %v233_v60  ;;  %v362_v7 = vrot.slane %v34_v43, 3  ;;  %v489_v8 = vrot.slane %v5583_v38, 4  ;;  %v491_v9 = vrot.slane %v34_v43, 4  ;;  %897 = vmatpush1.bf16.msra.mxu0 %v5311_v32 }
  0x11   :  { %v106_v10 = vrot.slane %v5599_v52, 1  ;;  %v5103_v12 = vpack.i.bf16 %v105_v0, %v103_v63  ;;  %v5108_v13 = vpack.i.bf16 %v234_v6, %v232_v1  ;;  %v107_v14 = vrot.slane %v5607_v57, 1  ;;  %898 = vmatprep.subr.bf16.mxu0 %v5312_v33  ;;  %v5718_v63 = vld [vmem:[%s8242_s0 + $0x70] sm:$0xff]  ;;  %v5317_v0 = vld [vmem:[%s8243_s1 + $0x40] ss:$8 sps:$4 sm:$0xff]  }
  0x12   :  { %v109_v15 = vrot.slane %v5624_v3, 1  ;;  %v361_v18 = vsel %vm349_vm1, %v358_v45, %v360_v2  ;;  %v363_v19 = vsel %vm349_vm1, %v360_v2, %v362_v7  ;;  %v235_v20 = vrot.slane %v5599_v52, 2  ;;  %v42_v1 = vld [vmem:[%s8242_s0 + $0x78] sm:$0xf]  ;;  %v5318_v2 = vld [vmem:[%s8243_s1 + $0x54] ss:$8 sps:$4 sm:$0xff]  }
  0x13   :  { %5094 = vrot.lane.b32.xlu0 %v5093_v58, %s5493_s14  ;;  %v236_v21 = vrot.slane %v5607_v57, 2  ;;  %v490_v23 = vsel %vm478_vm3, %v487_v50, %v489_v8  ;;  %v492_v24 = vsel %vm478_vm3, %v489_v8, %v491_v9  ;;  %v108_v25 = vsel %vm91_vm0, %v106_v10, %v107_v14 }
  0x14   :  { %5099 = vrot.lane.b32.xlu1 %v5098_v5, %s5495_s20  ;;  %v238_v26 = vrot.slane %v5624_v3, 2  ;;  %v110_v28 = vsel %vm91_vm0, %v107_v14, %v109_v15  ;;  %v364_v30 = vrot.slane %v5599_v52, 3  ;;  %v365_v31 = vrot.slane %v5607_v57, 3  ;;  %899 = vmatpush1.bf16.msra.mxu0 %v5314_v46 }
  0x15   :  { %v237_v29 = vsel %vm220_vm2, %v235_v20, %v236_v21  ;;  %v367_v35 = vrot.slane %v5624_v3, 3  ;;  %v493_v36 = vrot.slane %v5599_v52, 4  ;;  %v494_v37 = vrot.slane %v5607_v57, 4  ;;  %900 = vmatprep.subr.bf16.mxu0 %v5315_v51 }
  0x16   :  { %v239_v34 = vsel %vm220_vm2, %v236_v21, %v238_v26  ;;  %v5113_v38 = vpack.i.bf16 %v363_v19, %v361_v18  ;;  %v496_v39 = vrot.slane %v5624_v3, 4  ;;  %v111_v40 = vrot.slane %v5641_v16, 1  ;;  %v5320_v18 = vld [vmem:[%s8243_s1 + $0x50] ss:$8 sps:$4 sm:$0xff]  }
  0x17   :  { %5104 = vrot.lane.b32.xlu0 %v5103_v12, %s5492_s13  ;;  %v5118_v41 = vpack.i.bf16 %v492_v24, %v490_v23  ;;  %v113_v42 = vrot.slane %v5654_v22, 1  ;;  %v114_v43 = vrot.slane %v5664_v27, 1  ;;  %v5123_v44 = vpack.i.bf16 %v110_v28, %v108_v25  ;;  %v5746_v12 = vld [vmem:[%s8242_s0 + $0x88] sm:$0xff] }
  0x18   :  { %5109 = vrot.lane.b32.xlu1 %v5108_v13, %s5494_s19  ;;  %v5128_v45 = vpack.i.bf16 %v239_v34, %v237_v29  ;;  %v366_v47 = vsel %vm349_vm1, %v364_v30, %v365_v31  ;;  %v368_v48 = vsel %vm349_vm1, %v365_v31, %v367_v35  ;;  %v495_v49 = vsel %vm478_vm3, %v493_v36, %v494_v37  ;;  %v5751_v13 = vld [vmem:[%s8242_s0 + $0x90] sm:$0xff]  ;;  %v5321_v24 = vld [vmem:[%s8243_s1 + $0x64] ss:$8 sps:$4 sm:$0xff]  }
  0x19   :  { %v497_v50 = vsel %vm478_vm3, %v494_v37, %v496_v39  ;;  %v5698_v52 = vsel %vm91_vm0, %v109_v15, %v111_v40  ;;  %v5703_v53 = vsel %vm91_vm0, %v113_v42, %v114_v43  ;;  %v240_v54 = vrot.slane %v5641_v16, 2  ;;  %901 = vmatpush1.bf16.msra.mxu0 %v5317_v0  ;;  %v5324_v42 = vld [vmem:[%s8243_s1 + $0x74] ss:$8 sps:$4 sm:$0xff]  }
  0x1a   :  { %v242_v55 = vrot.slane %v5654_v22, 2  ;;  %v243_v56 = vrot.slane %v5664_v27, 2  ;;  %v369_v57 = vrot.slane %v5641_v16, 3  ;;  %v371_v58 = vrot.slane %v5654_v22, 3  ;;  %902 = vmatprep.subr.bf16.mxu0 %v5318_v2  ;;  %v5848_v2 = vld [vmem:[%s8242_s0 + $0xb0] sm:$0xff] }
  0x1b   :  { %5114 = vrot.lane.b32.xlu0 %v5113_v38, %s5493_s14  ;;  %v372_v59 = vrot.slane %v5664_v27, 3  ;;  %v498_v60 = vrot.slane %v5641_v16, 4  ;;  %v500_v61 = vrot.slane %v5654_v22, 4  ;;  %v501_v62 = vrot.slane %v5664_v27, 4  ;;  %v5323_v38 = vld [vmem:[%s8243_s1 + $0x60] ss:$8 sps:$4 sm:$0xff]  }
  0x1c   :  { %5119 = vrot.lane.b32.xlu1 %v5118_v41, %s5495_s20  ;;  %v5133_v3 = vpack.i.bf16 %v368_v48, %v366_v47  ;;  %v5138_v4 = vpack.i.bf16 %v497_v50, %v495_v49  ;;  %v5143_v5 = vpack.i.bf16 %v5703_v53, %v5698_v52  ;;  %v241_v6 = vsel %vm220_vm2, %v238_v26, %v240_v54  ;;  %v5806_v47 = vld [vmem:[%s8242_s0 + $0x98] sm:$0xf] }
  0x1d   :  { %v244_v7 = vsel %vm220_vm2, %v242_v55, %v243_v56  ;;  %v370_v8 = vsel %vm349_vm1, %v367_v35, %v369_v57  ;;  %v373_v9 = vsel %vm349_vm1, %v371_v58, %v372_v59  ;;  %v116_v10 = vrot.slane %v5718_v63, 1  ;;  %903 = vmatpush1.bf16.msra.mxu0 %v5320_v18  ;;  %v5829_v57 = vld [vmem:[%s8242_s0 + $0xa0] sm:$0xff]  ;;  %v5834_v58 = vld [vmem:[%s8242_s0 + $0xa8] sm:$0xff] }
  0x1e   :  { %v499_v14 = vsel %vm478_vm3, %v496_v39, %v498_v60  ;;  %v502_v15 = vsel %vm478_vm3, %v500_v61, %v501_v62  ;;  %v118_v16 = vrot.slane %v42_v1, 1  ;;  %v245_v17 = vrot.slane %v5718_v63, 2  ;;  %904 = vmatprep.subr.bf16.mxu0 %v5321_v24  ;;  %v5327_v60 = vld [vmem:[%s8243_s1 + $0x84] ss:$8 sps:$4 sm:$0x3f]  }
  0x1f   :  { %5124 = vrot.lane.b32.xlu0 %v5123_v44, %s5492_s13  ;;  %v247_v19 = vrot.slane %v42_v1, 2  ;;  %v374_v20 = vrot.slane %v5718_v63, 3  ;;  %v376_v21 = vrot.slane %v42_v1, 3  ;;  %v503_v23 = vrot.slane %v5718_v63, 4 }
  0x20   :  { %5129 = vrot.lane.b32.xlu1 %v5128_v45, %s5494_s19  ;;  %v505_v25 = vrot.slane %v42_v1, 4  ;;  %v120_v26 = vrot.slane %v5741_v11, 1  ;;  %v121_v28 = vrot.slane %v5746_v12, 1  ;;  %v123_v29 = vrot.slane %v5751_v13, 1 }
  0x21   :  { %v5148_v30 = vpack.i.bf16 %v244_v7, %v241_v6  ;;  %v5153_v31 = vpack.i.bf16 %v373_v9, %v370_v8  ;;  %v249_v32 = vrot.slane %v5741_v11, 2  ;;  %v250_v33 = vrot.slane %v5746_v12, 2  ;;  %905 = vmatpush1.bf16.msra.mxu0 %v5323_v38  ;;  %v50_v7 = vld [vmem:[%s8242_s0 + $0xb8] sm:$0xf] }
  0x22   :  { %v5158_v34 = vpack.i.bf16 %v502_v15, %v499_v14  ;;  %v117_v35 = vsel %vm91_vm0, %v114_v43, %v116_v10  ;;  %v119_v36 = vsel %vm91_vm0, %v116_v10, %v118_v16  ;;  %v252_v37 = vrot.slane %v5751_v13, 2  ;;  %906 = vmatprep.subr.bf16.mxu0 %v5324_v42 }
  0x23   :  { %5134 = vrot.lane.b32.xlu0 %v5133_v3, %s5493_s14  ;;  %v246_v39 = vsel %vm220_vm2, %v243_v56, %v245_v17  ;;  %v248_v40 = vsel %vm220_vm2, %v245_v17, %v247_v19  ;;  %v5782_v41 = vsel %vm349_vm1, %v372_v59, %v374_v20  ;;  %v5785_v27 = vsel %vm349_vm1, %v374_v20, %v376_v21  ;;  %v5326_v56 = vld [vmem:[%s8243_s1 + $0x70] ss:$8 sps:$4 sm:$0xff]  }
  0x24   :  { %5139 = vrot.lane.b32.xlu1 %v5138_v4, %s5495_s20  ;;  %v5792_v43 = vsel %vm478_vm3, %v501_v62, %v503_v23  ;;  %v5795_v44 = vsel %vm478_vm3, %v503_v23, %v505_v25  ;;  %v5798_v45 = vsel %vm91_vm0, %v120_v26, %v121_v28  ;;  %v5801_v46 = vsel %vm91_vm0, %v121_v28, %v123_v29 }
  0x25   :  { %v5810_v48 = vsel %vm220_vm2, %v249_v32, %v250_v33  ;;  %v378_v49 = vrot.slane %v5741_v11, 3  ;;  %v379_v50 = vrot.slane %v5746_v12, 3  ;;  %v381_v51 = vrot.slane %v5751_v13, 3  ;;  %907 = vmatpush1.bf16.msra.mxu0 %v5326_v56  ;;  %v5959_v56 = vld [vmem:[%s8242_s0 + $0xc8] sm:$0xff] }
  0x26   :  { %v5818_v52 = vsel %vm220_vm2, %v250_v33, %v252_v37  ;;  %v507_v53 = vrot.slane %v5741_v11, 4  ;;  %v508_v54 = vrot.slane %v5746_v12, 4  ;;  %v510_v55 = vrot.slane %v5751_v13, 4  ;;  %4717 = vmatprep.subr.msk.bf16.mxu0 %vm220_vm2, %v5327_v60  ;;  %v5969_v60 = vld [vmem:[%s8242_s0 + $0xe8] sm:$0xff] }
  0x27   :  { %5144 = vrot.lane.b32.xlu0 %v5143_v5, %s5492_s13  ;;  %v125_v59 = vrot.slane %v5806_v47, 1  ;;  %v5163_v61 = vpack.i.bf16 %v119_v36, %v117_v35  ;;  %v5168_v62 = vpack.i.bf16 %v248_v40, %v246_v39  ;;  %v5173_v0 = vpack.i.bf16 %v5785_v27, %v5782_v41 }
  0x28   :  { %5149 = vrot.lane.b32.xlu1 %v5148_v30, %s5494_s19  ;;  %v5178_v1 = vpack.i.bf16 %v5795_v44, %v5792_v43  ;;  %v5183_v3 = vpack.i.bf16 %v5801_v46, %v5798_v45  ;;  %v5188_v4 = vpack.i.bf16 %v5818_v52, %v5810_v48  ;;  %v5856_v5 = vsel %vm349_vm1, %v378_v49, %v379_v50  ;;  %v5943_v52 = vld [vmem:[%s8242_s0 + $0xc0] sm:$0xff] }
  0x29   :  { %v5859_v6 = vsel %vm349_vm1, %v379_v50, %v381_v51  ;;  %v5865_v8 = vsel %vm478_vm3, %v507_v53, %v508_v54  ;;  %v5868_v9 = vsel %vm478_vm3, %v508_v54, %v510_v55  ;;  %v127_v10 = vrot.slane %v5829_v57, 1  ;;  %v5948_v53 = vld [vmem:[%s8242_s0 + $0xd0] sm:$0xff]  ;;  %v54_v54 = vld [vmem:[%s8242_s0 + $0xd8] sm:$0xf] }
  0x2a   :  { %v128_v14 = vrot.slane %v5834_v58, 1  ;;  %v5873_v15 = vsel %vm91_vm0, %v123_v29, %v125_v59  ;;  %v254_v16 = vrot.slane %v5806_v47, 2  ;;  %v256_v17 = vrot.slane %v5829_v57, 2  ;;  %v5964_v59 = vld [vmem:[%s8242_s0 + $0xe0] sm:$0xff] }
  0x2b   :  { %5154 = vrot.lane.b32.xlu0 %v5153_v31, %s5493_s14  ;;  %v130_v18 = vrot.slane %v5848_v2, 1  ;;  %v257_v19 = vrot.slane %v5834_v58, 2  ;;  %v383_v20 = vrot.slane %v5806_v47, 3  ;;  %v385_v21 = vrot.slane %v5829_v57, 3 }
  0x2c   :  { %5159 = vrot.lane.b32.xlu1 %v5158_v34, %s5495_s20  ;;  %v132_v23 = vrot.slane %v50_v7, 1  ;;  %v386_v24 = vrot.slane %v5834_v58, 3  ;;  %v512_v25 = vrot.slane %v5806_v47, 4  ;;  %v514_v26 = vrot.slane %v5829_v57, 4 }
  0x2d   :  { %v5888_v28 = vsel %vm91_vm0, %v128_v14, %v130_v18  ;;  %v515_v29 = vrot.slane %v5834_v58, 4  ;;  %v259_v31 = vrot.slane %v5848_v2, 2  ;;  %v388_v32 = vrot.slane %v5848_v2, 3 }
  0x2e   :  { %v5892_v30 = vsel %vm91_vm0, %v130_v18, %v132_v23  ;;  %v261_v34 = vrot.slane %v50_v7, 2  ;;  %v390_v35 = vrot.slane %v50_v7, 3  ;;  %v517_v36 = vrot.slane %v5848_v2, 4  ;;  %v6004_v23 = vld [vmem:[%s8242_s0 + $0xf0] sm:$0xff] }
  0x2f   :  { %5164 = vrot.lane.b32.xlu0 %v5163_v61, %s5492_s13  ;;  %v5223_v33 = vpack.i.bf16 %v5892_v30, %v5888_v28  ;;  %v129_v38 = vsel %vm91_vm0, %v127_v10, %v128_v14  ;;  %v255_v39 = vsel %vm220_vm2, %v252_v37, %v254_v16  ;;  %v5905_v40 = vsel %vm349_vm1, %v386_v24, %v388_v32 }
  0x30   :  { %5169 = vrot.lane.b32.xlu1 %v5168_v62, %s5494_s19  ;;  %v519_v41 = vrot.slane %v50_v7, 4  ;;  %v258_v27 = vsel %vm220_vm2, %v256_v17, %v257_v19  ;;  %v5910_v42 = vsel %vm349_vm1, %v381_v51, %v383_v20  ;;  %v5913_v43 = vsel %vm349_vm1, %v388_v32, %v390_v35 }
  0x31   :  { %v5916_v44 = vsel %vm478_vm3, %v515_v29, %v517_v36  ;;  %v5919_v45 = vsel %vm349_vm1, %v385_v21, %v386_v24  ;;  %v5922_v37 = vsel %vm478_vm3, %v510_v55, %v512_v25  ;;  %v5233_v46 = vpack.i.bf16 %v5913_v43, %v5905_v40 }
  0x32   :  { %v5927_v47 = vsel %vm478_vm3, %v517_v36, %v519_v41  ;;  %v5930_v48 = vsel %vm478_vm3, %v514_v26, %v515_v29  ;;  %v5933_v49 = vsel %vm220_vm2, %v257_v19, %v259_v31  ;;  %v5936_v50 = vsel %vm220_vm2, %v259_v31, %v261_v34  ;;  %v58_v31 = vld [vmem:[%s8242_s0 + $0xf8] sm:$0xf] }
  0x33   :  { %5174 = vrot.lane.b32.xlu0 %v5173_v0, %s5493_s14  ;;  %v5238_v51 = vpack.i.bf16 %v5927_v47, %v5916_v44  ;;  %v5193_v55 = vpack.i.bf16 %v5859_v6, %v5856_v5  ;;  %v5198_v61 = vpack.i.bf16 %v5868_v9, %v5865_v8  ;;  %v5203_v62 = vpack.i.bf16 %v129_v38, %v5873_v15  ;;  %v5332_v47 = vld [vmem:[%s8244_s3] ss:$8 sps:$4 sm:$0xff]  }
  0x34   :  { %5179 = vrot.lane.b32.xlu1 %v5178_v1, %s5495_s20  ;;  %v5208_v0 = vpack.i.bf16 %v258_v27, %v255_v39  ;;  %v5213_v1 = vpack.i.bf16 %v5919_v45, %v5910_v42  ;;  %v5228_v5 = vpack.i.bf16 %v5936_v50, %v5933_v49  ;;  %v137_v6 = vrot.slane %v5948_v53, 1 }
  0x35   :  { %v139_v7 = vrot.slane %v54_v54, 1  ;;  %v135_v10 = vrot.slane %v5959_v56, 1  ;;  %v141_v8 = vrot.slane %v5964_v59, 1  ;;  %v142_v9 = vrot.slane %v5969_v60, 1 }
  0x36   :  { %v266_v14 = vrot.slane %v5948_v53, 2  ;;  %v395_v15 = vrot.slane %v5948_v53, 3  ;;  %v268_v17 = vrot.slane %v54_v54, 2  ;;  %v524_v18 = vrot.slane %v5948_v53, 4 }
  0x37   :  { %5184 = vrot.lane.b32.xlu0 %v5183_v3, %s5492_s13  ;;  %v5218_v3 = vpack.i.bf16 %v5930_v48, %v5922_v37  ;;  %v5992_v16 = vsel %vm91_vm0, %v137_v6, %v139_v7  ;;  %v5997_v19 = vsel %vm91_vm0, %v141_v8, %v142_v9  ;;  %v270_v20 = vrot.slane %v5964_v59, 2  ;;  %v5329_v7 = vld [vmem:[%s8243_s1 + $0x80] ss:$8 sps:$4 sm:$0x3f]  }
  0x38   :  { %5189 = vrot.lane.b32.xlu1 %v5188_v4, %s5494_s19  ;;  %v134_v4 = vrot.slane %v5943_v52, 1  ;;  %v271_v21 = vrot.slane %v5969_v60, 2  ;;  %v5263_v24 = vpack.i.bf16 %v5997_v19, %v5992_v16  ;;  %v6011_v25 = vsel %vm220_vm2, %v266_v14, %v268_v17  ;;  %v5336_v16 = vld [vmem:[%s8244_s3 + $0x24] ss:$8 sps:$4 sm:$0xff]  }
  0x39   :  { %v397_v26 = vrot.slane %v54_v54, 3  ;;  %v399_v29 = vrot.slane %v5964_v59, 3  ;;  %v400_v34 = vrot.slane %v5969_v60, 3  ;;  %v526_v35 = vrot.slane %v54_v54, 4 }
  0x3a   :  { %v6018_v32 = vsel %vm220_vm2, %v270_v20, %v271_v21  ;;  %v528_v36 = vrot.slane %v5964_v59, 4  ;;  %v529_v41 = vrot.slane %v5969_v60, 4  ;;  %v144_v27 = vrot.slane %v6004_v23, 1 }
  0x3b   :  { %5194 = vrot.lane.b32.xlu0 %v5193_v55, %s5493_s14  ;;  %v5268_v38 = vpack.i.bf16 %v6018_v32, %v6011_v25  ;;  %v398_v39 = vsel %vm349_vm1, %v395_v15, %v397_v26  ;;  %v401_v42 = vsel %vm349_vm1, %v399_v29, %v400_v34  ;;  %v527_v45 = vsel %vm478_vm3, %v524_v18, %v526_v35 }
  0x3c   :  { %5199 = vrot.lane.b32.xlu1 %v5198_v61, %s5495_s20  ;;  %v146_v37 = vrot.slane %v58_v31, 1  ;;  %v273_v48 = vrot.slane %v6004_v23, 2  ;;  %v5273_v54 = vpack.i.bf16 %v401_v42, %v398_v39  ;;  %v530_v55 = vsel %vm478_vm3, %v528_v36, %v529_v41 }
  0x3d   :  { %v145_v61 = vsel %vm91_vm0, %v142_v9, %v144_v27  ;;  %v402_v20 = vrot.slane %v6004_v23, 3  ;;  %v404_v29 = vrot.slane %v58_v31, 3  ;;  %v531_v9 = vrot.slane %v6004_v23, 4 }
  0x3e   :  { %v147_v8 = vsel %vm91_vm0, %v144_v27, %v146_v37  ;;  %v274_v17 = vsel %vm220_vm2, %v271_v21, %v273_v48  ;;  %v263_v32 = vrot.slane %v5943_v52, 2  ;;  %v533_v39 = vrot.slane %v58_v31, 4 }
  0x3f   :  { %5204 = vrot.lane.b32.xlu0 %v5203_v62, %s5492_s13  ;;  %v275_v62 = vrot.slane %v58_v31, 2  ;;  %v5283_v25 = vpack.i.bf16 %v147_v8, %v145_v61  ;;  %v403_v36 = vsel %vm349_vm1, %v400_v34, %v402_v20  ;;  %v264_v21 = vrot.slane %v5959_v56, 2  ;;  %v5482_v8 = vld [vmem:[%s8242_s0 + $0x8] sm:$0xff] }
  0x40   :  { %5209 = vrot.lane.b32.xlu1 %v5208_v0, %s5494_s19  ;;  %v5278_v0 = vpack.i.bf16 %v530_v55, %v527_v45  ;;  %v405_v27 = vsel %vm349_vm1, %v402_v20, %v404_v29  ;;  %v887_v42 = vsel %vm220_vm2, %v5329_v7, 0  ;;  %v534_v37 = vsel %vm478_vm3, %v531_v9, %v533_v39  ;;  %v5483_v20 = vld [vmem:[%s8242_s0] sm:$0xff] }
  0x41   :  { %v276_v26 = vsel %vm220_vm2, %v273_v48, %v275_v62  ;;  %v5293_v45 = vpack.i.bf16 %v405_v27, %v403_v36  ;;  %909 = vmatpush1.bf16.msra.mxu0 %v887_v42  ;;  %v136_v31 = vsel %vm91_vm0, %v134_v4, %v135_v10  ;;  %v138_v34 = vsel %vm91_vm0, %v135_v10, %v137_v6 }
  0x42   :  { %v5288_v35 = vpack.i.bf16 %v276_v26, %v274_v17  ;;  %v392_v28 = vrot.slane %v5943_v52, 3  ;;  %v393_v30 = vrot.slane %v5959_v56, 3  ;;  %v267_v49 = vsel %vm220_vm2, %v264_v21, %v266_v14 }
  0x43   :  { %5214 = vrot.lane.b32.xlu0 %v5213_v1, %s5493_s14  ;;  %v532_v1 = vsel %vm478_vm3, %v529_v41, %v531_v9  ;;  %v521_v50 = vrot.slane %v5943_v52, 4  ;;  %v5243_v6 = vpack.i.bf16 %v138_v34, %v136_v31  ;;  %vm632_vm5 = vcmask 457728  }
  0x44   :  { %5219 = vrot.lane.b32.xlu1 %v5218_v3, %s5495_s20  ;;  %v5298_v3 = vpack.i.bf16 %v534_v37, %v532_v1  ;;  %v394_v10 = vsel %vm349_vm1, %v392_v28, %v393_v30  ;;  %v396_v14 = vsel %vm349_vm1, %v393_v30, %v395_v15  ;;  %v5335_v15 = vld [vmem:[%s8244_s3 + $0x10] ss:$8 sps:$4 sm:$0xff]   ;;  %vm657_vm6 = vcmask 687104   ;;  %v5484_v28 = vld [vmem:[%s8242_s0 + $0x20] sm:$0xff] }
  0x45   :  { %v5253_v43 = vpack.i.bf16 %v396_v14, %v394_v10  ;;  %vm682_vm7 = vcmask 916480   ;;  %vm849_vm8 = vcmask 97280   ;;  %vm1597_vm9 = vcmask 1041408  }
  0x46   :  { %vm2590_vm10 = vcmask 1041409   ;;  %vm2592_vm11 = vcmask 1042434   ;;  %vm2594_vm12 = vcmask 1043459   ;;  %vm2596_vm13 = vcmask 1044484  }
  0x47   :  { %5224 = vrot.lane.b32.xlu0 %v5223_v33, %s5492_s13  ;;  %v265_v33 = vsel %vm220_vm2, %v263_v32, %v264_v21  ;;  %vm2598_vm14 = vcmask 1045509   ;;  %vm2600_vm15 = vcmask 1046534   ;;  %vm2602_vm0 = vcmask 1047559  }
  0x48   :  { %5229 = vrot.lane.b32.xlu1 %v5228_v5, %s5494_s19  ;;  %v522_v5 = vrot.slane %v5959_v56, 4  ;;  %v5248_v4 = vpack.i.bf16 %v267_v49, %v265_v33  ;;  %v5485_v33 = vld [vmem:[%s8242_s0 + $0x10] sm:$0xff]  ;;  %vm5499_vm1 = vmmov 0   ;;  %vm4693_vm2 = vcmask 80896  }
  0x4a   :  { %v523_v41 = vsel %vm478_vm3, %v521_v50, %v522_v5  ;;  %v525_v40 = vsel %vm478_vm3, %v522_v5, %v524_v18  ;;  %v5338_v18 = vld [vmem:[%s8244_s3 + $0x20] ss:$8 sps:$4 sm:$0xff]  }
  0x4b   :  { %5234 = vrot.lane.b32.xlu0 %v5233_v46, %s5493_s14  ;;  %v5258_v44 = vpack.i.bf16 %v525_v40, %v523_v41  ;;  %v5330_v46 = vld [vmem:[%s8244_s3 + $0x4] ss:$8 sps:$4 sm:$0xff]  }
  0x4c   :  { %5239 = vrot.lane.b32.xlu1 %v5238_v51, %s5495_s20  ;;  %3473 = vmatprep.subr.bf16.mxu1 %v5330_v46  ;;  %v5333_v51 = vld [vmem:[%s8244_s3 + $0x14] ss:$8 sps:$4 sm:$0xff]  }
  0x4d   :  { %3474 = vmatpush1.bf16.msra.mxu1 %v5332_v47 }
  0x4e   :  { %3475 = vmatprep.subr.bf16.mxu1 %v5333_v51 }
  0x4f   :  { %5244 = vrot.lane.b32.xlu0 %v5243_v6, %s5492_s13 }
  0x50   :  { %5249 = vrot.lane.b32.xlu1 %v5248_v4, %s5494_s19 }
  0x51   :  { %3476 = vmatpush1.bf16.msra.mxu1 %v5335_v15 }
  0x52   :  { %3477 = vmatprep.subr.bf16.mxu1 %v5336_v16 }
  0x53   :  { %5254 = vrot.lane.b32.xlu0 %v5253_v43, %s5493_s14 }
  0x54   :  { %5259 = vrot.lane.b32.xlu1 %v5258_v44, %s5495_s20 }
  0x55   :  { %3478 = vmatpush1.bf16.msra.mxu1 %v5338_v18 }
  0x57   :  { %5264 = vrot.lane.b32.xlu0 %v5263_v24, %s5492_s13 }
  0x58   :  { %5269 = vrot.lane.b32.xlu1 %v5268_v38, %s5494_s19 }
  0x5b   :  { %5274 = vrot.lane.b32.xlu0 %v5273_v54, %s5493_s14 }
  0x5c   :  { %5279 = vrot.lane.b32.xlu1 %v5278_v0, %s5495_s20 }
  0x5f   :  { %5284 = vrot.lane.b32.xlu0 %v5283_v25, %s5492_s13 }
  0x60   :  { %5289 = vrot.lane.b32.xlu1 %v5288_v35, %s5494_s19 }
  0x63   :  { %5294 = vrot.lane.b32.xlu0 %v5293_v45, %s5493_s14 }
  0x64   :  { %5299 = vrot.lane.b32.xlu1 %v5298_v3, %s5495_s20 }
  0x79   :  { %v5065_v19 = vpop.permute.xlu0 %5064 }
  0x7a   :  { %v5075_v24 = vpop.permute.xlu1 %5074  ;;  %v5067_v38 = vunpack.i.h.bf16 %v5065_v19  ;;  %v5066_v48 = vunpack.i.l.bf16 %v5065_v19 }
  0x7b   :  { %v5077_v55 = vunpack.i.h.bf16 %v5075_v24  ;;  %v5076_v61 = vunpack.i.l.bf16 %v5075_v24 }
  0x7c   :  { %v609_v17 = vsel %vm607_vm4, %v5482_v8, %v5067_v38  ;;  %v608_v25 = vsel %vm607_vm4, %v5483_v20, %v5066_v48 }
  0x7d   :  { %v5070_v54 = vpop.permute.xlu0 %5069 }
  0x7e   :  { %v5072_v62 = vunpack.i.h.bf16 %v5070_v54  ;;  %v5071_v7 = vunpack.i.l.bf16 %v5070_v54  ;;  %v5080_v0 = vpop.permute.xlu1 %5079  ;;  %v5486_v54 = vld [vmem:[%s8242_s0 + $0x30] sm:$0xff] }
  0x7f   :  { %v5082_v26 = vunpack.i.h.bf16 %v5080_v0  ;;  %v5081_v29 = vunpack.i.l.bf16 %v5080_v0 }
  0x80   :  { %v633_v9 = vsel %vm632_vm5, %v608_v25, %v5071_v7  ;;  %v634_v32 = vsel %vm632_vm5, %v609_v17, %v5072_v62 }
  0x81   :  { %v5085_v35 = vpop.permute.xlu0 %5084  ;;  %v708_v36 = vpack.c.bf16 %v5082_v26, %v5081_v29  ;;  %v658_v39 = vsel %vm657_vm6, %v633_v9, %v5076_v61  ;;  %v659_v21 = vsel %vm657_vm6, %v634_v32, %v5077_v55  ;;  %v5487_v61 = vld [vmem:[%s8242_s0 + $0x28] sm:$0xff] }
  0x82   :  { %v5087_v27 = vunpack.i.h.bf16 %v5085_v35  ;;  %v5086_v1 = vunpack.i.l.bf16 %v5085_v35  ;;  %v5090_v42 = vpop.permute.xlu1 %5089  ;;  %v683_v45 = vsel %vm682_vm7, %v658_v39, %v5081_v29  ;;  %v684_v37 = vsel %vm682_vm7, %v659_v21, %v5082_v26 }
  0x83   :  { %v5092_v3 = vunpack.i.h.bf16 %v5090_v42  ;;  %v5091_v31 = vunpack.i.l.bf16 %v5090_v42  ;;  %4718 = vmatprep.mubr.msk.bf16.mxu0 %vm849_vm8, %v708_v36  ;;  %v707_v34 = vpack.c.bf16 %v684_v37, %v683_v45 }
  0x84   :  { %v611_v30 = vsel %vm607_vm4, %v5484_v28, %v5087_v27  ;;  %v610_v49 = vsel %vm607_vm4, %v5485_v33, %v5086_v1  ;;  %v5489_v28 = vld [vmem:[%s8242_s0 + $0x40] sm:$0xff] }
  0x85   :  { %v635_v50 = vsel %vm632_vm5, %v610_v49, %v5091_v31  ;;  %v636_v5 = vsel %vm632_vm5, %v611_v30, %v5092_v3  ;;  %v5095_v6 = vpop.permute.xlu0 %5094  ;;  %925 = vmatmul.mubr.bf16.vlgmr.msra.gmra.mrb[0].mxu0 %v707_v34  ;;  %v5488_v31 = vld [vmem:[%s8242_s0 + $0x48] sm:$0xff] }
  0x86   :  { %v5097_v4 = vunpack.i.h.bf16 %v5095_v6  ;;  %v5096_v10 = vunpack.i.l.bf16 %v5095_v6  ;;  %v5100_v14 = vpop.permute.xlu1 %5099 }
  0x87   :  { %v5102_v41 = vunpack.i.h.bf16 %v5100_v14  ;;  %v5101_v40 = vunpack.i.l.bf16 %v5100_v14 }
  0x88   :  { %v660_v43 = vsel %vm657_vm6, %v635_v50, %v5096_v10  ;;  %v661_v44 = vsel %vm657_vm6, %v636_v5, %v5097_v4 }
  0x89   :  { %v710_v46 = vpack.c.bf16 %v5102_v41, %v5101_v40  ;;  %v5105_v47 = vpop.permute.xlu0 %5104  ;;  %v685_v51 = vsel %vm682_vm7, %v660_v43, %v5101_v40  ;;  %v686_v15 = vsel %vm682_vm7, %v661_v44, %v5102_v41 }
  0x8a   :  { %v5107_v16 = vunpack.i.h.bf16 %v5105_v47  ;;  %v5106_v18 = vunpack.i.l.bf16 %v5105_v47  ;;  %v5110_v19 = vpop.permute.xlu1 %5109  ;;  %v709_v24 = vpack.c.bf16 %v686_v15, %v685_v51 }
  0x8b   :  { %v5112_v38 = vunpack.i.h.bf16 %v5110_v19  ;;  %v5111_v48 = vunpack.i.l.bf16 %v5110_v19  ;;  %4719 = vmatprep.mubr.msk.bf16.mxu0 %vm849_vm8, %v710_v46 }
  0x8c   :  { %v613_v55 = vsel %vm607_vm4, %v5486_v54, %v5107_v16  ;;  %v612_v62 = vsel %vm607_vm4, %v5487_v61, %v5106_v18 }
  0x8d   :  { %v637_v7 = vsel %vm632_vm5, %v612_v62, %v5111_v48  ;;  %v638_v0 = vsel %vm632_vm5, %v613_v55, %v5112_v38  ;;  %v5115_v8 = vpop.permute.xlu0 %5114  ;;  %935 = vmatmul.mubr.bf16.gmra.mrb[4].mxu0 %v709_v24  ;;  %v5490_v48 = vld [vmem:[%s8242_s0 + $0x50] sm:$0xff] }
  0x8e   :  { %v5117_v17 = vunpack.i.h.bf16 %v5115_v8  ;;  %v5116_v20 = vunpack.i.l.bf16 %v5115_v8  ;;  %v5120_v25 = vpop.permute.xlu1 %5119 }
  0x8f   :  { %v5122_v26 = vunpack.i.h.bf16 %v5120_v25  ;;  %v5121_v29 = vunpack.i.l.bf16 %v5120_v25 }
  0x90   :  { %v662_v9 = vsel %vm657_vm6, %v637_v7, %v5116_v20  ;;  %v663_v32 = vsel %vm657_vm6, %v638_v0, %v5117_v17 }
  0x91   :  { %v712_v35 = vpack.c.bf16 %v5122_v26, %v5121_v29  ;;  %v5125_v36 = vpop.permute.xlu0 %5124  ;;  %v687_v39 = vsel %vm682_vm7, %v662_v9, %v5121_v29  ;;  %v688_v21 = vsel %vm682_vm7, %v663_v32, %v5122_v26 }
  0x92   :  { %v5127_v27 = vunpack.i.h.bf16 %v5125_v36  ;;  %v5126_v1 = vunpack.i.l.bf16 %v5125_v36  ;;  %v5130_v42 = vpop.permute.xlu1 %5129  ;;  %v711_v45 = vpack.c.bf16 %v688_v21, %v687_v39 }
  0x93   :  { %v5132_v37 = vunpack.i.h.bf16 %v5130_v42  ;;  %v5131_v3 = vunpack.i.l.bf16 %v5130_v42  ;;  %4720 = vmatprep.mubr.msk.bf16.mxu0 %vm849_vm8, %v712_v35 }
  0x94   :  { %v615_v34 = vsel %vm607_vm4, %v5488_v31, %v5127_v27  ;;  %v614_v30 = vsel %vm607_vm4, %v5489_v28, %v5126_v1 }
  0x95   :  { %v639_v33 = vsel %vm632_vm5, %v614_v30, %v5131_v3  ;;  %v640_v49 = vsel %vm632_vm5, %v615_v34, %v5132_v37  ;;  %v5135_v50 = vpop.permute.xlu0 %5134  ;;  %945 = vmatmul.mubr.bf16.gmra.mrb[8].mxu0 %v711_v45  ;;  %v5491_v45 = vld [vmem:[%s8242_s0 + $0x68] sm:$0xff] }
  0x96   :  { %v5137_v5 = vunpack.i.h.bf16 %v5135_v50  ;;  %v5136_v6 = vunpack.i.l.bf16 %v5135_v50  ;;  %v5140_v4 = vpop.permute.xlu1 %5139 }
  0x97   :  { %v5142_v10 = vunpack.i.h.bf16 %v5140_v4  ;;  %v5141_v14 = vunpack.i.l.bf16 %v5140_v4 }
  0x98   :  { %v664_v41 = vsel %vm657_vm6, %v639_v33, %v5136_v6  ;;  %v665_v40 = vsel %vm657_vm6, %v640_v49, %v5137_v5 }
  0x99   :  { %v714_v43 = vpack.c.bf16 %v5142_v10, %v5141_v14  ;;  %v5145_v44 = vpop.permute.xlu0 %5144  ;;  %v689_v46 = vsel %vm682_vm7, %v664_v41, %v5141_v14  ;;  %v690_v47 = vsel %vm682_vm7, %v665_v40, %v5142_v10 }
  0x9a   :  { %v5147_v51 = vunpack.i.h.bf16 %v5145_v44  ;;  %v5146_v15 = vunpack.i.l.bf16 %v5145_v44  ;;  %v5150_v16 = vpop.permute.xlu1 %5149  ;;  %v713_v18 = vpack.c.bf16 %v690_v47, %v689_v46 }
  0x9b   :  { %v5152_v19 = vunpack.i.h.bf16 %v5150_v16  ;;  %v5151_v24 = vunpack.i.l.bf16 %v5150_v16  ;;  %4721 = vmatprep.mubr.msk.bf16.mxu0 %vm849_vm8, %v714_v43 }
  0x9c   :  { %v617_v38 = vsel %vm607_vm4, %v5654_v22, %v5147_v51  ;;  %v616_v54 = vsel %vm607_vm4, %v5490_v48, %v5146_v15 }
  0x9d   :  { %v641_v55 = vsel %vm632_vm5, %v616_v54, %v5151_v24  ;;  %v642_v61 = vsel %vm632_vm5, %v617_v38, %v5152_v19  ;;  %v5155_v62 = vpop.permute.xlu0 %5154  ;;  %955 = vmatmul.mubr.bf16.gmra.mrb[12].mxu0 %v713_v18 }
  0x9e   :  { %v5157_v7 = vunpack.i.h.bf16 %v5155_v62  ;;  %v5156_v0 = vunpack.i.l.bf16 %v5155_v62  ;;  %v5160_v8 = vpop.permute.xlu1 %5159 }
  0x9f   :  { %v5162_v17 = vunpack.i.h.bf16 %v5160_v8  ;;  %v5161_v20 = vunpack.i.l.bf16 %v5160_v8 }
  0xa0   :  { %v666_v25 = vsel %vm657_vm6, %v641_v55, %v5156_v0  ;;  %v667_v22 = vsel %vm657_vm6, %v642_v61, %v5157_v7 }
  0xa1   :  { %v716_v26 = vpack.c.bf16 %v5162_v17, %v5161_v20  ;;  %v5165_v29 = vpop.permute.xlu0 %5164  ;;  %v691_v9 = vsel %vm682_vm7, %v666_v25, %v5161_v20  ;;  %v692_v32 = vsel %vm682_vm7, %v667_v22, %v5162_v17 }
  0xa2   :  { %v5167_v35 = vunpack.i.h.bf16 %v5165_v29  ;;  %v5166_v36 = vunpack.i.l.bf16 %v5165_v29  ;;  %v5170_v39 = vpop.permute.xlu1 %5169  ;;  %v715_v21 = vpack.c.bf16 %v692_v32, %v691_v9 }
  0xa3   :  { %v5172_v27 = vunpack.i.h.bf16 %v5170_v39  ;;  %v5171_v1 = vunpack.i.l.bf16 %v5170_v39  ;;  %4722 = vmatprep.mubr.msk.bf16.mxu0 %vm849_vm8, %v716_v26 }
  0xa4   :  { %v619_v42 = vsel %vm607_vm4, %v5718_v63, %v5167_v35  ;;  %v618_v37 = vsel %vm607_vm4, %v5491_v45, %v5166_v36 }
  0xa5   :  { %v643_v3 = vsel %vm632_vm5, %v618_v37, %v5171_v1  ;;  %v644_v31 = vsel %vm632_vm5, %v619_v42, %v5172_v27  ;;  %v5175_v34 = vpop.permute.xlu0 %5174  ;;  %965 = vmatmul.mubr.bf16.gmra.mrb[16].mxu0 %v715_v21 }
  0xa6   :  { %v5177_v28 = vunpack.i.h.bf16 %v5175_v34  ;;  %v5176_v30 = vunpack.i.l.bf16 %v5175_v34  ;;  %v5180_v33 = vpop.permute.xlu1 %5179 }
  0xa7   :  { %v5182_v49 = vunpack.i.h.bf16 %v5180_v33  ;;  %v5181_v50 = vunpack.i.l.bf16 %v5180_v33 }
  0xa8   :  { %v668_v5 = vsel %vm657_vm6, %v643_v3, %v5176_v30  ;;  %v669_v63 = vsel %vm657_vm6, %v644_v31, %v5177_v28 }
  0xa9   :  { %v718_v6 = vpack.c.bf16 %v5182_v49, %v5181_v50  ;;  %v5185_v4 = vpop.permute.xlu0 %5184  ;;  %v693_v10 = vsel %vm682_vm7, %v668_v5, %v5181_v50  ;;  %v694_v14 = vsel %vm682_vm7, %v669_v63, %v5182_v49 }
  0xaa   :  { %v5187_v41 = vunpack.i.h.bf16 %v5185_v4  ;;  %v5186_v40 = vunpack.i.l.bf16 %v5185_v4  ;;  %v5190_v43 = vpop.permute.xlu1 %5189  ;;  %v717_v44 = vpack.c.bf16 %v694_v14, %v693_v10 }
  0xab   :  { %v5192_v46 = vunpack.i.h.bf16 %v5190_v43  ;;  %v5191_v47 = vunpack.i.l.bf16 %v5190_v43  ;;  %4723 = vmatprep.mubr.msk.bf16.mxu0 %vm849_vm8, %v718_v6 }
  0xac   :  { %v621_v51 = vsel %vm607_vm4, %v5746_v12, %v5187_v41  ;;  %v620_v15 = vsel %vm607_vm4, %v5741_v11, %v5186_v40 }
  0xad   :  { %v645_v16 = vsel %vm632_vm5, %v620_v15, %v5191_v47  ;;  %v646_v18 = vsel %vm632_vm5, %v621_v51, %v5192_v46  ;;  %v5195_v19 = vpop.permute.xlu0 %5194  ;;  %975 = vmatmul.mubr.bf16.gmra.mrb[20].mxu0 %v717_v44 }
  0xae   :  { %v5197_v24 = vunpack.i.h.bf16 %v5195_v19  ;;  %v5196_v38 = vunpack.i.l.bf16 %v5195_v19  ;;  %v5200_v48 = vpop.permute.xlu1 %5199 }
  0xaf   :  { %v5202_v54 = vunpack.i.h.bf16 %v5200_v48  ;;  %v5201_v55 = vunpack.i.l.bf16 %v5200_v48 }
  0xb0   :  { %v670_v61 = vsel %vm657_vm6, %v645_v16, %v5196_v38  ;;  %v671_v62 = vsel %vm657_vm6, %v646_v18, %v5197_v24 }
  0xb1   :  { %v720_v7 = vpack.c.bf16 %v5202_v54, %v5201_v55  ;;  %v5205_v12 = vpop.permute.xlu0 %5204  ;;  %v695_v0 = vsel %vm682_vm7, %v670_v61, %v5201_v55  ;;  %v696_v11 = vsel %vm682_vm7, %v671_v62, %v5202_v54 }
  0xb2   :  { %v5207_v8 = vunpack.i.h.bf16 %v5205_v12  ;;  %v5206_v17 = vunpack.i.l.bf16 %v5205_v12  ;;  %v5210_v20 = vpop.permute.xlu1 %5209  ;;  %v719_v25 = vpack.c.bf16 %v696_v11, %v695_v0 }
  0xb3   :  { %v5212_v22 = vunpack.i.h.bf16 %v5210_v20  ;;  %v5211_v26 = vunpack.i.l.bf16 %v5210_v20  ;;  %4724 = vmatprep.mubr.msk.bf16.mxu0 %vm849_vm8, %v720_v7 }
  0xb4   :  { %v623_v29 = vsel %vm607_vm4, %v5829_v57, %v5207_v8  ;;  %v622_v9 = vsel %vm607_vm4, %v5751_v13, %v5206_v17 }
  0xb5   :  { %v647_v32 = vsel %vm632_vm5, %v622_v9, %v5211_v26  ;;  %v648_v35 = vsel %vm632_vm5, %v623_v29, %v5212_v22  ;;  %v5215_v36 = vpop.permute.xlu0 %5214  ;;  %985 = vmatmul.mubr.bf16.gmra.mrb[24].mxu0 %v719_v25 }
  0xb6   :  { %v5217_v39 = vunpack.i.h.bf16 %v5215_v36  ;;  %v5216_v21 = vunpack.i.l.bf16 %v5215_v36  ;;  %v5220_v27 = vpop.permute.xlu1 %5219 }
  0xb7   :  { %v5222_v1 = vunpack.i.h.bf16 %v5220_v27  ;;  %v5221_v42 = vunpack.i.l.bf16 %v5220_v27 }
  0xb8   :  { %v672_v45 = vsel %vm657_vm6, %v647_v32, %v5216_v21  ;;  %v673_v37 = vsel %vm657_vm6, %v648_v35, %v5217_v39 }
  0xb9   :  { %v722_v3 = vpack.c.bf16 %v5222_v1, %v5221_v42  ;;  %v5225_v57 = vpop.permute.xlu0 %5224  ;;  %v697_v31 = vsel %vm682_vm7, %v672_v45, %v5221_v42  ;;  %v698_v13 = vsel %vm682_vm7, %v673_v37, %v5222_v1 }
  0xba   :  { %v5227_v34 = vunpack.i.h.bf16 %v5225_v57  ;;  %v5226_v28 = vunpack.i.l.bf16 %v5225_v57  ;;  %v5230_v30 = vpop.permute.xlu1 %5229  ;;  %v721_v33 = vpack.c.bf16 %v698_v13, %v697_v31 }
  0xbb   :  { %v5232_v49 = vunpack.i.h.bf16 %v5230_v30  ;;  %v5231_v50 = vunpack.i.l.bf16 %v5230_v30  ;;  %4725 = vmatprep.mubr.msk.bf16.mxu0 %vm849_vm8, %v722_v3 }
  0xbc   :  { %v625_v5 = vsel %vm607_vm4, %v5848_v2, %v5227_v34  ;;  %v624_v63 = vsel %vm607_vm4, %v5834_v58, %v5226_v28 }
  0xbd   :  { %v649_v6 = vsel %vm632_vm5, %v624_v63, %v5231_v50  ;;  %v650_v4 = vsel %vm632_vm5, %v625_v5, %v5232_v49  ;;  %v5235_v10 = vpop.permute.xlu0 %5234  ;;  %995 = vmatmul.mubr.bf16.gmra.mrb[28].mxu0 %v721_v33 }
  0xbe   :  { %v5237_v14 = vunpack.i.h.bf16 %v5235_v10  ;;  %v5236_v41 = vunpack.i.l.bf16 %v5235_v10  ;;  %v5240_v40 = vpop.permute.xlu1 %5239 }
  0xbf   :  { %v5242_v43 = vunpack.i.h.bf16 %v5240_v40  ;;  %v5241_v44 = vunpack.i.l.bf16 %v5240_v40 }
  0xc0   :  { %v674_v46 = vsel %vm657_vm6, %v649_v6, %v5236_v41  ;;  %v675_v47 = vsel %vm657_vm6, %v650_v4, %v5237_v14 }
  0xc1   :  { %v724_v51 = vpack.c.bf16 %v5242_v43, %v5241_v44  ;;  %v5245_v2 = vpop.permute.xlu0 %5244  ;;  %v699_v15 = vsel %vm682_vm7, %v674_v46, %v5241_v44  ;;  %v700_v58 = vsel %vm682_vm7, %v675_v47, %v5242_v43 }
  0xc2   :  { %v5247_v16 = vunpack.i.h.bf16 %v5245_v2  ;;  %v5246_v18 = vunpack.i.l.bf16 %v5245_v2  ;;  %v5250_v19 = vpop.permute.xlu1 %5249  ;;  %v723_v24 = vpack.c.bf16 %v700_v58, %v699_v15 }
  0xc3   :  { %v5252_v38 = vunpack.i.h.bf16 %v5250_v19  ;;  %v5251_v48 = vunpack.i.l.bf16 %v5250_v19  ;;  %4726 = vmatprep.mubr.msk.bf16.mxu0 %vm849_vm8, %v724_v51  ;;  %v5339_v51 = vld [vmem:[%s8244_s3 + $0x34] ss:$8 sps:$4 sm:$0xff]  }
  0xc4   :  { %v627_v54 = vsel %vm607_vm4, %v5959_v56, %v5247_v16  ;;  %v626_v55 = vsel %vm607_vm4, %v5943_v52, %v5246_v18  ;;  %3479 = vmatprep.subr.bf16.mxu1 %v5339_v51 }
  0xc5   :  { %v651_v61 = vsel %vm632_vm5, %v626_v55, %v5251_v48  ;;  %v652_v62 = vsel %vm632_vm5, %v627_v54, %v5252_v38  ;;  %v5255_v7 = vpop.permute.xlu0 %5254  ;;  %1005 = vmatmul.mubr.bf16.gmra.mrb[32].mxu0 %v723_v24  ;;  %v5342_v38 = vld [vmem:[%s8244_s3 + $0x44] ss:$8 sps:$4 sm:$0xff]   ;;  %v5344_v48 = vld [vmem:[%s8244_s3 + $0x40] ss:$8 sps:$4 sm:$0xff]   ;;  %v5345_v54 = vld [vmem:[%s8244_s3 + $0x54] ss:$8 sps:$4 sm:$0xff]  }
  0xc6   :  { %v5257_v12 = vunpack.i.h.bf16 %v5255_v7  ;;  %v5256_v0 = vunpack.i.l.bf16 %v5255_v7  ;;  %v5260_v11 = vpop.permute.xlu1 %5259  ;;  %v5347_v55 = vld [vmem:[%s8244_s3 + $0x50] ss:$8 sps:$4 sm:$0xff]   ;;  %v5351_v7 = vld [vmem:[%s8244_s3 + $0x74] ss:$8 sps:$4 sm:$0xff]  }
  0xc7   :  { %v5262_v8 = vunpack.i.h.bf16 %v5260_v11  ;;  %v5261_v17 = vunpack.i.l.bf16 %v5260_v11  ;;  %v5356_v11 = vld [vmem:[%s8244_s3 + $0x80] ss:$8 sps:$4 sm:$0xff]  }
  0xc8   :  { %v676_v20 = vsel %vm657_vm6, %v651_v61, %v5256_v0  ;;  %v677_v25 = vsel %vm657_vm6, %v652_v62, %v5257_v12  ;;  %v5348_v61 = vld [vmem:[%s8244_s3 + $0x64] ss:$8 sps:$4 sm:$0xff]   ;;  %v5350_v62 = vld [vmem:[%s8244_s3 + $0x60] ss:$8 sps:$4 sm:$0xff]   ;;  %v5353_v12 = vld [vmem:[%s8244_s3 + $0x70] ss:$8 sps:$4 sm:$0xff]  }
  0xc9   :  { %v726_v22 = vpack.c.bf16 %v5262_v8, %v5261_v17  ;;  %v5265_v56 = vpop.permute.xlu0 %5264  ;;  %v701_v26 = vsel %vm682_vm7, %v676_v20, %v5261_v17  ;;  %v702_v52 = vsel %vm682_vm7, %v677_v25, %v5262_v8  ;;  %v5354_v0 = vld [vmem:[%s8244_s3 + $0x84] ss:$8 sps:$4 sm:$0xff]   ;;  %v5357_v8 = vld [vmem:[%s8244_s3 + $0x94] ss:$8 sps:$4 sm:$0xff]   ;;  %v5359_v17 = vld [vmem:[%s8244_s3 + $0x90] ss:$8 sps:$4 sm:$0xff]  }
  0xca   :  { %v5267_v29 = vunpack.i.h.bf16 %v5265_v56  ;;  %v5266_v9 = vunpack.i.l.bf16 %v5265_v56  ;;  %v5270_v32 = vpop.permute.xlu1 %5269  ;;  %v725_v35 = vpack.c.bf16 %v702_v52, %v701_v26  ;;  %v5360_v20 = vld [vmem:[%s8244_s3 + $0xa4] ss:$8 sps:$4 sm:$0xff]   ;;  %v5362_v25 = vld [vmem:[%s8244_s3 + $0xa0] ss:$8 sps:$4 sm:$0xff]   ;;  %v5365_v56 = vld [vmem:[%s8244_s3 + $0xb0] ss:$8 sps:$4 sm:$0xff]  }
  0xcb   :  { %v5272_v36 = vunpack.i.h.bf16 %v5270_v32  ;;  %v5271_v39 = vunpack.i.l.bf16 %v5270_v32  ;;  %4727 = vmatprep.mubr.msk.bf16.mxu0 %vm849_vm8, %v726_v22  ;;  %v5363_v22 = vld [vmem:[%s8244_s3 + $0xb4] ss:$8 sps:$4 sm:$0xff]   ;;  %v5366_v26 = vld [vmem:[%s8244_s3 + $0xc4] ss:$8 sps:$4 sm:$0xff]   ;;  %v5368_v52 = vld [vmem:[%s8244_s3 + $0xc0] ss:$8 sps:$4 sm:$0xff]   ;;  %v751_v32 = vlaneseq }
  0xcc   :  { %v629_v21 = vsel %vm607_vm4, %v5964_v59, %v5267_v29  ;;  %v628_v27 = vsel %vm607_vm4, %v5948_v53, %v5266_v9  ;;  %v5369_v29 = vld [vmem:[%s8244_s3 + $0xd4] ss:$8 sps:$4 sm:$0xff]   ;;  %v5371_v9 = vld [vmem:[%s8244_s3 + $0xd0] ss:$8 sps:$4 sm:$0xff]  }
  0xcd   :  { %v653_v1 = vsel %vm632_vm5, %v628_v27, %v5271_v39  ;;  %v654_v42 = vsel %vm632_vm5, %v629_v21, %v5272_v36  ;;  %v5275_v45 = vpop.permute.xlu0 %5274  ;;  %1015 = vmatmul.mubr.bf16.gmra.mrb[36].mxu0 %v725_v35  ;;  %v6348_v35 = vshrl.u32 %v751_v32, 7  ;;  %v5372_v36 = vld [vmem:[%s8244_s3 + $0xe4] ss:$8 sps:$4 sm:$0xff]   ;;  %v5374_v21 = vld [vmem:[%s8244_s3 + $0xe0] ss:$8 sps:$4 sm:$0xff]  }
  0xce   :  { %v5277_v37 = vunpack.i.h.bf16 %v5275_v45  ;;  %v5276_v3 = vunpack.i.l.bf16 %v5275_v45  ;;  %v5280_v57 = vpop.permute.xlu1 %5279  ;;  %v749_v27 = vld [vmem:[%s8245_s2] sm:$0x3] }
  0xcf   :  { %v5282_v31 = vunpack.i.h.bf16 %v5280_v57  ;;  %v5281_v13 = vunpack.i.l.bf16 %v5280_v57  ;;  %8343 = vst [vmem:[#allocation2_spill] sm:$0xff] %v6348_v35  ;;  %v8251_v39 = vsub.s32 0, %v6348_v35 }
  0xd0   :  { %v678_v34 = vsel %vm657_vm6, %v653_v1, %v5276_v3  ;;  %v679_v28 = vsel %vm657_vm6, %v654_v42, %v5277_v37  ;;  %v8250_v1 = vsub.s32 1, %v6348_v35  ;;  %v5496_v42 = vmov 1983009808   ;;  %v5375_v37 = vld [vmem:[%s8244_s3 + $0xf4] ss:$8 sps:$4 sm:$0xff]  }
  0xd1   :  { %v728_v30 = vpack.c.bf16 %v5282_v31, %v5281_v13  ;;  %v5285_v59 = vpop.permute.xlu0 %5284  ;;  %v703_v33 = vsel %vm682_vm7, %v678_v34, %v5281_v13  ;;  %v704_v53 = vsel %vm682_vm7, %v679_v28, %v5282_v31  ;;  %v1095_v45 = vunpack.c.l.s4 %v5496_v42 }
  0xd2   :  { %v5287_v49 = vunpack.i.h.bf16 %v5285_v59  ;;  %v5286_v50 = vunpack.i.l.bf16 %v5285_v59  ;;  %v5290_v5 = vpop.permute.xlu1 %5289  ;;  %v727_v63 = vpack.c.bf16 %v704_v53, %v703_v33  ;;  %v6366_v3 = vrot.slane %v749_v27, %v8251_v39 }
  0xd3   :  { %v5292_v6 = vunpack.i.h.bf16 %v5290_v5  ;;  %v5291_v4 = vunpack.i.l.bf16 %v5290_v5  ;;  %4728 = vmatprep.mubr.msk.bf16.mxu0 %vm849_vm8, %v728_v30  ;;  %v6370_v57 = vrot.slane %v749_v27, %v8250_v1  ;;  %v1096_v31 = vunpack.c.0.s8 %v1095_v45  ;;  %v5377_v30 = vld [vmem:[%s8244_s3 + $0xf0] ss:$8 sps:$4 sm:$0xff]  }
  0xd4   :  { %v631_v10 = vsel %vm607_vm4, %v6004_v23, %v5287_v49  ;;  %v630_v14 = vsel %vm607_vm4, %v5969_v60, %v5286_v50  ;;  %v5341_v23 = vld [vmem:[%s8244_s3 + $0x30] ss:$8 sps:$4 sm:$0xff]  }
  0xd5   :  { %v655_v41 = vsel %vm632_vm5, %v630_v14, %v5291_v4  ;;  %v656_v40 = vsel %vm632_vm5, %v631_v10, %v5292_v6  ;;  %v5295_v43 = vpop.permute.xlu0 %5294  ;;  %1025 = vmatmul.mubr.bf16.gmra.mrb[40].mxu0 %v727_v63  ;;  %3480 = vmatpush1.bf16.msra.mxu1 %v5341_v23  ;;  %v6378_v33 = vsub.s32 %v1096_v31, %v6348_v35 }
  0xd6   :  { %v5297_v44 = vunpack.i.h.bf16 %v5295_v43  ;;  %v5296_v46 = vunpack.i.l.bf16 %v5295_v43  ;;  %v5300_v47 = vpop.permute.xlu1 %5299  ;;  %3481 = vmatprep.subr.bf16.mxu1 %v5342_v38 }
  0xd7   :  { %v5302_v2 = vunpack.i.h.bf16 %v5300_v47  ;;  %v5301_v15 = vunpack.i.l.bf16 %v5300_v47  ;;  %8344 = vst [vmem:[#allocation3_spill] sm:$0xff] %v6378_v33 }
  0xd8   :  { %v680_v60 = vsel %vm657_vm6, %v655_v41, %v5296_v46  ;;  %v681_v58 = vsel %vm657_vm6, %v656_v40, %v5297_v44 }
  0xd9   :  { %v730_v16 = vpack.c.bf16 %v5302_v2, %v5301_v15  ;;  %v705_v18 = vsel %vm682_vm7, %v680_v60, %v5301_v15  ;;  %v706_v19 = vsel %vm682_vm7, %v681_v58, %v5302_v2  ;;  %3482 = vmatpush1.bf16.msra.mxu1 %v5344_v48 }
  0xda   :  { %v729_v24 = vpack.c.bf16 %v706_v19, %v705_v18  ;;  %3483 = vmatprep.subr.bf16.mxu1 %v5345_v54 }
  0xdb   :  { %4729 = vmatprep.mubr.msk.bf16.mxu0 %vm849_vm8, %v730_v16 }
  0xdd   :  { %1035 = vmatmul.mubr.bf16.gmra.mrb[44].mxu0 %v729_v24  ;;  %3484 = vmatpush1.bf16.msra.mxu1 %v5347_v55 }
  0xde   :  { %3485 = vmatprep.subr.bf16.mxu1 %v5348_v61 }
  0xe1   :  { %3486 = vmatpush1.bf16.msra.mxu1 %v5350_v62 }
  0xe2   :  { %3487 = vmatprep.subr.bf16.mxu1 %v5351_v7 }
  0xe5   :  { %3488 = vmatpush1.bf16.msra.mxu1 %v5353_v12 }
  0xe6   :  { %3489 = vmatprep.subr.bf16.mxu1 %v5354_v0 }
  0xe9   :  { %3490 = vmatpush1.bf16.msra.mxu1 %v5356_v11 }
  0xea   :  { %3491 = vmatprep.subr.bf16.mxu1 %v5357_v8 }
  0xed   :  { %3492 = vmatpush1.bf16.msra.mxu1 %v5359_v17 }
  0xee   :  { %3493 = vmatprep.subr.bf16.mxu1 %v5360_v20 }
  0xf1   :  { %3494 = vmatpush1.bf16.msra.mxu1 %v5362_v25 }
  0xf2   :  { %3495 = vmatprep.subr.bf16.mxu1 %v5363_v22 }
  0xf5   :  { %3496 = vmatpush1.bf16.msra.mxu1 %v5365_v56 }
  0xf6   :  { %3497 = vmatprep.subr.bf16.mxu1 %v5366_v26 }
  0xf9   :  { %3498 = vmatpush1.bf16.msra.mxu1 %v5368_v52 }
  0xfa   :  { %3499 = vmatprep.subr.bf16.mxu1 %v5369_v29 }
  0xfd   :  { %3500 = vmatpush1.bf16.msra.mxu1 %v5371_v9 }
  0xfe   :  { %3501 = vmatprep.subr.bf16.mxu1 %v5372_v36 }
 0x101   :  { %3502 = vmatpush1.bf16.msra.mxu1 %v5374_v21 }
 0x102   :  { %3503 = vmatprep.subr.bf16.mxu1 %v5375_v37 }
 0x105   :  { %3504 = vmatpush1.bf16.msra.mxu1 %v5377_v30 }
 0x158   :  { %v926_v13 = vpop.f32.mrb[0].mxu0 }
 0x159   :  { %v927_v34 = vadd.f32 %v926_v13, %v6366_v3  ;;  %v928_v28 = vpop.f32.mrb[1].mxu0 }
 0x15a   :  { %v929_v59 = vadd.f32 %v928_v28, %v6370_v57  ;;  %v930_v53 = vpop.f32.mrb[2].mxu0 }
 0x15b   :  { %v931_v49 = vadd.f32 %v930_v53, %v6366_v3  ;;  %v932_v50 = vpop.f32.mrb[3].mxu0 }
 0x15c   :  { %v1045_v5 = vmax.f32 %v927_v34, %v929_v59  ;;  %v933_v63 = vadd.f32 %v932_v50, %v6370_v57 }
 0x15e   :  { %v1093_v6 = vcombine.high %v1045_v5, %v1045_v5  ;;  %v1100_v4 = vrot.slane %v1045_v5, %v6378_v33  ;;  %v1046_v10 = vmax.f32 %v931_v49, %v933_v63 }
 0x160   :  { %v1107_v14 = vrot.slane %v1093_v6, %v6378_v33  ;;  %v1108_v41 = vcombine.high %v1100_v4, %v1100_v4  ;;  %v1598_v40 = vsel %vm1597_vm9, %v1100_v4, -inf  ;;  %v1110_v43 = vcombine.high %v1046_v10, %v1046_v10  ;;  %v936_v44 = vpop.f32.mrb[4].mxu0 }
 0x161   :  { %v1599_v46 = vrot.slane %v1598_v40, 4  ;;  %v1117_v47 = vrot.slane %v1046_v10, %v6378_v33  ;;  %v6387_v51 = vadd.f32 %v936_v44, %v6366_v3  ;;  %v6389_v2 = vpop.f32.mrb[5].mxu0 }
 0x162   :  { %v1109_v15 = vcombine.high %v1107_v14, %v1107_v14  ;;  %v1605_v23 = vsel %vm1597_vm9, %v1108_v41, -inf  ;;  %v1612_v60 = vsel %vm1597_vm9, %v1107_v14, -inf  ;;  %v1124_v58 = vrot.slane %v1110_v43, %v6378_v33  ;;  %v6394_v16 = vpop.f32.mrb[6].mxu0 }
 0x163   :  { %v1600_v18 = vmax.f32 %v1598_v40, %v1599_v46  ;;  %v1606_v19 = vrot.slane %v1605_v23, 4  ;;  %v1613_v24 = vrot.slane %v1612_v60, 4  ;;  %v1125_v38 = vcombine.high %v1117_v47, %v1117_v47  ;;  %v6396_v48 = vpop.f32.mrb[7].mxu0 }
 0x164   :  { %v1619_v54 = vsel %vm1597_vm9, %v1109_v15, -inf  ;;  %v1126_v55 = vcombine.high %v1124_v58, %v1124_v58  ;;  %v1626_v61 = vsel %vm1597_vm9, %v1117_v47, -inf  ;;  %v1640_v62 = vsel %vm1597_vm9, %v1124_v58, -inf }
 0x165   :  { %v1601_v7 = vrot.slane %v1600_v18, 2  ;;  %v1607_v12 = vmax.f32 %v1605_v23, %v1606_v19  ;;  %v1614_v0 = vmax.f32 %v1612_v60, %v1613_v24  ;;  %v1620_v11 = vrot.slane %v1619_v54, 4 }
 0x166   :  { %v1627_v8 = vrot.slane %v1626_v61, 4  ;;  %v1633_v17 = vsel %vm1597_vm9, %v1125_v38, -inf  ;;  %v1641_v20 = vrot.slane %v1640_v62, 4  ;;  %v1647_v25 = vsel %vm1597_vm9, %v1126_v55, -inf }
 0x167   :  { %v1602_v22 = vmax.f32 %v1600_v18, %v1601_v7  ;;  %v1608_v56 = vrot.slane %v1607_v12, 2  ;;  %v1615_v26 = vrot.slane %v1614_v0, 2  ;;  %v1621_v52 = vmax.f32 %v1619_v54, %v1620_v11 }
 0x168   :  { %v1628_v29 = vmax.f32 %v1626_v61, %v1627_v8  ;;  %v1634_v9 = vrot.slane %v1633_v17, 4  ;;  %v1642_v32 = vmax.f32 %v1640_v62, %v1641_v20  ;;  %v1648_v36 = vrot.slane %v1647_v25, 4  ;;  %v6403_v21 = vpop.f32.mrb[8].mxu0 }
 0x169   :  { %v1603_v27 = vrot.slane %v1602_v22, 1  ;;  %v1609_v42 = vmax.f32 %v1607_v12, %v1608_v56  ;;  %v1616_v45 = vmax.f32 %v1614_v0, %v1615_v26  ;;  %v1622_v37 = vrot.slane %v1621_v52, 2  ;;  %v6405_v31 = vpop.f32.mrb[9].mxu0 }
 0x16a   :  { %v1629_v13 = vrot.slane %v1628_v29, 2  ;;  %v1635_v34 = vmax.f32 %v1633_v17, %v1634_v9  ;;  %v1643_v28 = vrot.slane %v1642_v32, 2  ;;  %v1649_v30 = vmax.f32 %v1647_v25, %v1648_v36  ;;  %v950_v59 = vpop.f32.mrb[10].mxu0 }
 0x16b   :  { %v1604_v53 = vmax.f32 %v1602_v22, %v1603_v27  ;;  %v1610_v49 = vrot.slane %v1609_v42, 1  ;;  %v1617_v50 = vrot.slane %v1616_v45, 1  ;;  %v1623_v5 = vmax.f32 %v1621_v52, %v1622_v37  ;;  %v952_v63 = vpop.f32.mrb[11].mxu0 }
 0x16c   :  { %v1630_v6 = vmax.f32 %v1628_v29, %v1629_v13  ;;  %v1636_v4 = vrot.slane %v1635_v34, 2  ;;  %v1644_v10 = vmax.f32 %v1642_v32, %v1643_v28  ;;  %v1650_v14 = vrot.slane %v1649_v30, 2 }
 0x16d   :  { %v1611_v41 = vmax.f32 %v1609_v42, %v1610_v49  ;;  %v1618_v40 = vmax.f32 %v1616_v45, %v1617_v50  ;;  %v1624_v43 = vrot.slane %v1623_v5, 1  ;;  %v2270_v44 = vmax.f32 %v1604_v53, 0.0 }
 0x16e   :  { %v1631_v46 = vrot.slane %v1630_v6, 1  ;;  %v1637_v47 = vmax.f32 %v1635_v34, %v1636_v4  ;;  %v1645_v15 = vrot.slane %v1644_v10, 1  ;;  %v1651_v23 = vmax.f32 %v1649_v30, %v1650_v14 }
 0x16f   :  { %v1625_v60 = vmax.f32 %v1623_v5, %v1624_v43  ;;  %v2271_v58 = vmax.f32 %v1611_v41, 0.0  ;;  %v2272_v18 = vmax.f32 %v1618_v40, 0.0  ;;  %v2366_v19 = vpack.c.bf16 %v2270_v44, %v2270_v44 }
 0x170   :  { %v1632_v24 = vmax.f32 %v1630_v6, %v1631_v46  ;;  %v1638_v38 = vrot.slane %v1637_v47, 1  ;;  %v1646_v54 = vmax.f32 %v1644_v10, %v1645_v15  ;;  %v1652_v55 = vrot.slane %v1651_v23, 1  ;;  %v6407_v61 = vpop.f32.mrb[12].mxu0 }
 0x171   :  { %v2273_v62 = vmax.f32 %v1625_v60, 0.0  ;;  %v6409_v7 = vpack.c.bf16 %v2271_v58, %v2271_v58  ;;  %v2368_v12 = vpack.c.bf16 %v2272_v18, %v2272_v18  ;;  %v2526_v0 = vunpack.c.l.b16 %v2366_v19  ;;  %v6411_v11 = vpop.f32.mrb[13].mxu0 }
 0x172   :  { %v1639_v8 = vmax.f32 %v1637_v47, %v1638_v38  ;;  %v6413_v17 = vmax.f32 %v1651_v23, %v1652_v55  ;;  %v2274_v20 = vmax.f32 %v1632_v24, 0.0  ;;  %v2276_v25 = vmax.f32 %v1646_v54, 0.0  ;;  %v6415_v22 = vpop.f32.mrb[14].mxu0 }
 0x173   :  { %v2369_v56 = vpack.c.bf16 %v2273_v62, %v2273_v62  ;;  %v8252_v26 = vunpack.c.l.b16 %v6409_v7  ;;  %v6418_v52 = vunpack.c.l.b16 %v2368_v12  ;;  %v939_v29 = vadd.f32 %v6389_v2, %v6370_v57  ;;  %v6422_v9 = vpop.f32.mrb[15].mxu0 }
 0x174   :  { %v2275_v32 = vmax.f32 %v1639_v8, 0.0  ;;  %v2370_v27 = vpack.c.bf16 %v2274_v20, %v2274_v20  ;;  %v2372_v42 = vpack.c.bf16 %v2276_v25, %v2276_v25  ;;  %v941_v34 = vadd.f32 %v6394_v16, %v6366_v3 }
 0x175   :  { %v6425_v45 = vunpack.c.l.b16 %v2369_v56  ;;  %v6430_v37 = vsel %vm2590_vm10, %v8252_v26, %v2526_v0  ;;  %v1047_v13 = vmax.f32 %v6387_v51, %v939_v29  ;;  %v943_v53 = vadd.f32 %v6396_v48, %v6370_v57 }
 0x176   :  { %v2371_v2 = vpack.c.bf16 %v2275_v32, %v2275_v32  ;;  %v6435_v28 = vunpack.c.l.b16 %v2370_v27  ;;  %v6437_v30 = vunpack.c.l.b16 %v2372_v42  ;;  %v947_v51 = vadd.f32 %v6403_v21, %v6366_v3 }
 0x177   :  { %8345 = vst [vmem:[#allocation4_spill] sm:$0xff] %v6425_v45  ;;  %v6444_v49 = vsel %vm2590_vm10, %v6425_v45, %v6418_v52  ;;  %v1127_v50 = vcombine.high %v1047_v13, %v1047_v13  ;;  %v1134_v5 = vrot.slane %v1047_v13, %v6378_v33  ;;  %v1048_v6 = vmax.f32 %v941_v34, %v943_v53 }
 0x178   :  { %8346 = vst [vmem:[#allocation5_spill] sm:$0xff] %v6435_v28  ;;  %8347 = vst [vmem:[#allocation6_spill] sm:$0xff] %v6437_v30  ;;  %v6449_v16 = vunpack.c.l.b16 %v2371_v2  ;;  %v949_v4 = vadd.f32 %v6405_v31, %v6370_v57  ;;  %v951_v10 = vadd.f32 %v950_v59, %v6366_v3  ;;  %v6454_v48 = vpop.f32.mrb[16].mxu0  ;;  %v953_v43 = vadd.f32 %v952_v63, %v6370_v57 }
 0x179   :  { %8348 = vst [vmem:[#allocation7_spill] sm:$0xff] %v6444_v49  ;;  %v1141_v14 = vrot.slane %v1127_v50, %v6378_v33  ;;  %v1142_v41 = vcombine.high %v1134_v5, %v1134_v5  ;;  %v1654_v40 = vsel %vm1597_vm9, %v1134_v5, -inf  ;;  %v6459_v44 = vpop.f32.mrb[17].mxu0  ;;  %v1144_v46 = vcombine.high %v1048_v6, %v1048_v6 }
 0x17a   :  { %8349 = vst [vmem:[#allocation8_spill] sm:$0xff] %v6449_v16  ;;  %v1655_v21 = vrot.slane %v1654_v40, 4  ;;  %v1151_v47 = vrot.slane %v1048_v6, %v6378_v33  ;;  %v1049_v15 = vmax.f32 %v947_v51, %v949_v4  ;;  %v6462_v23 = vpop.f32.mrb[18].mxu0  ;;  %v6466_v58 = vmax.f32 %v951_v10, %v953_v43 }
 0x17b   :  { %v1143_v31 = vcombine.high %v1141_v14, %v1141_v14  ;;  %v1661_v59 = vsel %vm1597_vm9, %v1142_v41, -inf  ;;  %v1668_v60 = vsel %vm1597_vm9, %v1141_v14, -inf  ;;  %v6468_v18 = vpop.f32.mrb[19].mxu0  ;;  %v1158_v38 = vrot.slane %v1144_v46, %v6378_v33 }
 0x17c   :  { %v1656_v19 = vmax.f32 %v1654_v40, %v1655_v21  ;;  %v1662_v63 = vrot.slane %v1661_v59, 4  ;;  %v1669_v24 = vrot.slane %v1668_v60, 4  ;;  %v1159_v55 = vcombine.high %v1151_v47, %v1151_v47 }
 0x17d   :  { %v1675_v54 = vsel %vm1597_vm9, %v1143_v31, -inf  ;;  %v1682_v62 = vsel %vm1597_vm9, %v1151_v47, -inf  ;;  %v1161_v12 = vcombine.high %v1049_v15, %v1049_v15  ;;  %v1160_v56 = vcombine.high %v1158_v38, %v1158_v38 }
 0x17e   :  { %v1657_v0 = vrot.slane %v1656_v19, 2  ;;  %v1663_v8 = vmax.f32 %v1661_v59, %v1662_v63  ;;  %v1670_v20 = vmax.f32 %v1668_v60, %v1669_v24  ;;  %v1676_v25 = vrot.slane %v1675_v54, 4 }
 0x17f   :  { %v1683_v29 = vrot.slane %v1682_v62, 4  ;;  %v1689_v32 = vsel %vm1597_vm9, %v1159_v55, -inf  ;;  %v1696_v27 = vsel %vm1597_vm9, %v1158_v38, -inf  ;;  %v1703_v6 = vsel %vm1597_vm9, %v1160_v56, -inf }
 0x180   :  { %v6475_v42 = vmax.f32 %v1656_v19, %v1657_v0  ;;  %v1664_v13 = vrot.slane %v1663_v8, 2  ;;  %v1671_v34 = vrot.slane %v1670_v20, 2  ;;  %v1677_v2 = vmax.f32 %v1675_v54, %v1676_v25  ;;  %v6477_v53 = vpop.f32.mrb[20].mxu0 }
 0x181   :  { %v1684_v50 = vmax.f32 %v1682_v62, %v1683_v29  ;;  %v1690_v5 = vrot.slane %v1689_v32, 4  ;;  %v1697_v51 = vrot.slane %v1696_v27, 4  ;;  %v6480_v4 = vpop.f32.mrb[21].mxu0  ;;  %v1704_v31 = vrot.slane %v1703_v6, 4 }
 0x182   :  { %v6483_v14 = vmax.f32 %v1663_v8, %v1664_v13  ;;  %v6485_v41 = vmax.f32 %v1670_v20, %v1671_v34  ;;  %v1678_v40 = vrot.slane %v1677_v2, 2  ;;  %v6487_v43 = vpop.f32.mrb[22].mxu0  ;;  %v1168_v63 = vrot.slane %v1049_v15, %v6378_v33 }
 0x183   :  { %v1685_v21 = vrot.slane %v1684_v50, 2  ;;  %v1691_v46 = vmax.f32 %v1689_v32, %v1690_v5  ;;  %v1698_v47 = vmax.f32 %v1696_v27, %v1697_v51  ;;  %v6489_v59 = vpop.f32.mrb[23].mxu0  ;;  %v1175_v24 = vrot.slane %v1161_v12, %v6378_v33 }
 0x184   :  { %8350 = vst [vmem:[#allocation9_spill] sm:$0xff] %v6483_v14  ;;  %8351 = vst [vmem:[#allocation10_spill] sm:$0xff] %v6485_v41  ;;  %v1679_v19 = vmax.f32 %v1677_v2, %v1678_v40  ;;  %v1705_v62 = vmax.f32 %v1703_v6, %v1704_v31  ;;  %v1176_v8 = vcombine.high %v1168_v63, %v1168_v63  ;;  %v1710_v25 = vsel %vm1597_vm9, %v1168_v63, -inf }
 0x185   :  { %v1686_v38 = vmax.f32 %v1684_v50, %v1685_v21  ;;  %v1692_v54 = vrot.slane %v1691_v46, 2  ;;  %v1699_v55 = vrot.slane %v1698_v47, 2  ;;  %v1177_v20 = vcombine.high %v1175_v24, %v1175_v24 }
 0x186   :  { %v1680_v0 = vrot.slane %v1679_v19, 1  ;;  %v1706_v27 = vrot.slane %v1705_v62, 2  ;;  %v1711_v34 = vrot.slane %v1710_v25, 4  ;;  %v1717_v2 = vsel %vm1597_vm9, %v1176_v8, -inf }
 0x187   :  { %v1687_v56 = vrot.slane %v1686_v38, 1  ;;  %v1693_v29 = vmax.f32 %v1691_v46, %v1692_v54  ;;  %v1700_v32 = vmax.f32 %v1698_v47, %v1699_v55  ;;  %v1724_v15 = vsel %vm1597_vm9, %v1175_v24, -inf }
 0x188   :  { %v1681_v13 = vmax.f32 %v1679_v19, %v1680_v0  ;;  %v6497_v12 = vpop.f32.mrb[24].mxu0  ;;  %v1707_v6 = vmax.f32 %v1705_v62, %v1706_v27  ;;  %v1712_v31 = vmax.f32 %v1710_v25, %v1711_v34  ;;  %v1718_v63 = vrot.slane %v1717_v2, 4 }
 0x189   :  { %v1688_v50 = vmax.f32 %v1686_v38, %v1687_v56  ;;  %v1694_v5 = vrot.slane %v1693_v29, 1  ;;  %v1701_v51 = vrot.slane %v1700_v32, 1  ;;  %v6499_v40 = vpop.f32.mrb[25].mxu0  ;;  %v1725_v46 = vrot.slane %v1724_v15, 4 }
 0x18a   :  { %v2281_v21 = vmax.f32 %v1681_v13, 0.0  ;;  %v6501_v47 = vpop.f32.mrb[26].mxu0  ;;  %v1708_v55 = vrot.slane %v1707_v6, 1  ;;  %v1713_v38 = vrot.slane %v1712_v31, 2  ;;  %v1719_v56 = vmax.f32 %v1717_v2, %v1718_v63 }
 0x18b   :  { %v1695_v19 = vmax.f32 %v1693_v29, %v1694_v5  ;;  %v1702_v54 = vmax.f32 %v1700_v32, %v1701_v51  ;;  %v2282_v0 = vmax.f32 %v1688_v50, 0.0  ;;  %v6503_v8 = vpop.f32.mrb[27].mxu0  ;;  %v1726_v1 = vmax.f32 %v1724_v15, %v1725_v46 }
 0x18c   :  { %v6505_v24 = vpack.c.bf16 %v2281_v21, %v2281_v21  ;;  %v1709_v62 = vmax.f32 %v1707_v6, %v1708_v55  ;;  %v1714_v34 = vmax.f32 %v1712_v31, %v1713_v38  ;;  %v1720_v60 = vrot.slane %v1719_v56, 2 }
 0x18d   :  { %v2283_v27 = vmax.f32 %v1695_v19, 0.0  ;;  %v2284_v39 = vmax.f32 %v1702_v54, 0.0  ;;  %v2378_v13 = vpack.c.bf16 %v2282_v0, %v2282_v0  ;;  %v1727_v26 = vrot.slane %v1726_v1, 2 }
 0x18e   :  { %8352 = vst [vmem:[#allocation11_spill] sm:$0xff] %v6505_v24  ;;  %v2285_v29 = vmax.f32 %v1709_v62, 0.0  ;;  %v1715_v51 = vrot.slane %v1714_v34, 1  ;;  %v1721_v21 = vmax.f32 %v1719_v56, %v1720_v60  ;;  %v1731_v2 = vsel %vm1597_vm9, %v1177_v20, -inf }
 0x18f   :  { %v6508_v32 = vpack.c.bf16 %v2283_v27, %v2283_v27  ;;  %v2380_v50 = vpack.c.bf16 %v2284_v39, %v2284_v39  ;;  %v2534_v5 = vunpack.c.l.b16 %v2378_v13  ;;  %v1728_v36 = vmax.f32 %v1726_v1, %v1727_v26 }
 0x190   :  { %v6511_v15 = vpop.f32.mrb[28].mxu0  ;;  %v2381_v6 = vpack.c.bf16 %v2285_v29, %v2285_v29  ;;  %v1732_v31 = vrot.slane %v1731_v2, 4  ;;  %v1716_v54 = vmax.f32 %v1714_v34, %v1715_v51  ;;  %v1722_v55 = vrot.slane %v1721_v21, 1 }
 0x191   :  { %8353 = vst [vmem:[#allocation12_spill] sm:$0xff] %v6511_v15  ;;  %v8253_v63 = vunpack.c.l.b16 %v6508_v32  ;;  %v6514_v46 = vunpack.c.l.b16 %v2380_v50  ;;  %v6516_v19 = vpop.f32.mrb[29].mxu0  ;;  %v1729_v0 = vrot.slane %v1728_v36, 1  ;;  %v1178_v39 = vcombine.high %v6466_v58, %v6466_v58 }
 0x192   :  { %8354 = vst [vmem:[#allocation13_spill] sm:$0xff] %v6516_v19  ;;  %v6520_v60 = vunpack.c.l.b16 %v2381_v6  ;;  %v1733_v26 = vmax.f32 %v1731_v2, %v1732_v31  ;;  %v1185_v20 = vrot.slane %v6466_v58, %v6378_v33  ;;  %v1723_v38 = vmax.f32 %v1721_v21, %v1722_v55 }
 0x193   :  { %v6525_v1 = vsel %vm2590_vm10, %v8253_v63, %v2534_v5  ;;  %v1730_v56 = vmax.f32 %v1728_v36, %v1729_v0  ;;  %v2286_v62 = vmax.f32 %v1716_v54, 0.0  ;;  %v1192_v27 = vrot.slane %v1178_v39, %v6378_v33 }
 0x194   :  { %8355 = vst [vmem:[#allocation14_spill] sm:$0xff] %v6520_v60  ;;  %v6533_v13 = vsel %vm2590_vm10, %v6520_v60, %v6514_v46  ;;  %v1734_v34 = vrot.slane %v1733_v26, 2  ;;  %v1193_v29 = vcombine.high %v1185_v20, %v1185_v20  ;;  %v1738_v50 = vsel %vm1597_vm9, %v1185_v20, -inf }
 0x195   :  { %8356 = vst [vmem:[#allocation15_spill] sm:$0xff] %v6533_v13  ;;  %v2287_v5 = vmax.f32 %v1723_v38, 0.0  ;;  %v2288_v51 = vmax.f32 %v1730_v56, 0.0  ;;  %v2382_v2 = vpack.c.bf16 %v2286_v62, %v2286_v62  ;;  %v1194_v6 = vcombine.high %v1192_v27, %v1192_v27 }
 0x196   :  { %v1735_v31 = vmax.f32 %v1733_v26, %v1734_v34  ;;  %v1739_v58 = vrot.slane %v1738_v50, 4  ;;  %v1745_v36 = vsel %vm1597_vm9, %v1193_v29, -inf  ;;  %v1752_v21 = vsel %vm1597_vm9, %v1192_v27, -inf  ;;  %v6545_v34 = vpop.f32.mrb[30].mxu0 }
 0x197   :  { %v2383_v54 = vpack.c.bf16 %v2287_v5, %v2287_v5  ;;  %v2384_v55 = vpack.c.bf16 %v2288_v51, %v2288_v51  ;;  %v6538_v0 = vunpack.c.l.b16 %v2382_v2  ;;  %v1746_v39 = vrot.slane %v1745_v36, 4  ;;  %8360 = vst [vmem:[#allocation19_spill] sm:$0xff] %v6545_v34  ;;  %v6551_v2 = vpop.f32.mrb[31].mxu0 }
 0x198   :  { %v1736_v25 = vrot.slane %v1735_v31, 1  ;;  %v1740_v63 = vmax.f32 %v1738_v50, %v1739_v58  ;;  %v1753_v10 = vrot.slane %v1752_v21, 4  ;;  %v1759_v20 = vsel %vm1597_vm9, %v1194_v6, -inf  ;;  %8361 = vst [vmem:[#allocation20_spill] sm:$0xff] %v6551_v2 }
 0x199   :  { %8357 = vst [vmem:[#allocation16_spill] sm:$0xff] %v6538_v0  ;;  %v6541_v38 = vunpack.c.l.b16 %v2383_v54  ;;  %v6543_v56 = vunpack.c.l.b16 %v2384_v55  ;;  %v1747_v26 = vmax.f32 %v1745_v36, %v1746_v39  ;;  %v1760_v62 = vrot.slane %v1759_v20, 4 }
 0x19a   :  { %v6547_v29 = vmax.f32 %v1735_v31, %v1736_v25  ;;  %v1741_v27 = vrot.slane %v1740_v63, 2  ;;  %v1754_v5 = vmax.f32 %v1752_v21, %v1753_v10  ;;  %v957_v51 = vadd.f32 %v6407_v61, %v6366_v3 }
 0x19b   :  { %8358 = vst [vmem:[#allocation17_spill] sm:$0xff] %v6541_v38  ;;  %8359 = vst [vmem:[#allocation18_spill] sm:$0xff] %v6543_v56  ;;  %v1748_v50 = vrot.slane %v1747_v26, 2  ;;  %v1761_v58 = vmax.f32 %v1759_v20, %v1760_v62  ;;  %v959_v6 = vadd.f32 %v6411_v11, %v6370_v57  ;;  %v961_v36 = vadd.f32 %v6415_v22, %v6366_v3 }
 0x19c   :  { %v6558_v55 = vmax.f32 %v1740_v63, %v1741_v27  ;;  %v1755_v25 = vrot.slane %v1754_v5, 2  ;;  %v963_v10 = vadd.f32 %v6422_v9, %v6370_v57  ;;  %v967_v39 = vadd.f32 %v6454_v48, %v6366_v3 }
 0x19d   :  { %v6562_v31 = vmax.f32 %v1747_v26, %v1748_v50  ;;  %v1762_v61 = vrot.slane %v1761_v58, 2  ;;  %v1051_v21 = vmax.f32 %v957_v51, %v959_v6  ;;  %v969_v63 = vadd.f32 %v6459_v44, %v6370_v57 }
 0x19e   :  { %v6567_v20 = vmax.f32 %v1754_v5, %v1755_v25  ;;  %v1052_v22 = vmax.f32 %v961_v36, %v963_v10  ;;  %v6578_v48 = vadd.f32 %v6462_v23, %v6366_v3 }
 0x19f   :  { %8362 = vst [vmem:[#allocation21_spill] sm:$0xff] %v6562_v31  ;;  %v1763_v27 = vmax.f32 %v1761_v58, %v1762_v61  ;;  %v1195_v54 = vcombine.high %v1051_v21, %v1051_v21  ;;  %v1202_v9 = vrot.slane %v1051_v21, %v6378_v33  ;;  %v6574_v50 = vmax.f32 %v967_v39, %v969_v63  ;;  %v6584_v21 = vpop.f32.mrb[32].mxu0 }
 0x1a0   :  { %8363 = vst [vmem:[#allocation22_spill] sm:$0xff] %v6567_v20  ;;  %v1212_v26 = vcombine.high %v1052_v22, %v1052_v22  ;;  %v1219_v51 = vrot.slane %v1052_v22, %v6378_v33  ;;  %8364 = vst [vmem:[#allocation23_spill] sm:$0xff] %v6584_v21  ;;  %v6588_v62 = vpop.f32.mrb[33].mxu0 }
 0x1a1   :  { %v1764_v5 = vrot.slane %v1763_v27, 1  ;;  %v1209_v6 = vrot.slane %v1195_v54, %v6378_v33  ;;  %v1210_v36 = vcombine.high %v1202_v9, %v1202_v9  ;;  %v1766_v44 = vsel %vm1597_vm9, %v1202_v9, -inf  ;;  %8365 = vst [vmem:[#allocation24_spill] sm:$0xff] %v6588_v62  ;;  %v6590_v24 = vpop.f32.mrb[34].mxu0 }
 0x1a2   :  { %v1767_v25 = vrot.slane %v1766_v44, 4  ;;  %v1226_v58 = vrot.slane %v1212_v26, %v6378_v33  ;;  %v1227_v10 = vcombine.high %v1219_v51, %v1219_v51  ;;  %v1794_v61 = vsel %vm1597_vm9, %v1219_v51, -inf  ;;  %8366 = vst [vmem:[#allocation25_spill] sm:$0xff] %v6590_v24  ;;  %v5380_v26 = vld [vmem:[%s8244_s3 + $0x104] ss:$8 sps:$4 sm:$0xff]   ;;  %v6597_v13 = vpop.f32.mrb[35].mxu0 }
 0x1a3   :  { %v1765_v39 = vmax.f32 %v1763_v27, %v1764_v5  ;;  %v1211_v22 = vcombine.high %v1209_v6, %v1209_v6  ;;  %v1773_v63 = vsel %vm1597_vm9, %v1210_v36, -inf  ;;  %v1780_v23 = vsel %vm1597_vm9, %v1209_v6, -inf  ;;  %8367 = vst [vmem:[#allocation26_spill] sm:$0xff] %v6597_v13  ;;  %3546 = vmatprep.subr.bf16.mxu1 %v5380_v26 }
 0x1a4   :  { %v1768_v54 = vmax.f32 %v1766_v44, %v1767_v25  ;;  %v1774_v11 = vrot.slane %v1773_v63, 4  ;;  %v1781_v35 = vrot.slane %v1780_v23, 4  ;;  %v1228_v9 = vcombine.high %v1226_v58, %v1226_v58 }
 0x1a5   :  { %v2293_v51 = vmax.f32 %v1765_v39, 0.0  ;;  %v1787_v27 = vsel %vm1597_vm9, %v1211_v22, -inf  ;;  %v1795_v5 = vrot.slane %v1794_v61, 4  ;;  %v1801_v36 = vsel %vm1597_vm9, %v1227_v10, -inf }
 0x1a6   :  { %v1769_v6 = vrot.slane %v1768_v54, 2  ;;  %v1775_v49 = vmax.f32 %v1773_v63, %v1774_v11  ;;  %v1782_v44 = vmax.f32 %v1780_v23, %v1781_v35  ;;  %v1788_v25 = vrot.slane %v1787_v27, 4  ;;  %v6603_v23 = vpop.f32.mrb[36].mxu0 }
 0x1a7   :  { %v6599_v20 = vpack.c.bf16 %v2293_v51, %v2293_v51  ;;  %v1796_v31 = vmax.f32 %v1794_v61, %v1795_v5  ;;  %v1802_v41 = vrot.slane %v1801_v36, 4  ;;  %v1808_v14 = vsel %vm1597_vm9, %v1226_v58, -inf  ;;  %8369 = vst [vmem:[#allocation28_spill] sm:$0xff] %v6603_v23 }
 0x1a8   :  { %v1770_v24 = vmax.f32 %v1768_v54, %v1769_v6  ;;  %v1776_v39 = vrot.slane %v1775_v49, 2  ;;  %v1783_v62 = vrot.slane %v1782_v44, 2  ;;  %v1789_v22 = vmax.f32 %v1787_v27, %v1788_v25  ;;  %v6606_v54 = vpop.f32.mrb[37].mxu0 }
 0x1a9   :  { %8368 = vst [vmem:[#allocation27_spill] sm:$0xff] %v6599_v20  ;;  %v1797_v10 = vrot.slane %v1796_v31, 2  ;;  %v1803_v2 = vmax.f32 %v1801_v36, %v1802_v41  ;;  %v1809_v13 = vrot.slane %v1808_v14, 4  ;;  %v1815_v58 = vsel %vm1597_vm9, %v1228_v9, -inf  ;;  %8370 = vst [vmem:[#allocation29_spill] sm:$0xff] %v6606_v54  ;;  %v6608_v21 = vpop.f32.mrb[38].mxu0 }
 0x1aa   :  { %v1771_v34 = vrot.slane %v1770_v24, 1  ;;  %v1777_v11 = vmax.f32 %v1775_v49, %v1776_v39  ;;  %v1784_v35 = vmax.f32 %v1782_v44, %v1783_v62  ;;  %v1790_v63 = vrot.slane %v1789_v22, 2  ;;  %8371 = vst [vmem:[#allocation30_spill] sm:$0xff] %v6608_v21  ;;  %v6610_v44 = vpop.f32.mrb[39].mxu0 }
 0x1ab   :  { %v1798_v26 = vmax.f32 %v1796_v31, %v1797_v10  ;;  %v1804_v61 = vrot.slane %v1803_v2, 2  ;;  %v1810_v51 = vmax.f32 %v1808_v14, %v1809_v13  ;;  %v1816_v62 = vrot.slane %v1815_v58, 4  ;;  %8372 = vst [vmem:[#allocation31_spill] sm:$0xff] %v6610_v44 }
 0x1ac   :  { %v1772_v5 = vmax.f32 %v1770_v24, %v1771_v34  ;;  %v1778_v27 = vrot.slane %v1777_v11, 1  ;;  %v1785_v6 = vrot.slane %v1784_v35, 1  ;;  %v1791_v25 = vmax.f32 %v1789_v22, %v1790_v63 }
 0x1ad   :  { %v1799_v41 = vrot.slane %v1798_v26, 1  ;;  %v1805_v36 = vmax.f32 %v1803_v2, %v1804_v61  ;;  %v1811_v49 = vrot.slane %v1810_v51, 2  ;;  %v1817_v54 = vmax.f32 %v1815_v58, %v1816_v62 }
 0x1ae   :  { %v1779_v39 = vmax.f32 %v1777_v11, %v1778_v27  ;;  %v1786_v31 = vmax.f32 %v1784_v35, %v1785_v6  ;;  %v1792_v10 = vrot.slane %v1791_v25, 1  ;;  %v2294_v14 = vmax.f32 %v1772_v5, 0.0 }
 0x1af   :  { %v1800_v13 = vmax.f32 %v1798_v26, %v1799_v41  ;;  %v1806_v9 = vrot.slane %v1805_v36, 1  ;;  %v1812_v20 = vmax.f32 %v1810_v51, %v1811_v49  ;;  %v1818_v19 = vrot.slane %v1817_v54, 2 }
 0x1b0   :  { %v1793_v24 = vmax.f32 %v1791_v25, %v1792_v10  ;;  %v2295_v34 = vmax.f32 %v1779_v39, 0.0  ;;  %v2296_v23 = vmax.f32 %v1786_v31, 0.0  ;;  %v2390_v22 = vpack.c.bf16 %v2294_v14, %v2294_v14 }
 0x1b1   :  { %v1807_v63 = vmax.f32 %v1805_v36, %v1806_v9  ;;  %v1813_v21 = vrot.slane %v1812_v20, 1  ;;  %v2298_v2 = vmax.f32 %v1800_v13, 0.0  ;;  %v1819_v27 = vmax.f32 %v1817_v54, %v1818_v19 }
 0x1b2   :  { %v2297_v61 = vmax.f32 %v1793_v24, 0.0  ;;  %v6612_v15 = vpack.c.bf16 %v2295_v34, %v2295_v34  ;;  %v2392_v44 = vpack.c.bf16 %v2296_v23, %v2296_v23  ;;  %v2542_v11 = vunpack.c.l.b16 %v2390_v22 }
 0x1b3   :  { %v1814_v35 = vmax.f32 %v1812_v20, %v1813_v21  ;;  %v2299_v5 = vmax.f32 %v1807_v63, 0.0  ;;  %v2394_v26 = vpack.c.bf16 %v2298_v2, %v2298_v2  ;;  %v1229_v25 = vcombine.high %v6574_v50, %v6574_v50 }
 0x1b4   :  { %v2393_v6 = vpack.c.bf16 %v2297_v61, %v2297_v61  ;;  %v8264_v51 = vunpack.c.l.b16 %v6612_v15  ;;  %v6615_v58 = vunpack.c.l.b16 %v2392_v44  ;;  %v1820_v41 = vrot.slane %v1819_v27, 1 }
 0x1b5   :  { %v2300_v36 = vmax.f32 %v1814_v35, 0.0  ;;  %v2395_v49 = vpack.c.bf16 %v2299_v5, %v2299_v5  ;;  %v6619_v62 = vunpack.c.l.b16 %v2394_v26  ;;  %v1236_v20 = vrot.slane %v6574_v50, %v6378_v33 }
 0x1b6   :  { %8373 = vst [vmem:[#allocation32_spill] sm:$0xff] %v6615_v58  ;;  %v6621_v39 = vunpack.c.l.b16 %v2393_v6  ;;  %v6626_v19 = vsel %vm2590_vm10, %v8264_v51, %v2542_v11  ;;  %v1243_v21 = vrot.slane %v1229_v25, %v6378_v33  ;;  %v1821_v23 = vmax.f32 %v1819_v27, %v1820_v41 }
 0x1b7   :  { %8374 = vst [vmem:[#allocation33_spill] sm:$0xff] %v6626_v19  ;;  %v2396_v54 = vpack.c.bf16 %v2300_v36, %v2300_v36  ;;  %v6631_v44 = vunpack.c.l.b16 %v2395_v49  ;;  %v973_v31 = vadd.f32 %v6468_v18, %v6370_v57  ;;  %v1244_v10 = vcombine.high %v1236_v20, %v1236_v20 }
 0x1b8   :  { %v1245_v14 = vcombine.high %v1243_v21, %v1243_v21  ;;  %v1822_v13 = vsel %vm1597_vm9, %v1236_v20, -inf  ;;  %v1836_v9 = vsel %vm1597_vm9, %v1243_v21, -inf  ;;  %v2301_v24 = vmax.f32 %v1821_v23, 0.0 }
 0x1b9   :  { %v6637_v34 = vunpack.c.l.b16 %v2396_v54  ;;  %v1823_v22 = vrot.slane %v1822_v13, 4  ;;  %v1837_v50 = vrot.slane %v1836_v9, 4  ;;  %v1829_v63 = vsel %vm1597_vm9, %v1244_v10, -inf }
 0x1ba   :  { %v1843_v2 = vsel %vm1597_vm9, %v1245_v14, -inf  ;;  %v1054_v61 = vmax.f32 %v6578_v48, %v973_v31  ;;  %v977_v18 = vadd.f32 %v6477_v53, %v6366_v3  ;;  %v2397_v11 = vpack.c.bf16 %v2301_v24, %v2301_v24 }
 0x1bb   :  { %8375 = vst [vmem:[#allocation34_spill] sm:$0xff] %v6637_v34  ;;  %v1824_v35 = vmax.f32 %v1822_v13, %v1823_v22  ;;  %v1830_v27 = vrot.slane %v1829_v63, 4  ;;  %v1838_v5 = vmax.f32 %v1836_v9, %v1837_v50  ;;  %v1844_v26 = vrot.slane %v1843_v2, 4 }
 0x1bc   :  { %v1246_v6 = vcombine.high %v1054_v61, %v1054_v61  ;;  %v1253_v25 = vrot.slane %v1054_v61, %v6378_v33  ;;  %v979_v41 = vadd.f32 %v6480_v4, %v6370_v57  ;;  %v6647_v36 = vunpack.c.l.b16 %v2397_v11 }
 0x1bd   :  { %v1825_v49 = vrot.slane %v1824_v35, 2  ;;  %v1831_v20 = vmax.f32 %v1829_v63, %v1830_v27  ;;  %v1839_v21 = vrot.slane %v1838_v5, 2  ;;  %v6649_v48 = vmax.f32 %v1843_v2, %v1844_v26 }
 0x1be   :  { %8376 = vst [vmem:[#allocation35_spill] sm:$0xff] %v6647_v36  ;;  %v1260_v53 = vrot.slane %v1246_v6, %v6378_v33  ;;  %v1261_v23 = vcombine.high %v1253_v25, %v1253_v25  ;;  %v1850_v54 = vsel %vm1597_vm9, %v1253_v25, -inf }
 0x1bf   :  { %8377 = vst [vmem:[#allocation36_spill] sm:$0xff] %v6649_v48  ;;  %v1826_v31 = vmax.f32 %v1824_v35, %v1825_v49  ;;  %v1832_v10 = vrot.slane %v1831_v20, 2  ;;  %v6653_v14 = vmax.f32 %v1838_v5, %v1839_v21  ;;  %v1851_v13 = vrot.slane %v1850_v54, 4 }
 0x1c0   :  { %v1262_v4 = vcombine.high %v1260_v53, %v1260_v53  ;;  %v1857_v24 = vsel %vm1597_vm9, %v1261_v23, -inf  ;;  %v1864_v22 = vsel %vm1597_vm9, %v1260_v53, -inf  ;;  %v1055_v35 = vmax.f32 %v977_v18, %v979_v41 }
 0x1c1   :  { %8378 = vst [vmem:[#allocation37_spill] sm:$0xff] %v6653_v14  ;;  %v1827_v50 = vrot.slane %v1826_v31, 1  ;;  %v6658_v63 = vmax.f32 %v1831_v20, %v1832_v10  ;;  %v1852_v2 = vmax.f32 %v1850_v54, %v1851_v13  ;;  %v1858_v61 = vrot.slane %v1857_v24, 4 }
 0x1c2   :  { %v1865_v11 = vrot.slane %v1864_v22, 4  ;;  %v1871_v27 = vsel %vm1597_vm9, %v1262_v4, -inf  ;;  %v981_v5 = vadd.f32 %v6487_v43, %v6366_v3  ;;  %v1263_v53 = vcombine.high %v1055_v35, %v1055_v35 }
 0x1c3   :  { %8379 = vst [vmem:[#allocation38_spill] sm:$0xff] %v6658_v63  ;;  %v1828_v26 = vmax.f32 %v1826_v31, %v1827_v50  ;;  %v1853_v25 = vrot.slane %v1852_v2, 2  ;;  %v1859_v49 = vmax.f32 %v1857_v24, %v1858_v61  ;;  %v1872_v23 = vrot.slane %v1871_v27, 4 }
 0x1c4   :  { %v1866_v21 = vmax.f32 %v1864_v22, %v1865_v11  ;;  %v1270_v20 = vrot.slane %v1055_v35, %v6378_v33  ;;  %v983_v4 = vadd.f32 %v6489_v59, %v6370_v57  ;;  %v1277_v43 = vrot.slane %v1263_v53, %v6378_v33 }
 0x1c5   :  { %v2302_v10 = vmax.f32 %v1828_v26, 0.0  ;;  %v1854_v54 = vmax.f32 %v1852_v2, %v1853_v25  ;;  %v1860_v13 = vrot.slane %v1859_v49, 2  ;;  %v1873_v41 = vmax.f32 %v1871_v27, %v1872_v23 }
 0x1c6   :  { %v1867_v18 = vrot.slane %v1866_v21, 2  ;;  %v1278_v31 = vcombine.high %v1270_v20, %v1270_v20  ;;  %v1878_v22 = vsel %vm1597_vm9, %v1270_v20, -inf  ;;  %v1279_v35 = vcombine.high %v1277_v43, %v1277_v43 }
 0x1c7   :  { %v6668_v50 = vpack.c.bf16 %v2302_v10, %v2302_v10  ;;  %v1855_v9 = vrot.slane %v1854_v54, 1  ;;  %v1861_v24 = vmax.f32 %v1859_v49, %v1860_v13  ;;  %v1874_v11 = vrot.slane %v1873_v41, 2 }
 0x1c8   :  { %v1868_v61 = vmax.f32 %v1866_v21, %v1867_v18  ;;  %v1879_v26 = vrot.slane %v1878_v22, 4  ;;  %v1885_v6 = vsel %vm1597_vm9, %v1278_v31, -inf  ;;  %v1892_v59 = vsel %vm1597_vm9, %v1277_v43, -inf }
 0x1c9   :  { %v1856_v2 = vmax.f32 %v1854_v54, %v1855_v9  ;;  %v1862_v25 = vrot.slane %v1861_v24, 1  ;;  %v1875_v23 = vmax.f32 %v1873_v41, %v1874_v11  ;;  %v1886_v51 = vrot.slane %v1885_v6, 4 }
 0x1ca   :  { %v1869_v27 = vrot.slane %v1868_v61, 1  ;;  %v1880_v53 = vmax.f32 %v1878_v22, %v1879_v26  ;;  %v1893_v14 = vrot.slane %v1892_v59, 4  ;;  %v1899_v49 = vsel %vm1597_vm9, %v1279_v35, -inf }
 0x1cb   :  { %v1863_v10 = vmax.f32 %v1861_v24, %v1862_v25  ;;  %v2306_v48 = vmax.f32 %v1856_v2, 0.0  ;;  %v1876_v21 = vrot.slane %v1875_v23, 1  ;;  %v1887_v18 = vmax.f32 %v1885_v6, %v1886_v51 }
 0x1cc   :  { %v1870_v20 = vmax.f32 %v1868_v61, %v1869_v27  ;;  %v1881_v13 = vrot.slane %v1880_v53, 2  ;;  %v1894_v54 = vmax.f32 %v1892_v59, %v1893_v14  ;;  %v1900_v19 = vrot.slane %v1899_v49, 4  ;;  %v6677_v14 = vpop.f32.mrb[40].mxu0 }
 0x1cd   :  { %v2307_v63 = vmax.f32 %v1863_v10, 0.0  ;;  %v2402_v9 = vpack.c.bf16 %v2306_v48, %v2306_v48  ;;  %v1877_v31 = vmax.f32 %v1875_v23, %v1876_v21  ;;  %v1888_v34 = vrot.slane %v1887_v18, 2  ;;  %8380 = vst [vmem:[#allocation39_spill] sm:$0xff] %v6677_v14 }
 0x1ce   :  { %v2308_v36 = vmax.f32 %v1870_v20, 0.0  ;;  %v1882_v43 = vmax.f32 %v1880_v53, %v1881_v13  ;;  %v1895_v24 = vrot.slane %v1894_v54, 2  ;;  %v1901_v11 = vmax.f32 %v1899_v49, %v1900_v19  ;;  %v6681_v53 = vpop.f32.mrb[41].mxu0 }
 0x1cf   :  { %v6674_v41 = vpack.c.bf16 %v2307_v63, %v2307_v63  ;;  %v2550_v22 = vunpack.c.l.b16 %v2402_v9  ;;  %v2309_v26 = vmax.f32 %v1877_v31, 0.0  ;;  %v1889_v61 = vmax.f32 %v1887_v18, %v1888_v34  ;;  %8382 = vst [vmem:[#allocation41_spill] sm:$0xff] %v6681_v53 }
 0x1d0   :  { %v2404_v2 = vpack.c.bf16 %v2308_v36, %v2308_v36  ;;  %v1883_v35 = vrot.slane %v1882_v43, 1  ;;  %v1896_v51 = vmax.f32 %v1894_v54, %v1895_v24  ;;  %v1902_v6 = vrot.slane %v1901_v11, 2 }
 0x1d1   :  { %v8272_v25 = vunpack.c.l.b16 %v6674_v41  ;;  %v1056_v48 = vmax.f32 %v981_v5, %v983_v4  ;;  %v2405_v59 = vpack.c.bf16 %v2309_v26, %v2309_v26  ;;  %v1890_v63 = vrot.slane %v1889_v61, 1 }
 0x1d2   :  { %v6679_v27 = vunpack.c.l.b16 %v2404_v2  ;;  %v1884_v23 = vmax.f32 %v1882_v43, %v1883_v35  ;;  %v1897_v34 = vrot.slane %v1896_v51, 1  ;;  %v1903_v36 = vmax.f32 %v1901_v11, %v1902_v6 }
 0x1d3   :  { %v6686_v19 = vsel %vm2590_vm10, %v8272_v25, %v2550_v22  ;;  %v1280_v10 = vcombine.high %v1056_v48, %v1056_v48  ;;  %v6688_v49 = vunpack.c.l.b16 %v2405_v59  ;;  %v1891_v5 = vmax.f32 %v1889_v61, %v1890_v63 }
 0x1d4   :  { %8381 = vst [vmem:[#allocation40_spill] sm:$0xff] %v6679_v27  ;;  %8383 = vst [vmem:[#allocation42_spill] sm:$0xff] %v6686_v19  ;;  %v2310_v4 = vmax.f32 %v1884_v23, 0.0  ;;  %v1287_v20 = vrot.slane %v1056_v48, %v6378_v33  ;;  %v1898_v21 = vmax.f32 %v1896_v51, %v1897_v34  ;;  %v1904_v13 = vrot.slane %v1903_v36, 1 }
 0x1d5   :  { %8384 = vst [vmem:[#allocation43_spill] sm:$0xff] %v6688_v49  ;;  %v1294_v18 = vrot.slane %v1280_v10, %v6378_v33  ;;  %v987_v9 = vadd.f32 %v6497_v12, %v6366_v3  ;;  %v2311_v54 = vmax.f32 %v1891_v5, 0.0 }
 0x1d6   :  { %v2406_v31 = vpack.c.bf16 %v2310_v4, %v2310_v4  ;;  %v1295_v43 = vcombine.high %v1287_v20, %v1287_v20  ;;  %v1906_v22 = vsel %vm1597_vm9, %v1287_v20, -inf  ;;  %v1905_v24 = vmax.f32 %v1903_v36, %v1904_v13 }
 0x1d7   :  { %v2312_v11 = vmax.f32 %v1898_v21, 0.0  ;;  %v1296_v26 = vcombine.high %v1294_v18, %v1294_v18  ;;  %v1907_v2 = vrot.slane %v1906_v22, 4  ;;  %v2407_v35 = vpack.c.bf16 %v2311_v54, %v2311_v54 }
 0x1d8   :  { %v6695_v61 = vunpack.c.l.b16 %v2406_v31  ;;  %v1913_v51 = vsel %vm1597_vm9, %v1295_v43, -inf  ;;  %v1920_v6 = vsel %vm1597_vm9, %v1294_v18, -inf  ;;  %v2313_v48 = vmax.f32 %v1905_v24, 0.0 }
 0x1d9   :  { %v2408_v59 = vpack.c.bf16 %v2312_v11, %v2312_v11  ;;  %v1908_v23 = vmax.f32 %v1906_v22, %v1907_v2  ;;  %v1914_v12 = vrot.slane %v1913_v51, 4  ;;  %v6699_v63 = vunpack.c.l.b16 %v2407_v35 }
 0x1da   :  { %8385 = vst [vmem:[#allocation44_spill] sm:$0xff] %v6695_v61  ;;  %v1921_v34 = vrot.slane %v1920_v6, 4  ;;  %v1927_v10 = vsel %vm1597_vm9, %v1296_v26, -inf  ;;  %v989_v36 = vadd.f32 %v6499_v40, %v6370_v57  ;;  %v2409_v5 = vpack.c.bf16 %v2313_v48, %v2313_v48 }
 0x1db   :  { %8386 = vst [vmem:[#allocation45_spill] sm:$0xff] %v6699_v63  ;;  %v6704_v4 = vunpack.c.l.b16 %v2408_v59  ;;  %v1909_v20 = vrot.slane %v1908_v23, 2  ;;  %v1915_v21 = vmax.f32 %v1913_v51, %v1914_v12  ;;  %v1928_v54 = vrot.slane %v1927_v10, 4  ;;  %v6722_v59 = vpop.f32.mrb[42].mxu0 }
 0x1dc   :  { %v1922_v13 = vmax.f32 %v1920_v6, %v1921_v34  ;;  %v1057_v18 = vmax.f32 %v987_v9, %v989_v36  ;;  %v991_v31 = vadd.f32 %v6501_v47, %v6366_v3  ;;  %v6708_v43 = vunpack.c.l.b16 %v2409_v5  ;;  %8392 = vst [vmem:[#allocation50_spill] sm:$0xff] %v6722_v59 }
 0x1dd   :  { %8387 = vst [vmem:[#allocation46_spill] sm:$0xff] %v6704_v4  ;;  %v1910_v22 = vmax.f32 %v1908_v23, %v1909_v20  ;;  %v1916_v24 = vrot.slane %v1915_v21, 2  ;;  %v993_v11 = vadd.f32 %v6503_v8, %v6370_v57  ;;  %v6712_v40 = vmax.f32 %v1927_v10, %v1928_v54  ;;  %v6728_v10 = vpop.f32.mrb[43].mxu0 }
 0x1de   :  { %8388 = vst [vmem:[#allocation47_spill] sm:$0xff] %v6708_v43  ;;  %v1923_v26 = vrot.slane %v1922_v13, 2  ;;  %v1297_v2 = vcombine.high %v1057_v18, %v1057_v18  ;;  %v1304_v35 = vrot.slane %v1057_v18, %v6378_v33  ;;  %v8391_v48 = vrot.slane %v6475_v42, 1  ;;  %8394 = vst [vmem:[#allocation52_spill] sm:$0xff] %v6728_v10 }
 0x1df   :  { %8389 = vst [vmem:[#allocation48_spill] sm:$0xff] %v6712_v40  ;;  %v1911_v51 = vrot.slane %v1910_v22, 1  ;;  %v6715_v6 = vmax.f32 %v1915_v21, %v1916_v24  ;;  %v1058_v9 = vmax.f32 %v991_v31, %v993_v11 }
 0x1e0   :  { %v6720_v47 = vmax.f32 %v6475_v42, %v8391_v48  ;;  %v6724_v23 = vmax.f32 %v1922_v13, %v1923_v26  ;;  %v1311_v12 = vrot.slane %v1297_v2, %v6378_v33  ;;  %v1312_v34 = vcombine.high %v1304_v35, %v1304_v35 }
 0x1e1   :  { %8390 = vst [vmem:[#allocation49_spill] sm:$0xff] %v6715_v6  ;;  %v1912_v36 = vmax.f32 %v1910_v22, %v1911_v51  ;;  %v1934_v20 = vsel %vm1597_vm9, %v1304_v35, -inf  ;;  %v1314_v21 = vcombine.high %v1058_v9, %v1058_v9  ;;  %v1321_v26 = vrot.slane %v1058_v9, %v6378_v33 }
 0x1e2   :  { %8393 = vst [vmem:[#allocation51_spill] sm:$0xff] %v6724_v23  ;;  %v1313_v54 = vcombine.high %v1311_v12, %v1311_v12  ;;  %v1935_v42 = vrot.slane %v1934_v20, 4  ;;  %v1941_v18 = vsel %vm1597_vm9, %v1312_v34, -inf  ;;  %v1948_v13 = vsel %vm1597_vm9, %v1311_v12, -inf }
 0x1e3   :  { %v2314_v31 = vmax.f32 %v1912_v36, 0.0  ;;  %v1942_v24 = vrot.slane %v1941_v18, 4  ;;  %v1949_v11 = vrot.slane %v1948_v13, 4  ;;  %v1328_v22 = vrot.slane %v1314_v21, %v6378_v33 }
 0x1e4   :  { %v1936_v2 = vmax.f32 %v1934_v20, %v1935_v42  ;;  %v1955_v48 = vsel %vm1597_vm9, %v1313_v54, -inf  ;;  %v8395_v51 = vrot.slane %v6558_v55, 1  ;;  %v1329_v25 = vcombine.high %v1321_v26, %v1321_v26 }
 0x1e5   :  { %v6742_v8 = vpack.c.bf16 %v2314_v31, %v2314_v31  ;;  %v1943_v34 = vmax.f32 %v1941_v18, %v1942_v24  ;;  %v1950_v5 = vmax.f32 %v1948_v13, %v1949_v11  ;;  %v1956_v12 = vrot.slane %v1955_v48, 4 }
 0x1e6   :  { %v6740_v35 = vmax.f32 %v6558_v55, %v8395_v51  ;;  %v1937_v36 = vrot.slane %v1936_v2, 2  ;;  %v1330_v40 = vcombine.high %v1328_v22, %v1328_v22  ;;  %v1962_v9 = vsel %vm1597_vm9, %v1321_v26, -inf  ;;  %v6748_v26 = vpop.f32.mrb[44].mxu0 }
 0x1e7   :  { %v1944_v20 = vrot.slane %v1943_v34, 2  ;;  %v1951_v42 = vrot.slane %v1950_v5, 2  ;;  %v1957_v54 = vmax.f32 %v1955_v48, %v1956_v12  ;;  %v1963_v23 = vrot.slane %v1962_v9, 4  ;;  %8396 = vst [vmem:[#allocation53_spill] sm:$0xff] %v6748_v26 }
 0x1e8   :  { %v1938_v21 = vmax.f32 %v1936_v2, %v1937_v36  ;;  %v1969_v6 = vsel %vm1597_vm9, %v1329_v25, -inf  ;;  %v1976_v55 = vsel %vm1597_vm9, %v1328_v22, -inf  ;;  %v1983_v31 = vsel %vm1597_vm9, %v1330_v40, -inf  ;;  %v6750_v36 = vpop.f32.mrb[45].mxu0 }
 0x1e9   :  { %v1945_v51 = vmax.f32 %v1943_v34, %v1944_v20  ;;  %v1952_v18 = vmax.f32 %v1950_v5, %v1951_v42  ;;  %v1958_v13 = vrot.slane %v1957_v54, 2  ;;  %v1964_v24 = vmax.f32 %v1962_v9, %v1963_v23  ;;  %8397 = vst [vmem:[#allocation54_spill] sm:$0xff] %v6750_v36  ;;  %v6752_v34 = vpop.f32.mrb[46].mxu0 }
 0x1ea   :  { %v1939_v11 = vrot.slane %v1938_v21, 1  ;;  %v1970_v10 = vrot.slane %v1969_v6, 4  ;;  %v1977_v59 = vrot.slane %v1976_v55, 4  ;;  %v1984_v53 = vrot.slane %v1983_v31, 4  ;;  %v6754_v42 = vpop.f32.mrb[47].mxu0 }
 0x1eb   :  { %v1946_v43 = vrot.slane %v1945_v51, 1  ;;  %v1953_v48 = vrot.slane %v1952_v18, 1  ;;  %v1959_v12 = vmax.f32 %v1957_v54, %v1958_v13  ;;  %v1965_v2 = vrot.slane %v1964_v24, 2 }
 0x1ec   :  { %v1940_v25 = vmax.f32 %v1938_v21, %v1939_v11  ;;  %v1971_v22 = vmax.f32 %v1969_v6, %v1970_v10  ;;  %v1978_v14 = vmax.f32 %v1976_v55, %v1977_v59  ;;  %v1985_v40 = vmax.f32 %v1983_v31, %v1984_v53 }
 0x1ed   :  { %v1947_v5 = vmax.f32 %v1945_v51, %v1946_v43  ;;  %v1954_v23 = vmax.f32 %v1952_v18, %v1953_v48  ;;  %v1960_v9 = vrot.slane %v1959_v12, 1  ;;  %v1966_v20 = vmax.f32 %v1964_v24, %v1965_v2 }
 0x1ee   :  { %v2318_v19 = vmax.f32 %v1940_v25, 0.0  ;;  %v1972_v26 = vrot.slane %v1971_v22, 2  ;;  %v1979_v4 = vrot.slane %v1978_v14, 2  ;;  %v1986_v63 = vrot.slane %v1985_v40, 2 }
 0x1ef   :  { %v1961_v54 = vmax.f32 %v1959_v12, %v1960_v9  ;;  %v2319_v13 = vmax.f32 %v1947_v5, 0.0  ;;  %v2320_v61 = vmax.f32 %v1954_v23, 0.0  ;;  %v1967_v36 = vrot.slane %v1966_v20, 1 }
 0x1f0   :  { %v2414_v21 = vpack.c.bf16 %v2318_v19, %v2318_v19  ;;  %v1973_v6 = vmax.f32 %v1971_v22, %v1972_v26  ;;  %v1980_v59 = vmax.f32 %v1978_v14, %v1979_v4  ;;  %v1987_v53 = vmax.f32 %v1985_v40, %v1986_v63 }
 0x1f1   :  { %v2321_v10 = vmax.f32 %v1961_v54, 0.0  ;;  %v6756_v55 = vpack.c.bf16 %v2319_v13, %v2319_v13  ;;  %v2416_v43 = vpack.c.bf16 %v2320_v61, %v2320_v61  ;;  %v1968_v31 = vmax.f32 %v1966_v20, %v1967_v36 }
 0x1f2   :  { %v2558_v51 = vunpack.c.l.b16 %v2414_v21  ;;  %v1974_v18 = vrot.slane %v1973_v6, 1  ;;  %v1981_v24 = vrot.slane %v1980_v59, 1  ;;  %v1988_v11 = vrot.slane %v1987_v53, 1 }
 0x1f3   :  { %v2417_v48 = vpack.c.bf16 %v2321_v10, %v2321_v10  ;;  %v8282_v2 = vunpack.c.l.b16 %v6756_v55  ;;  %v6759_v12 = vunpack.c.l.b16 %v2416_v43  ;;  %v2322_v25 = vmax.f32 %v1968_v31, 0.0 }
 0x1f4   :  { %v1975_v5 = vmax.f32 %v1973_v6, %v1974_v18  ;;  %v1982_v19 = vmax.f32 %v1980_v59, %v1981_v24  ;;  %v1989_v26 = vmax.f32 %v1987_v53, %v1988_v11  ;;  %v2278_v14 = vmax.f32 %v6720_v47, 0.0 }
 0x1f5   :  { %v6762_v63 = vunpack.c.l.b16 %v2417_v48  ;;  %v6767_v61 = vsel %vm2590_vm10, %v8282_v2, %v2558_v51  ;;  %v2418_v4 = vpack.c.bf16 %v2322_v25, %v2322_v25  ;;  %v2290_v36 = vmax.f32 %v6740_v35, 0.0 }
 0x1f6   :  { %v2323_v22 = vmax.f32 %v1975_v5, 0.0  ;;  %v2324_v40 = vmax.f32 %v1982_v19, 0.0  ;;  %v2325_v23 = vmax.f32 %v1989_v26, 0.0  ;;  %v8398_v9 = vmax.f32 %v6413_v17, 0.0 }
 0x1f7   :  { %v6773_v54 = vunpack.c.l.b16 %v2418_v4  ;;  %v2374_v47 = vpack.c.bf16 %v2278_v14, %v2278_v14  ;;  %v8399_v13 = vmax.f32 %v6547_v29, 0.0  ;;  %v2386_v6 = vpack.c.bf16 %v2290_v36, %v2290_v36 }
 0x1f8   :  { %v2373_v20 = vpack.c.bf16 %v8398_v9, %v8398_v9  ;;  %v2419_v59 = vpack.c.bf16 %v2323_v22, %v2323_v22  ;;  %v2420_v53 = vpack.c.bf16 %v2324_v40, %v2324_v40  ;;  %v2421_v10 = vpack.c.bf16 %v2325_v23, %v2325_v23 }
 0x1f9   :  { %v2385_v21 = vpack.c.bf16 %v8399_v13, %v8399_v13  ;;  %v6788_v29 = vunpack.c.l.b16 %v2374_v47  ;;  %v6790_v18 = vunpack.c.l.b16 %v2386_v6  ;;  %v8404_v24 = vunpack.c.l.b16 %v6409_v7 }
 0x1fa   :  { %v6778_v43 = vunpack.c.l.b16 %v2373_v20  ;;  %v6782_v17 = vunpack.c.l.b16 %v2419_v59  ;;  %v6784_v31 = vunpack.c.l.b16 %v2420_v53  ;;  %v6786_v51 = vunpack.c.l.b16 %v2421_v10 }
 0x1fb   :  { %v6780_v35 = vunpack.c.l.b16 %v2385_v21  ;;  %8402 = vst [vmem:[#allocation57_spill] sm:$0xff] %v6788_v29  ;;  %8403 = vst [vmem:[#allocation58_spill] sm:$0xff] %v6790_v18  ;;  %v2669_v11 = vsel %vm2590_vm10, %v6418_v52, %v8404_v24  ;;  %v8405_v48 = vunpack.c.l.b16 %v6508_v32  ;;  %v2885_v5 = vsel %vm2590_vm10, %v6449_v16, %v6435_v28 }
 0x1fc   :  { %8400 = vst [vmem:[#allocation55_spill] sm:$0xff] %v6778_v43  ;;  %v2892_v19 = vsel %vm2590_vm10, %v6541_v38, %v6538_v0  ;;  %v2670_v26 = vsel %vm2592_vm11, %v6425_v45, %v2669_v11  ;;  %v2886_v32 = vsel %vm2592_vm11, %v6437_v30, %v2885_v5  ;;  %v2593_v6 = vsel %vm2592_vm11, %v6418_v52, %v6430_v37 }
 0x1fd   :  { %8401 = vst [vmem:[#allocation56_spill] sm:$0xff] %v6780_v35  ;;  %v2676_v25 = vsel %vm2590_vm10, %v6514_v46, %v8405_v48  ;;  %v2893_v14 = vsel %vm2592_vm11, %v6543_v56, %v2892_v19  ;;  %v2671_v4 = vsel %vm2594_vm12, %v6435_v28, %v2670_v26  ;;  %v2887_v22 = vsel %vm2594_vm12, %v6778_v43, %v2886_v32  ;;  %v8408_v19 = vld [vmem:[#allocation12_spill] sm:$0xff] }
 0x1fe   :  { %v2677_v7 = vsel %vm2592_vm11, %v6520_v60, %v2676_v25  ;;  %v2894_v40 = vsel %vm2594_vm12, %v6780_v35, %v2893_v14  ;;  %v2672_v23 = vsel %vm2596_vm13, %v6449_v16, %v2671_v4  ;;  %v6828_v20 = vsel %vm2596_vm13, %v6788_v29, %v2887_v22  ;;  %v8409_v14 = vld [vmem:[#allocation13_spill] sm:$0xff] }
 0x1ff   :  { %v2678_v36 = vsel %vm2594_vm12, %v6538_v0, %v2677_v7  ;;  %8406 = vst [vmem:[#allocation59_spill] sm:$0xff] %v6828_v20  ;;  %v6832_v47 = vsel %vm2596_vm13, %v6790_v18, %v2894_v40  ;;  %v2673_v13 = vsel %vm2598_vm14, %v6437_v30, %v2672_v23  ;;  %v2605_v59 = vsel %vm2592_vm11, %v6514_v46, %v6525_v1 }
 0x200   :  { %v2679_v9 = vsel %vm2596_vm13, %v6541_v38, %v2678_v36  ;;  %8407 = vst [vmem:[#allocation60_spill] sm:$0xff] %v6832_v47  ;;  %v2674_v53 = vsel %vm2600_vm15, %v6778_v43, %v2673_v13  ;;  %v2595_v24 = vsel %vm2594_vm12, %v6425_v45, %v2593_v6  ;;  %v2606_v11 = vsel %vm2594_vm12, %v6520_v60, %v2605_v59  ;;  %v8410_v36 = vld [vmem:[#allocation19_spill] sm:$0xff] }
 0x201   :  { %v2680_v21 = vsel %vm2598_vm14, %v6543_v56, %v2679_v9  ;;  %v2675_v48 = vsel %vm2602_vm0, %v6788_v29, %v2674_v53  ;;  %v2597_v37 = vsel %vm2596_vm13, %v6435_v28, %v2595_v24  ;;  %v2607_v46 = vsel %vm2596_vm13, %v6538_v0, %v2606_v11  ;;  %v8411_v9 = vld [vmem:[#allocation20_spill] sm:$0xff]  ;;  %v5378_v59 = vld [vmem:[%s8244_s3 + $0x100] ss:$8 sps:$4 sm:$0xff]  }
 0x202   :  { %v2681_v10 = vsel %vm2600_vm15, %v6780_v35, %v2680_v21  ;;  %v2599_v25 = vsel %vm2598_vm14, %v6449_v16, %v2597_v37  ;;  %v2608_v5 = vsel %vm2598_vm14, %v6541_v38, %v2607_v46  ;;  %v997_v26 = vadd.f32 %v8408_v19, %v6366_v3  ;;  %v8412_v21 = vld [vmem:[#allocation23_spill] sm:$0xff]  ;;  %v8413_v24 = vld [vmem:[#allocation24_spill] sm:$0xff] }
 0x203   :  { %v2682_v52 = vsel %vm2602_vm0, %v6790_v18, %v2681_v10  ;;  %v2601_v7 = vsel %vm2600_vm15, %v6437_v30, %v2599_v25  ;;  %v2609_v32 = vsel %vm2600_vm15, %v6543_v56, %v2608_v5  ;;  %v999_v4 = vadd.f32 %v8409_v14, %v6370_v57  ;;  %v5383_v37 = vld [vmem:[%s8244_s3 + $0x114] ss:$8 sps:$4 sm:$0xff]  }
 0x204   :  { %v3034_v1 = vpack.c.b16 %v2682_v52, %v2675_v48  ;;  %v1001_v22 = vadd.f32 %v8410_v36, %v6366_v3  ;;  %v2603_v40 = vsel %vm2602_vm0, %v6778_v43, %v2601_v7  ;;  %v2610_v23 = vsel %vm2602_vm0, %v6780_v35, %v2609_v32  ;;  %v8414_v48 = vld [vmem:[#allocation25_spill] sm:$0xff]  ;;  %v8416_v5 = vld [vmem:[#allocation28_spill] sm:$0xff]  ;;  %v8418_v36 = vld [vmem:[#allocation30_spill] sm:$0xff] }
 0x205   :  { %v1003_v13 = vadd.f32 %v8411_v9, %v6370_v57  ;;  %v1007_v6 = vadd.f32 %v8412_v21, %v6366_v3  ;;  %v3033_v53 = vpack.c.b16 %v2610_v23, %v2603_v40  ;;  %v1059_v10 = vmax.f32 %v997_v26, %v999_v4  ;;  %v8417_v7 = vld [vmem:[#allocation29_spill] sm:$0xff] }
 0x206   :  { %3505 = vmatprep.mubr.bf16.mxu1 %v3034_v1  ;;  %v1009_v11 = vadd.f32 %v8413_v24, %v6370_v57  ;;  %v1011_v52 = vadd.f32 %v8414_v48, %v6366_v3  ;;  %v8415_v1 = vld [vmem:[#allocation26_spill] sm:$0xff]  ;;  %v1017_v19 = vadd.f32 %v8416_v5, %v6366_v3  ;;  %v1019_v26 = vadd.f32 %v8417_v7, %v6370_v57 }
 0x207   :  { %v1060_v46 = vmax.f32 %v1001_v22, %v1003_v13  ;;  %v1013_v25 = vadd.f32 %v8415_v1, %v6370_v57  ;;  %3506 = vmatmul.mubr.bf16.vlgmr.msra.gmra.mrb[0].mxu1 %v3033_v53  ;;  %v1331_v32 = vcombine.high %v1059_v10, %v1059_v10  ;;  %v1338_v14 = vrot.slane %v1059_v10, %v6378_v33  ;;  %v5381_v13 = vld [vmem:[%s8244_s3 + $0x110] ss:$8 sps:$4 sm:$0xff]  }
 0x208   :  { %v6899_v4 = vmax.f32 %v1007_v6, %v1009_v11  ;;  %v6903_v40 = vadd.f32 %v8418_v36, %v6366_v3  ;;  %3547 = vmatpush1.bf16.msra.mxu1 %v5378_v59  ;;  %v6911_v21 = vmax.f32 %v1017_v19, %v1019_v26  ;;  %v5386_v11 = vld [vmem:[%s8244_s3 + $0x124] ss:$8 sps:$4 sm:$0xff]  }
 0x209   :  { %v1348_v22 = vcombine.high %v1060_v46, %v1060_v46  ;;  %v1355_v23 = vrot.slane %v1060_v46, %v6378_v33  ;;  %v6906_v9 = vmax.f32 %v1011_v52, %v1013_v25  ;;  %v1345_v53 = vrot.slane %v1331_v32, %v6378_v33  ;;  %3548 = vmatprep.subr.bf16.mxu1 %v5383_v37 }
 0x20a   :  { %v1346_v6 = vcombine.high %v1338_v14, %v1338_v14  ;;  %v1990_v10 = vsel %vm1597_vm9, %v1338_v14, -inf  ;;  %v1365_v24 = vcombine.high %v6899_v4, %v6899_v4  ;;  %v5384_v14 = vld [vmem:[%s8244_s3 + $0x120] ss:$8 sps:$4 sm:$0xff]  }
 0x20b   :  { %v1991_v59 = vrot.slane %v1990_v10, 4  ;;  %v1362_v48 = vrot.slane %v1348_v22, %v6378_v33  ;;  %v1363_v52 = vcombine.high %v1355_v23, %v1355_v23  ;;  %v2018_v46 = vsel %vm1597_vm9, %v1355_v23, -inf }
 0x20c   :  { %v1347_v1 = vcombine.high %v1345_v53, %v1345_v53  ;;  %v1997_v25 = vsel %vm1597_vm9, %v1346_v6, -inf  ;;  %v2004_v5 = vsel %vm1597_vm9, %v1345_v53, -inf  ;;  %v2019_v19 = vrot.slane %v2018_v46, 4  ;;  %3549 = vmatpush1.bf16.msra.mxu1 %v5381_v13  ;;  %v5389_v53 = vld [vmem:[%s8244_s3 + $0x134] ss:$8 sps:$4 sm:$0xff]  }
 0x20d   :  { %v1992_v7 = vmax.f32 %v1990_v10, %v1991_v59  ;;  %v1998_v26 = vrot.slane %v1997_v25, 4  ;;  %v2005_v32 = vrot.slane %v2004_v5, 4  ;;  %v1364_v37 = vcombine.high %v1362_v48, %v1362_v48  ;;  %3550 = vmatprep.subr.bf16.mxu1 %v5386_v11  ;;  %v5387_v11 = vld [vmem:[%s8244_s3 + $0x130] ss:$8 sps:$4 sm:$0xff]  }
 0x20e   :  { %v2011_v36 = vsel %vm1597_vm9, %v1347_v1, -inf  ;;  %v2020_v22 = vmax.f32 %v2018_v46, %v2019_v19  ;;  %v2025_v23 = vsel %vm1597_vm9, %v1363_v52, -inf  ;;  %v2032_v2 = vsel %vm1597_vm9, %v1362_v48, -inf }
 0x20f   :  { %v1993_v6 = vrot.slane %v1992_v7, 2  ;;  %v1999_v10 = vmax.f32 %v1997_v25, %v1998_v26  ;;  %v2006_v59 = vmax.f32 %v2004_v5, %v2005_v32  ;;  %v2012_v13 = vrot.slane %v2011_v36, 4  ;;  %v5392_v26 = vld [vmem:[%s8244_s3 + $0x144] ss:$8 sps:$4 sm:$0xff]  }
 0x210   :  { %v2021_v47 = vrot.slane %v2020_v22, 2  ;;  %v2026_v20 = vrot.slane %v2025_v23, 4  ;;  %v2033_v18 = vrot.slane %v2032_v2, 4  ;;  %v2039_v35 = vsel %vm1597_vm9, %v1364_v37, -inf  ;;  %3551 = vmatpush1.bf16.msra.mxu1 %v5384_v14 }
 0x211   :  { %v1994_v1 = vmax.f32 %v1992_v7, %v1993_v6  ;;  %v2000_v46 = vrot.slane %v1999_v10, 2  ;;  %v2007_v19 = vrot.slane %v2006_v59, 2  ;;  %v6934_v52 = vmax.f32 %v2011_v36, %v2012_v13  ;;  %3552 = vmatprep.subr.bf16.mxu1 %v5389_v53 }
 0x212   :  { %v2022_v48 = vmax.f32 %v2020_v22, %v2021_v47  ;;  %v2027_v56 = vmax.f32 %v2025_v23, %v2026_v20  ;;  %v2034_v25 = vmax.f32 %v2032_v2, %v2033_v18  ;;  %v2040_v5 = vrot.slane %v2039_v35, 4  ;;  %v5390_v22 = vld [vmem:[%s8244_s3 + $0x140] ss:$8 sps:$4 sm:$0xff]  }
 0x213   :  { %8419 = vst [vmem:[#allocation12_spill] sm:$0xff] %v6934_v52  ;;  %v1995_v32 = vrot.slane %v1994_v1, 1  ;;  %v6942_v7 = vmax.f32 %v1999_v10, %v2000_v46  ;;  %v6944_v37 = vmax.f32 %v2006_v59, %v2007_v19  ;;  %v1372_v18 = vrot.slane %v6899_v4, %v6378_v33 }
 0x214   :  { %v2023_v36 = vrot.slane %v2022_v48, 1  ;;  %v2028_v6 = vrot.slane %v2027_v56, 2  ;;  %v2035_v13 = vrot.slane %v2034_v25, 2  ;;  %v2041_v29 = vmax.f32 %v2039_v35, %v2040_v5  ;;  %3553 = vmatpush1.bf16.msra.mxu1 %v5387_v11  ;;  %v5395_v35 = vld [vmem:[%s8244_s3 + $0x154] ss:$8 sps:$4 sm:$0xff]  }
 0x215   :  { %8420 = vst [vmem:[#allocation13_spill] sm:$0xff] %v6942_v7  ;;  %8421 = vst [vmem:[#allocation19_spill] sm:$0xff] %v6944_v37  ;;  %v1996_v47 = vmax.f32 %v1994_v1, %v1995_v32  ;;  %v1379_v20 = vrot.slane %v1365_v24, %v6378_v33  ;;  %3554 = vmatprep.subr.bf16.mxu1 %v5392_v26  ;;  %v1380_v46 = vcombine.high %v1372_v18, %v1372_v18  ;;  %v5393_v26 = vld [vmem:[%s8244_s3 + $0x150] ss:$8 sps:$4 sm:$0xff]  }
 0x216   :  { %v2024_v23 = vmax.f32 %v2022_v48, %v2023_v36  ;;  %v2029_v53 = vmax.f32 %v2027_v56, %v2028_v6  ;;  %v2036_v10 = vmax.f32 %v2034_v25, %v2035_v13  ;;  %v2042_v59 = vrot.slane %v2041_v29, 2 }
 0x217   :  { %v2326_v1 = vmax.f32 %v1996_v47, 0.0  ;;  %v1381_v19 = vcombine.high %v1379_v20, %v1379_v20  ;;  %v2046_v4 = vsel %vm1597_vm9, %v1372_v18, -inf  ;;  %v2053_v56 = vsel %vm1597_vm9, %v1380_v46, -inf }
 0x218   :  { %v2030_v24 = vrot.slane %v2029_v53, 1  ;;  %v2037_v11 = vrot.slane %v2036_v10, 1  ;;  %v2043_v5 = vmax.f32 %v2041_v29, %v2042_v59  ;;  %v2330_v32 = vmax.f32 %v2024_v23, 0.0  ;;  %3555 = vmatpush1.bf16.msra.mxu1 %v5390_v22  ;;  %v5398_v29 = vld [vmem:[%s8244_s3 + $0x164] ss:$8 sps:$4 sm:$0xff]  }
 0x219   :  { %v6958_v14 = vpack.c.bf16 %v2326_v1, %v2326_v1  ;;  %v2047_v48 = vrot.slane %v2046_v4, 4  ;;  %v2060_v25 = vsel %vm1597_vm9, %v1379_v20, -inf  ;;  %3556 = vmatprep.subr.bf16.mxu1 %v5395_v35  ;;  %v2054_v23 = vrot.slane %v2053_v56, 4  ;;  %v5396_v35 = vld [vmem:[%s8244_s3 + $0x160] ss:$8 sps:$4 sm:$0xff]  }
 0x21a   :  { %v2031_v36 = vmax.f32 %v2029_v53, %v2030_v24  ;;  %v2038_v6 = vmax.f32 %v2036_v10, %v2037_v11  ;;  %v2044_v13 = vrot.slane %v2043_v5, 1  ;;  %v2426_v47 = vpack.c.bf16 %v2330_v32, %v2330_v32 }
 0x21b   :  { %v2048_v18 = vmax.f32 %v2046_v4, %v2047_v48  ;;  %v2061_v59 = vrot.slane %v2060_v25, 4  ;;  %v2067_v1 = vsel %vm1597_vm9, %v1381_v19, -inf  ;;  %v2055_v37 = vmax.f32 %v2053_v56, %v2054_v23 }
 0x21c   :  { %v2045_v20 = vmax.f32 %v2043_v5, %v2044_v13  ;;  %v2331_v22 = vmax.f32 %v2031_v36, 0.0  ;;  %v2332_v46 = vmax.f32 %v2038_v6, 0.0  ;;  %v2566_v2 = vunpack.c.l.b16 %v2426_v47  ;;  %3557 = vmatpush1.bf16.msra.mxu1 %v5393_v26  ;;  %v5401_v5 = vld [vmem:[%s8244_s3 + $0x174] ss:$8 sps:$4 sm:$0xff]  }
 0x21d   :  { %v2049_v52 = vrot.slane %v2048_v18, 2  ;;  %v2062_v53 = vmax.f32 %v2060_v25, %v2061_v59  ;;  %v2068_v10 = vrot.slane %v2067_v1, 4  ;;  %v1382_v19 = vcombine.high %v6906_v9, %v6906_v9  ;;  %3558 = vmatprep.subr.bf16.mxu1 %v5398_v29 }
 0x21e   :  { %v2333_v24 = vmax.f32 %v2045_v20, 0.0  ;;  %v6972_v11 = vpack.c.bf16 %v2331_v22, %v2331_v22  ;;  %v2428_v4 = vpack.c.bf16 %v2332_v46, %v2332_v46  ;;  %v2056_v48 = vrot.slane %v2055_v37, 2 }
 0x21f   :  { %v2050_v32 = vmax.f32 %v2048_v18, %v2049_v52  ;;  %v2063_v56 = vrot.slane %v2062_v53, 2  ;;  %v2069_v25 = vmax.f32 %v2067_v1, %v2068_v10  ;;  %v1389_v13 = vrot.slane %v6906_v9, %v6378_v33  ;;  %v5399_v52 = vld [vmem:[%s8244_s3 + $0x170] ss:$8 sps:$4 sm:$0xff]   ;;  %v5404_v9 = vld [vmem:[%s8244_s3 + $0x184] ss:$8 sps:$4 sm:$0xff]  }
 0x220   :  { %v2429_v26 = vpack.c.bf16 %v2333_v24, %v2333_v24  ;;  %v8294_v36 = vunpack.c.l.b16 %v6972_v11  ;;  %v6980_v6 = vunpack.c.l.b16 %v2428_v4  ;;  %v2057_v23 = vmax.f32 %v2055_v37, %v2056_v48  ;;  %3559 = vmatpush1.bf16.msra.mxu1 %v5396_v35 }
 0x221   :  { %v2051_v47 = vrot.slane %v2050_v32, 1  ;;  %v2064_v59 = vmax.f32 %v2062_v53, %v2063_v56  ;;  %v2070_v29 = vrot.slane %v2069_v25, 2  ;;  %v1396_v20 = vrot.slane %v1382_v19, %v6378_v33  ;;  %3560 = vmatprep.subr.bf16.mxu1 %v5401_v5  ;;  %v5402_v5 = vld [vmem:[%s8244_s3 + $0x180] ss:$8 sps:$4 sm:$0xff]  }
 0x222   :  { %v6987_v18 = vunpack.c.l.b16 %v2429_v26  ;;  %v6992_v1 = vsel %vm2590_vm10, %v8294_v36, %v2566_v2  ;;  %v1397_v22 = vcombine.high %v1389_v13, %v1389_v13  ;;  %v2058_v46 = vrot.slane %v2057_v23, 1 }
 0x223   :  { %v2052_v37 = vmax.f32 %v2050_v32, %v2051_v47  ;;  %v2065_v53 = vrot.slane %v2064_v59, 1  ;;  %v2071_v10 = vmax.f32 %v2069_v25, %v2070_v29  ;;  %v1398_v35 = vcombine.high %v1396_v20, %v1396_v20 }
 0x224   :  { %v2074_v24 = vsel %vm1597_vm9, %v1389_v13, -inf  ;;  %v2081_v4 = vsel %vm1597_vm9, %v1397_v22, -inf  ;;  %v2088_v2 = vsel %vm1597_vm9, %v1396_v20, -inf  ;;  %v2059_v48 = vmax.f32 %v2057_v23, %v2058_v46  ;;  %3561 = vmatpush1.bf16.msra.mxu1 %v5399_v52  ;;  %v5407_v13 = vld [vmem:[%s8244_s3 + $0x194] ss:$8 sps:$4 sm:$0xff]  }
 0x225   :  { %v2066_v56 = vmax.f32 %v2064_v59, %v2065_v53  ;;  %v2072_v19 = vrot.slane %v2071_v10, 1  ;;  %v2334_v26 = vmax.f32 %v2052_v37, 0.0  ;;  %v2075_v32 = vrot.slane %v2074_v24, 4  ;;  %3562 = vmatprep.subr.bf16.mxu1 %v5404_v9  ;;  %v5405_v9 = vld [vmem:[%s8244_s3 + $0x190] ss:$8 sps:$4 sm:$0xff]  }
 0x226   :  { %v2082_v47 = vrot.slane %v2081_v4, 4  ;;  %v2089_v36 = vrot.slane %v2088_v2, 4  ;;  %v2095_v25 = vsel %vm1597_vm9, %v1398_v35, -inf  ;;  %v2335_v23 = vmax.f32 %v2059_v48, 0.0 }
 0x227   :  { %v2073_v29 = vmax.f32 %v2071_v10, %v2072_v19  ;;  %v2336_v59 = vmax.f32 %v2066_v56, 0.0  ;;  %v2430_v20 = vpack.c.bf16 %v2334_v26, %v2334_v26  ;;  %v2076_v22 = vmax.f32 %v2074_v24, %v2075_v32 }
 0x228   :  { %v2083_v52 = vmax.f32 %v2081_v4, %v2082_v47  ;;  %v2090_v37 = vmax.f32 %v2088_v2, %v2089_v36  ;;  %v2096_v46 = vrot.slane %v2095_v25, 4  ;;  %v2431_v7 = vpack.c.bf16 %v2335_v23, %v2335_v23  ;;  %3563 = vmatpush1.bf16.msra.mxu1 %v5402_v5  ;;  %v5410_v36 = vld [vmem:[%s8244_s3 + $0x1a4] ss:$8 sps:$4 sm:$0xff]  }
 0x229   :  { %v2337_v53 = vmax.f32 %v2073_v29, 0.0  ;;  %v2432_v43 = vpack.c.bf16 %v2336_v59, %v2336_v59  ;;  %v7008_v38 = vunpack.c.l.b16 %v2430_v20  ;;  %v2077_v35 = vrot.slane %v2076_v22, 2  ;;  %3564 = vmatprep.subr.bf16.mxu1 %v5407_v13 }
 0x22a   :  { %v2084_v30 = vrot.slane %v2083_v52, 2  ;;  %v2091_v10 = vrot.slane %v2090_v37, 2  ;;  %v7013_v48 = vmax.f32 %v2095_v25, %v2096_v46  ;;  %v7018_v4 = vunpack.c.l.b16 %v2431_v7 }
 0x22b   :  { %v2433_v24 = vpack.c.bf16 %v2337_v53, %v2337_v53  ;;  %v7020_v2 = vunpack.c.l.b16 %v2432_v43  ;;  %v1399_v56 = vcombine.high %v6911_v21, %v6911_v21  ;;  %v2078_v19 = vmax.f32 %v2076_v22, %v2077_v35  ;;  %v8425_v43 = vld [vmem:[#allocation31_spill] sm:$0xff] }
 0x22c   :  { %8422 = vst [vmem:[#allocation20_spill] sm:$0xff] %v7013_v48  ;;  %v7024_v26 = vmax.f32 %v2083_v52, %v2084_v30  ;;  %v7026_v5 = vmax.f32 %v2090_v37, %v2091_v10  ;;  %v1406_v25 = vrot.slane %v6911_v21, %v6378_v33  ;;  %v1023_v13 = vadd.f32 %v8425_v43, %v6370_v57  ;;  %v5408_v30 = vld [vmem:[%s8244_s3 + $0x1a0] ss:$8 sps:$4 sm:$0xff]   ;;  %v5413_v21 = vld [vmem:[%s8244_s3 + $0x1b4] ss:$8 sps:$4 sm:$0xff]  }
 0x22d   :  { %v7029_v47 = vunpack.c.l.b16 %v2433_v24  ;;  %v1413_v7 = vrot.slane %v1399_v56, %v6378_v33  ;;  %3565 = vmatpush1.bf16.msra.mxu1 %v5405_v9  ;;  %v2079_v29 = vrot.slane %v2078_v19, 1  ;;  %v7041_v59 = vunpack.c.l.b16 %v6668_v50 }
 0x22e   :  { %8423 = vst [vmem:[#allocation23_spill] sm:$0xff] %v7024_v26  ;;  %8424 = vst [vmem:[#allocation24_spill] sm:$0xff] %v7026_v5  ;;  %v7044_v20 = vunpack.c.l.b16 %v6742_v8  ;;  %3566 = vmatprep.subr.bf16.mxu1 %v5410_v36  ;;  %v1414_v22 = vcombine.high %v1406_v25, %v1406_v25  ;;  %v2102_v37 = vsel %vm1597_vm9, %v1406_v25, -inf  ;;  %v1064_v50 = vmax.f32 %v6903_v40, %v1023_v13  ;;  %v5411_v40 = vld [vmem:[%s8244_s3 + $0x1b0] ss:$8 sps:$4 sm:$0xff]  }
 0x22f   :  { %8426 = vst [vmem:[#allocation25_spill] sm:$0xff] %v7041_v59  ;;  %v1415_v52 = vcombine.high %v1413_v7, %v1413_v7  ;;  %v2116_v46 = vsel %vm1597_vm9, %v1413_v7, -inf  ;;  %v2080_v53 = vmax.f32 %v2078_v19, %v2079_v29  ;;  %v2103_v9 = vrot.slane %v2102_v37, 4 }
 0x230   :  { %8427 = vst [vmem:[#allocation26_spill] sm:$0xff] %v7044_v20  ;;  %v2117_v35 = vrot.slane %v2116_v46, 4  ;;  %v2109_v10 = vsel %vm1597_vm9, %v1414_v22, -inf  ;;  %v8428_v36 = vunpack.c.l.b16 %v6612_v15  ;;  %v8429_v56 = vunpack.c.l.b16 %v6674_v41  ;;  %v5416_v15 = vld [vmem:[%s8244_s3 + $0x1c4] ss:$8 sps:$4 sm:$0xff]  }
 0x231   :  { %v2123_v8 = vsel %vm1597_vm9, %v1415_v52, -inf  ;;  %3567 = vmatpush1.bf16.msra.mxu1 %v5408_v30  ;;  %v2338_v19 = vmax.f32 %v2080_v53, 0.0  ;;  %v2104_v7 = vmax.f32 %v2102_v37, %v2103_v9  ;;  %v2110_v43 = vrot.slane %v2109_v10, 4 }
 0x232   :  { %v2683_v24 = vsel %vm2590_vm10, %v6615_v58, %v8428_v36  ;;  %v7062_v25 = vsel %vm2590_vm10, %v6679_v27, %v8429_v56  ;;  %v2118_v13 = vmax.f32 %v2116_v46, %v2117_v35  ;;  %3568 = vmatprep.subr.bf16.mxu1 %v5413_v21  ;;  %v2124_v29 = vrot.slane %v2123_v8, 4 }
 0x233   :  { %v1416_v41 = vcombine.high %v1064_v50, %v1064_v50  ;;  %v1423_v22 = vrot.slane %v1064_v50, %v6378_v33  ;;  %v7073_v30 = vsel %vm2592_vm11, %v6621_v39, %v2683_v24  ;;  %v7075_v52 = vpack.c.bf16 %v2338_v19, %v2338_v19  ;;  %v5414_v50 = vld [vmem:[%s8244_s3 + $0x1c0] ss:$8 sps:$4 sm:$0xff]  }
 0x234   :  { %v2105_v36 = vrot.slane %v2104_v7, 2  ;;  %v2111_v53 = vmax.f32 %v2109_v10, %v2110_v43  ;;  %v2119_v37 = vrot.slane %v2118_v13, 2  ;;  %v2125_v9 = vmax.f32 %v2123_v8, %v2124_v29  ;;  %v5419_v10 = vld [vmem:[%s8244_s3 + $0x1d4] ss:$8 sps:$4 sm:$0xff]  }
 0x235   :  { %v1430_v21 = vrot.slane %v1416_v41, %v6378_v33  ;;  %v1431_v46 = vcombine.high %v1423_v22, %v1423_v22  ;;  %v2130_v35 = vsel %vm1597_vm9, %v1423_v22, -inf  ;;  %3569 = vmatpush1.bf16.msra.mxu1 %v5411_v40 }
 0x236   :  { %v2106_v56 = vmax.f32 %v2104_v7, %v2105_v36  ;;  %v2112_v32 = vrot.slane %v2111_v53, 2  ;;  %v2120_v24 = vmax.f32 %v2118_v13, %v2119_v37  ;;  %v2131_v23 = vrot.slane %v2130_v35, 4  ;;  %3570 = vmatprep.subr.bf16.mxu1 %v5416_v15  ;;  %v5417_v15 = vld [vmem:[%s8244_s3 + $0x1d0] ss:$8 sps:$4 sm:$0xff]  }
 0x237   :  { %v2126_v8 = vrot.slane %v2125_v9, 2  ;;  %v1432_v19 = vcombine.high %v1430_v21, %v1430_v21  ;;  %v2137_v43 = vsel %vm1597_vm9, %v1431_v46, -inf  ;;  %v2144_v29 = vsel %vm1597_vm9, %v1430_v21, -inf }
 0x238   :  { %v2107_v40 = vrot.slane %v2106_v56, 1  ;;  %v2113_v41 = vmax.f32 %v2111_v53, %v2112_v32  ;;  %v2121_v22 = vrot.slane %v2120_v24, 1  ;;  %v2132_v48 = vmax.f32 %v2130_v35, %v2131_v23  ;;  %v5422_v32 = vld [vmem:[%s8244_s3 + $0x1e4] ss:$8 sps:$4 sm:$0xff]  }
 0x239   :  { %v2127_v5 = vmax.f32 %v2125_v9, %v2126_v8  ;;  %v2138_v7 = vrot.slane %v2137_v43, 4  ;;  %v2145_v36 = vrot.slane %v2144_v29, 4  ;;  %v2151_v13 = vsel %vm1597_vm9, %v1432_v19, -inf  ;;  %3571 = vmatpush1.bf16.msra.mxu1 %v5414_v50 }
 0x23a   :  { %v2108_v37 = vmax.f32 %v2106_v56, %v2107_v40  ;;  %v2114_v26 = vrot.slane %v2113_v41, 1  ;;  %v2122_v16 = vmax.f32 %v2120_v24, %v2121_v22  ;;  %v2133_v46 = vrot.slane %v2132_v48, 2  ;;  %3572 = vmatprep.subr.bf16.mxu1 %v5419_v10  ;;  %v5420_v24 = vld [vmem:[%s8244_s3 + $0x1e0] ss:$8 sps:$4 sm:$0xff]  }
 0x23b   :  { %v2128_v23 = vrot.slane %v2127_v5, 1  ;;  %v2139_v53 = vmax.f32 %v2137_v43, %v2138_v7  ;;  %v2146_v9 = vmax.f32 %v2144_v29, %v2145_v36  ;;  %v2152_v21 = vrot.slane %v2151_v13, 4 }
 0x23c   :  { %v2115_v35 = vmax.f32 %v2113_v41, %v2114_v26  ;;  %v2342_v8 = vmax.f32 %v2108_v37, 0.0  ;;  %v2344_v50 = vmax.f32 %v2122_v16, 0.0  ;;  %v2134_v19 = vmax.f32 %v2132_v48, %v2133_v46  ;;  %v5425_v26 = vld [vmem:[%s8244_s3 + $0x1f4] ss:$8 sps:$4 sm:$0xff]  }
 0x23d   :  { %v2129_v0 = vmax.f32 %v2127_v5, %v2128_v23  ;;  %v2140_v60 = vrot.slane %v2139_v53, 2  ;;  %v2147_v28 = vrot.slane %v2146_v9, 2  ;;  %v2153_v56 = vmax.f32 %v2151_v13, %v2152_v21  ;;  %3573 = vmatpush1.bf16.msra.mxu1 %v5417_v15  ;;  %v5428_v23 = vld [vmem:[%s8244_s3 + $0x204] ss:$8 sps:$4 sm:$0xff]  }
 0x23e   :  { %v2343_v10 = vmax.f32 %v2115_v35, 0.0  ;;  %v2438_v40 = vpack.c.bf16 %v2342_v8, %v2342_v8  ;;  %v2440_v22 = vpack.c.bf16 %v2344_v50, %v2344_v50  ;;  %v2135_v45 = vrot.slane %v2134_v19, 1  ;;  %3574 = vmatprep.subr.bf16.mxu1 %v5422_v32  ;;  %v5423_v32 = vld [vmem:[%s8244_s3 + $0x1f0] ss:$8 sps:$4 sm:$0xff]  }
 0x23f   :  { %v2345_v16 = vmax.f32 %v2129_v0, 0.0  ;;  %v2141_v48 = vmax.f32 %v2139_v53, %v2140_v60  ;;  %v2148_v5 = vmax.f32 %v2146_v9, %v2147_v28  ;;  %v2154_v43 = vrot.slane %v2153_v56, 2 }
 0x240   :  { %v7100_v29 = vpack.c.bf16 %v2343_v10, %v2343_v10  ;;  %v2574_v41 = vunpack.c.l.b16 %v2438_v40  ;;  %v7102_v7 = vunpack.c.l.b16 %v2440_v22  ;;  %v2136_v36 = vmax.f32 %v2134_v19, %v2135_v45  ;;  %v8431_v40 = vld [vmem:[#allocation34_spill] sm:$0xff] }
 0x241   :  { %v2441_v13 = vpack.c.bf16 %v2345_v16, %v2345_v16  ;;  %v2142_v15 = vrot.slane %v2141_v48, 1  ;;  %v2149_v37 = vrot.slane %v2148_v5, 1  ;;  %v2155_v46 = vmax.f32 %v2153_v56, %v2154_v43  ;;  %3575 = vmatpush1.bf16.msra.mxu1 %v5420_v24  ;;  %v8432_v16 = vld [vmem:[#allocation35_spill] sm:$0xff] }
 0x242   :  { %v8316_v0 = vunpack.c.l.b16 %v7100_v29  ;;  %v2346_v60 = vmax.f32 %v2136_v36, 0.0  ;;  %v2685_v28 = vsel %vm2594_vm12, %v6619_v62, %v7073_v30  ;;  %v2691_v45 = vsel %vm2592_vm11, %v6688_v49, %v7062_v25  ;;  %3576 = vmatprep.subr.bf16.mxu1 %v5425_v26  ;;  %v8430_v25 = vld [vmem:[#allocation44_spill] sm:$0xff] }
 0x243   :  { %v7117_v53 = vunpack.c.l.b16 %v2441_v13  ;;  %v2143_v9 = vmax.f32 %v2141_v48, %v2142_v15  ;;  %v2150_v21 = vmax.f32 %v2148_v5, %v2149_v37  ;;  %v2156_v35 = vrot.slane %v2155_v46, 1  ;;  %v8433_v5 = vld [vmem:[#allocation45_spill] sm:$0xff] }
 0x244   :  { %v7122_v8 = vsel %vm2590_vm10, %v8316_v0, %v2574_v41  ;;  %v2442_v30 = vpack.c.bf16 %v2346_v60, %v2346_v60  ;;  %v2686_v50 = vsel %vm2596_vm13, %v6631_v44, %v2685_v28  ;;  %v2692_v19 = vsel %vm2594_vm12, %v8430_v25, %v2691_v45  ;;  %v8434_v41 = vld [vmem:[#allocation33_spill] sm:$0xff]  ;;  %v8436_v45 = vld [vmem:[#allocation42_spill] sm:$0xff] }
 0x245   :  { %v2157_v56 = vmax.f32 %v2155_v46, %v2156_v35  ;;  %v2347_v24 = vmax.f32 %v2143_v9, 0.0  ;;  %v2348_v10 = vmax.f32 %v2150_v21, 0.0  ;;  %v2687_v22 = vsel %vm2598_vm14, %v8431_v40, %v2686_v50  ;;  %3577 = vmatpush1.bf16.msra.mxu1 %v5423_v32  ;;  %v8435_v32 = vld [vmem:[#allocation46_spill] sm:$0xff]  ;;  %v8437_v21 = vld [vmem:[#allocation39_spill] sm:$0xff] }
 0x246   :  { %v7130_v26 = vunpack.c.l.b16 %v2442_v30  ;;  %v2688_v48 = vsel %vm2600_vm15, %v8432_v16, %v2687_v22  ;;  %v2693_v43 = vsel %vm2596_vm13, %v8433_v5, %v2692_v19  ;;  %v2612_v36 = vsel %vm2592_vm11, %v6615_v58, %v8434_v41  ;;  %3619 = vmatprep.subr.bf16.mxu1 %v5428_v23  ;;  %v8438_v19 = vld [vmem:[#allocation47_spill] sm:$0xff] }
 0x247   :  { %v2349_v13 = vmax.f32 %v2157_v56, 0.0  ;;  %v2443_v15 = vpack.c.bf16 %v2347_v24, %v2347_v24  ;;  %v2444_v37 = vpack.c.bf16 %v2348_v10, %v2348_v10  ;;  %v2689_v46 = vsel %vm2602_vm0, %v7041_v59, %v2688_v48  ;;  %v8439_v48 = vld [vmem:[#allocation41_spill] sm:$0xff] }
 0x248   :  { %v2694_v60 = vsel %vm2598_vm14, %v8435_v32, %v2693_v43  ;;  %v2613_v28 = vsel %vm2594_vm12, %v6621_v39, %v2612_v36  ;;  %v2619_v9 = vsel %vm2592_vm11, %v6679_v27, %v8436_v45  ;;  %v1027_v35 = vadd.f32 %v8437_v21, %v6366_v3  ;;  %v8440_v45 = vld [vmem:[#allocation50_spill] sm:$0xff] }
 0x249   :  { %v2445_v23 = vpack.c.bf16 %v2349_v13, %v2349_v13  ;;  %v7150_v30 = vunpack.c.l.b16 %v2443_v15  ;;  %v7152_v50 = vunpack.c.l.b16 %v2444_v37  ;;  %v2695_v56 = vsel %vm2600_vm15, %v8438_v19, %v2694_v60 }
 0x24a   :  { %v2696_v24 = vsel %vm2602_vm0, %v7044_v20, %v2695_v56  ;;  %v2614_v10 = vsel %vm2596_vm13, %v6619_v62, %v2613_v28  ;;  %v2620_v22 = vsel %vm2594_vm12, %v6688_v49, %v2619_v9  ;;  %v1029_v43 = vadd.f32 %v8439_v48, %v6370_v57 }
 0x24b   :  { %v7164_v41 = vunpack.c.l.b16 %v2445_v23  ;;  %v3039_v36 = vpack.c.b16 %v2696_v24, %v2689_v46  ;;  %v2615_v13 = vsel %vm2598_vm14, %v6631_v44, %v2614_v10  ;;  %v2621_v15 = vsel %vm2596_vm13, %v8430_v25, %v2620_v22  ;;  %v8441_v23 = vld [vmem:[#allocation52_spill] sm:$0xff]  ;;  %v8442_v24 = vld [vmem:[#allocation53_spill] sm:$0xff] }
 0x24c   :  { %v2616_v37 = vsel %vm2600_vm15, %v8431_v40, %v2615_v13  ;;  %v2622_v60 = vsel %vm2598_vm14, %v8433_v5, %v2621_v15  ;;  %v1065_v28 = vmax.f32 %v1027_v35, %v1029_v43  ;;  %v1031_v9 = vadd.f32 %v8440_v45, %v6366_v3  ;;  %v8443_v43 = vld [vmem:[#allocation54_spill] sm:$0xff] }
 0x24d   :  { %3515 = vmatprep.mubr.bf16.mxu1 %v3039_v36  ;;  %v2617_v46 = vsel %vm2602_vm0, %v8432_v16, %v2616_v37  ;;  %v2623_v21 = vsel %vm2600_vm15, %v8435_v32, %v2622_v60  ;;  %v1033_v56 = vadd.f32 %v8441_v23, %v6370_v57  ;;  %v1037_v10 = vadd.f32 %v8442_v24, %v6366_v3 }
 0x24e   :  { %v2624_v22 = vsel %vm2602_vm0, %v8438_v19, %v2623_v21  ;;  %v1433_v35 = vcombine.high %v1065_v28, %v1065_v28  ;;  %v1440_v48 = vrot.slane %v1065_v28, %v6378_v33  ;;  %v1039_v36 = vadd.f32 %v8443_v43, %v6370_v57 }
 0x24f   :  { %v3038_v13 = vpack.c.b16 %v2624_v22, %v2617_v46  ;;  %v1066_v15 = vmax.f32 %v1031_v9, %v1033_v56  ;;  %v1041_v37 = vadd.f32 %v6752_v34, %v6366_v3  ;;  %v1043_v60 = vadd.f32 %v6754_v42, %v6370_v57 }
 0x250   :  { %v1447_v45 = vrot.slane %v1433_v35, %v6378_v33  ;;  %v1448_v23 = vcombine.high %v1440_v48, %v1440_v48  ;;  %v2158_v24 = vsel %vm1597_vm9, %v1440_v48, -inf  ;;  %v1067_v21 = vmax.f32 %v1037_v10, %v1039_v36 }
 0x251   :  { %3516 = vmatmul.mubr.bf16.gmra.mrb[4].mxu1 %v3038_v13  ;;  %v2159_v0 = vrot.slane %v2158_v24, 4  ;;  %v1450_v28 = vcombine.high %v1066_v15, %v1066_v15  ;;  %v1457_v20 = vrot.slane %v1066_v15, %v6378_v33  ;;  %v7196_v43 = vmax.f32 %v1041_v37, %v1043_v60 }
 0x252   :  { %v1449_v9 = vcombine.high %v1447_v45, %v1447_v45  ;;  %v2165_v46 = vsel %vm1597_vm9, %v1448_v23, -inf  ;;  %v2172_v3 = vsel %vm1597_vm9, %v1447_v45, -inf  ;;  %v1467_v34 = vcombine.high %v1067_v21, %v1067_v21 }
 0x253   :  { %v2160_v57 = vmax.f32 %v2158_v24, %v2159_v0  ;;  %v2166_v42 = vrot.slane %v2165_v46, 4  ;;  %v2173_v56 = vrot.slane %v2172_v3, 4  ;;  %v1464_v22 = vrot.slane %v1450_v28, %v6378_v33 }
 0x254   :  { %v2179_v10 = vsel %vm1597_vm9, %v1449_v9, -inf  ;;  %v1465_v35 = vcombine.high %v1457_v20, %v1457_v20  ;;  %v2186_v48 = vsel %vm1597_vm9, %v1457_v20, -inf  ;;  %v1474_v36 = vrot.slane %v1067_v21, %v6378_v33 }
 0x255   :  { %v2161_v13 = vrot.slane %v2160_v57, 2  ;;  %v2167_v15 = vmax.f32 %v2165_v46, %v2166_v42  ;;  %v2174_v37 = vmax.f32 %v2172_v3, %v2173_v56  ;;  %v2180_v60 = vrot.slane %v2179_v10, 4 }
 0x256   :  { %v1466_v23 = vcombine.high %v1464_v22, %v1464_v22  ;;  %v2187_v19 = vrot.slane %v2186_v48, 4  ;;  %v2193_v45 = vsel %vm1597_vm9, %v1465_v35, -inf  ;;  %v2200_v0 = vsel %vm1597_vm9, %v1464_v22, -inf }
 0x257   :  { %v2162_v24 = vmax.f32 %v2160_v57, %v2161_v13  ;;  %v2168_v27 = vrot.slane %v2167_v15, 2  ;;  %v2175_v28 = vrot.slane %v2174_v37, 2  ;;  %v7206_v32 = vmax.f32 %v2179_v10, %v2180_v60 }
 0x258   :  { %v2188_v9 = vmax.f32 %v2186_v48, %v2187_v19  ;;  %v2194_v58 = vrot.slane %v2193_v45, 4  ;;  %v2201_v20 = vrot.slane %v2200_v0, 4  ;;  %v2207_v21 = vsel %vm1597_vm9, %v1466_v23, -inf }
 0x259   :  { %8444 = vst [vmem:[#allocation28_spill] sm:$0xff] %v7206_v32  ;;  %v2163_v5 = vrot.slane %v2162_v24, 1  ;;  %v7209_v46 = vmax.f32 %v2167_v15, %v2168_v27  ;;  %v7211_v3 = vmax.f32 %v2174_v37, %v2175_v28  ;;  %v2208_v57 = vrot.slane %v2207_v21, 4 }
 0x25a   :  { %v2189_v56 = vrot.slane %v2188_v9, 2  ;;  %v2195_v35 = vmax.f32 %v2193_v45, %v2194_v58  ;;  %v2202_v22 = vmax.f32 %v2200_v0, %v2201_v20  ;;  %v1481_v19 = vrot.slane %v1467_v34, %v6378_v33 }
 0x25b   :  { %8445 = vst [vmem:[#allocation29_spill] sm:$0xff] %v7209_v46  ;;  %8446 = vst [vmem:[#allocation30_spill] sm:$0xff] %v7211_v3  ;;  %v2164_v13 = vmax.f32 %v2162_v24, %v2163_v5  ;;  %v1482_v48 = vcombine.high %v1474_v36, %v1474_v36  ;;  %v2209_v49 = vmax.f32 %v2207_v21, %v2208_v57  ;;  %v2214_v37 = vsel %vm1597_vm9, %v1474_v36, -inf }
 0x25c   :  { %v2190_v60 = vmax.f32 %v2188_v9, %v2189_v56  ;;  %v2196_v25 = vrot.slane %v2195_v35, 2  ;;  %v2203_v23 = vrot.slane %v2202_v22, 2  ;;  %v1483_v15 = vcombine.high %v1481_v19, %v1481_v19 }
 0x25d   :  { %v2350_v27 = vmax.f32 %v2164_v13, 0.0  ;;  %v2221_v28 = vsel %vm1597_vm9, %v1482_v48, -inf  ;;  %v2210_v0 = vrot.slane %v2209_v49, 2  ;;  %v2215_v24 = vrot.slane %v2214_v37, 4 }
 0x25e   :  { %v2191_v42 = vrot.slane %v2190_v60, 1  ;;  %v2197_v58 = vmax.f32 %v2195_v35, %v2196_v25  ;;  %v2204_v45 = vmax.f32 %v2202_v22, %v2203_v23  ;;  %v2222_v20 = vrot.slane %v2221_v28, 4 }
 0x25f   :  { %v7218_v5 = vpack.c.bf16 %v2350_v27, %v2350_v27  ;;  %v2228_v34 = vsel %vm1597_vm9, %v1481_v19, -inf  ;;  %v2211_v21 = vmax.f32 %v2209_v49, %v2210_v0  ;;  %v2216_v57 = vmax.f32 %v2214_v37, %v2215_v24 }
 0x260   :  { %v2192_v9 = vmax.f32 %v2190_v60, %v2191_v42  ;;  %v2198_v56 = vrot.slane %v2197_v58, 1  ;;  %v2205_v10 = vrot.slane %v2204_v45, 1  ;;  %v2223_v13 = vmax.f32 %v2221_v28, %v2222_v20 }
 0x261   :  { %v2229_v32 = vrot.slane %v2228_v34, 4  ;;  %v2235_v36 = vsel %vm1597_vm9, %v1483_v15, -inf  ;;  %v2212_v25 = vrot.slane %v2211_v21, 1  ;;  %v2217_v22 = vrot.slane %v2216_v57, 2 }
 0x262   :  { %v2199_v48 = vmax.f32 %v2197_v58, %v2198_v56  ;;  %v2206_v3 = vmax.f32 %v2204_v45, %v2205_v10  ;;  %v2354_v35 = vmax.f32 %v2192_v9, 0.0  ;;  %v2224_v23 = vrot.slane %v2223_v13, 2 }
 0x263   :  { %v2230_v27 = vmax.f32 %v2228_v34, %v2229_v32  ;;  %v2236_v46 = vrot.slane %v2235_v36, 4  ;;  %v2213_v59 = vmax.f32 %v2211_v21, %v2212_v25  ;;  %v2218_v60 = vmax.f32 %v2216_v57, %v2217_v22 }
 0x264   :  { %v2355_v16 = vmax.f32 %v2199_v48, 0.0  ;;  %v2356_v19 = vmax.f32 %v2206_v3, 0.0  ;;  %v2450_v42 = vpack.c.bf16 %v2354_v35, %v2354_v35  ;;  %v2225_v40 = vmax.f32 %v2223_v13, %v2224_v23 }
 0x265   :  { %v2231_v49 = vrot.slane %v2230_v27, 2  ;;  %v2237_v37 = vmax.f32 %v2235_v36, %v2236_v46  ;;  %v2357_v28 = vmax.f32 %v2213_v59, 0.0  ;;  %v2219_v10 = vrot.slane %v2218_v60, 1 }
 0x266   :  { %v7222_v0 = vpack.c.bf16 %v2355_v16, %v2355_v16  ;;  %v2452_v15 = vpack.c.bf16 %v2356_v19, %v2356_v19  ;;  %v2582_v58 = vunpack.c.l.b16 %v2450_v42  ;;  %v2226_v45 = vrot.slane %v2225_v40, 1 }
 0x267   :  { %v2232_v24 = vmax.f32 %v2230_v27, %v2231_v49  ;;  %v2238_v20 = vrot.slane %v2237_v37, 2  ;;  %v2453_v9 = vpack.c.bf16 %v2357_v28, %v2357_v28  ;;  %v1484_v3 = vcombine.high %v7196_v43, %v7196_v43 }
 0x268   :  { %v2583_v32 = vunpack.c.l.b16 %v7222_v0  ;;  %v7225_v34 = vunpack.c.l.b16 %v2452_v15  ;;  %v2220_v56 = vmax.f32 %v2218_v60, %v2219_v10  ;;  %v2227_v21 = vmax.f32 %v2225_v40, %v2226_v45 }
 0x269   :  { %v2233_v46 = vrot.slane %v2232_v24, 1  ;;  %v2239_v59 = vmax.f32 %v2237_v37, %v2238_v20  ;;  %v7229_v16 = vunpack.c.l.b16 %v2453_v9  ;;  %v1491_v13 = vrot.slane %v7196_v43, %v6378_v33 }
 0x26a   :  { %v7234_v57 = vsel %vm2590_vm10, %v2583_v32, %v2582_v58  ;;  %v1498_v36 = vrot.slane %v1484_v3, %v6378_v33  ;;  %v2358_v35 = vmax.f32 %v2220_v56, 0.0  ;;  %v2359_v22 = vmax.f32 %v2227_v21, 0.0 }
 0x26b   :  { %v2234_v48 = vmax.f32 %v2232_v24, %v2233_v46  ;;  %v2240_v25 = vrot.slane %v2239_v59, 1  ;;  %v1499_v23 = vcombine.high %v1491_v13, %v1491_v13  ;;  %v2242_v27 = vsel %vm1597_vm9, %v1491_v13, -inf }
 0x26c   :  { %v1500_v40 = vcombine.high %v1498_v36, %v1498_v36  ;;  %v2256_v19 = vsel %vm1597_vm9, %v1498_v36, -inf  ;;  %v2454_v49 = vpack.c.bf16 %v2358_v35, %v2358_v35  ;;  %v2455_v37 = vpack.c.bf16 %v2359_v22, %v2359_v22 }
 0x26d   :  { %v2241_v42 = vmax.f32 %v2239_v59, %v2240_v25  ;;  %v2360_v60 = vmax.f32 %v2234_v48, 0.0  ;;  %v2243_v28 = vrot.slane %v2242_v27, 4  ;;  %v2249_v15 = vsel %vm1597_vm9, %v1499_v23, -inf }
 0x26e   :  { %v2257_v43 = vrot.slane %v2256_v19, 4  ;;  %v2263_v58 = vsel %vm1597_vm9, %v1500_v40, -inf  ;;  %v7243_v24 = vunpack.c.l.b16 %v2454_v49  ;;  %v7245_v20 = vunpack.c.l.b16 %v2455_v37 }
 0x26f   :  { %v2361_v10 = vmax.f32 %v2241_v42, 0.0  ;;  %v2456_v45 = vpack.c.bf16 %v2360_v60, %v2360_v60  ;;  %v2244_v9 = vmax.f32 %v2242_v27, %v2243_v28  ;;  %v2250_v3 = vrot.slane %v2249_v15, 4 }
 0x270   :  { %v2258_v56 = vmax.f32 %v2256_v19, %v2257_v43  ;;  %v2264_v21 = vrot.slane %v2263_v58, 4  ;;  %v7250_v13 = vunpack.c.l.b16 %v6958_v14  ;;  %v7253_v36 = vunpack.c.l.b16 %v7075_v52 }
 0x271   :  { %v2457_v46 = vpack.c.bf16 %v2361_v10, %v2361_v10  ;;  %v7247_v59 = vunpack.c.l.b16 %v2456_v45  ;;  %v2245_v48 = vrot.slane %v2244_v9, 2  ;;  %v2251_v25 = vmax.f32 %v2249_v15, %v2250_v3 }
 0x272   :  { %v2259_v35 = vrot.slane %v2258_v56, 2  ;;  %v7255_v22 = vmax.f32 %v2263_v58, %v2264_v21  ;;  %v8448_v40 = vunpack.c.l.b16 %v6756_v55  ;;  %v8449_v19 = vunpack.c.l.b16 %v6972_v11  ;;  %v8475_v21 = vld [vmem:[#allocation37_spill] sm:$0xff] }
 0x273   :  { %v7257_v23 = vunpack.c.l.b16 %v2457_v46  ;;  %v2626_v52 = vsel %vm2592_vm11, %v6759_v12, %v6767_v61  ;;  %v2246_v42 = vmax.f32 %v2244_v9, %v2245_v48  ;;  %v2252_v60 = vrot.slane %v2251_v25, 2 }
 0x274   :  { %8447 = vst [vmem:[#allocation31_spill] sm:$0xff] %v7255_v22  ;;  %v2697_v27 = vsel %vm2590_vm10, %v6759_v12, %v8448_v40  ;;  %v2704_v14 = vsel %vm2590_vm10, %v6980_v6, %v8449_v19  ;;  %v7270_v49 = vmax.f32 %v2258_v56, %v2259_v35  ;;  %v2627_v11 = vsel %vm2594_vm12, %v6762_v63, %v2626_v52 }
 0x275   :  { %v2698_v55 = vsel %vm2592_vm11, %v6762_v63, %v2697_v27  ;;  %v2705_v28 = vsel %vm2592_vm11, %v6987_v18, %v2704_v14  ;;  %v2633_v15 = vsel %vm2592_vm11, %v6980_v6, %v6992_v1  ;;  %v2247_v61 = vrot.slane %v2246_v42, 1 }
 0x276   :  { %v7282_v43 = vmax.f32 %v2251_v25, %v2252_v60  ;;  %v2699_v58 = vsel %vm2594_vm12, %v6773_v54, %v2698_v55  ;;  %v2706_v10 = vsel %vm2594_vm12, %v7008_v38, %v2705_v28  ;;  %v2628_v3 = vsel %vm2596_vm13, %v6773_v54, %v2627_v11 }
 0x277   :  { %v2700_v45 = vsel %vm2596_vm13, %v6782_v17, %v2699_v58  ;;  %v2707_v9 = vsel %vm2596_vm13, %v7018_v4, %v2706_v10  ;;  %v2634_v1 = vsel %vm2594_vm12, %v6987_v18, %v2633_v15  ;;  %v2248_v56 = vmax.f32 %v2246_v42, %v2247_v61 }
 0x278   :  { %v2701_v46 = vsel %vm2598_vm14, %v6784_v31, %v2700_v45  ;;  %v2708_v48 = vsel %vm2598_vm14, %v7020_v2, %v2707_v9  ;;  %v2629_v40 = vsel %vm2598_vm14, %v6782_v17, %v2628_v3  ;;  %v2635_v27 = vsel %vm2596_vm13, %v7008_v38, %v2634_v1 }
 0x279   :  { %v2702_v25 = vsel %vm2600_vm15, %v6786_v51, %v2701_v46  ;;  %v2709_v35 = vsel %vm2600_vm15, %v7029_v47, %v2708_v48  ;;  %v2362_v19 = vmax.f32 %v2248_v56, 0.0  ;;  %v2630_v42 = vsel %vm2600_vm15, %v6784_v31, %v2629_v40 }
 0x27a   :  { %v2703_v14 = vsel %vm2602_vm0, %v7250_v13, %v2702_v25  ;;  %v2710_v52 = vsel %vm2602_vm0, %v7253_v36, %v2709_v35  ;;  %v2631_v55 = vsel %vm2602_vm0, %v6786_v51, %v2630_v42  ;;  %v2636_v28 = vsel %vm2598_vm14, %v7018_v4, %v2635_v27 }
 0x27b   :  { %v3044_v60 = vpack.c.b16 %v2710_v52, %v2703_v14  ;;  %v7320_v11 = vunpack.c.l.b16 %v7218_v5  ;;  %v2458_v15 = vpack.c.bf16 %v2362_v19, %v2362_v19  ;;  %v2637_v61 = vsel %vm2600_vm15, %v7020_v2, %v2636_v28 }
 0x27c   :  { %v8450_v58 = vunpack.c.l.b16 %v7100_v29  ;;  %v2718_v45 = vsel %vm2590_vm10, %v7225_v34, %v2583_v32  ;;  %v2638_v9 = vsel %vm2602_vm0, %v7029_v47, %v2637_v61  ;;  %v2640_v29 = vsel %vm2592_vm11, %v7102_v7, %v7122_v8 }
 0x27d   :  { %3525 = vmatprep.mubr.bf16.mxu1 %v3044_v60  ;;  %v2719_v3 = vsel %vm2592_vm11, %v7229_v16, %v2718_v45  ;;  %v3043_v1 = vpack.c.b16 %v2638_v9, %v2631_v55  ;;  %v7341_v56 = vunpack.c.l.b16 %v2458_v15  ;;  %v2641_v25 = vsel %vm2594_vm12, %v7117_v53, %v2640_v29  ;;  %v8451_v45 = vld [vmem:[#allocation9_spill] sm:$0xff]  ;;  %v8453_v29 = vld [vmem:[#allocation10_spill] sm:$0xff] }
 0x27e   :  { %v2711_v10 = vsel %vm2590_vm10, %v7102_v7, %v8450_v58  ;;  %v2720_v32 = vsel %vm2594_vm12, %v7243_v24, %v2719_v3  ;;  %v2647_v8 = vsel %vm2592_vm11, %v7225_v34, %v7234_v57  ;;  %v2642_v27 = vsel %vm2596_vm13, %v7130_v26, %v2641_v25 }
 0x27f   :  { %v2712_v5 = vsel %vm2592_vm11, %v7117_v53, %v2711_v10  ;;  %v2721_v48 = vsel %vm2596_vm13, %v7245_v20, %v2720_v32  ;;  %3526 = vmatmul.mubr.bf16.gmra.mrb[8].mxu1 %v3043_v1  ;;  %v2648_v19 = vsel %vm2594_vm12, %v7229_v16, %v2647_v8  ;;  %v2643_v57 = vsel %vm2598_vm14, %v7150_v30, %v2642_v27  ;;  %v8458_v27 = vld [vmem:[#allocation5_spill] sm:$0xff] }
 0x280   :  { %v2713_v0 = vsel %vm2594_vm12, %v7130_v26, %v2712_v5  ;;  %v2722_v40 = vsel %vm2598_vm14, %v7247_v59, %v2721_v48  ;;  %v2649_v42 = vsel %vm2596_vm13, %v7243_v24, %v2648_v19  ;;  %v2644_v28 = vsel %vm2600_vm15, %v7152_v50, %v2643_v57  ;;  %v8456_v48 = vld [vmem:[#allocation22_spill] sm:$0xff] }
 0x281   :  { %v2714_v46 = vsel %vm2596_vm13, %v7150_v30, %v2713_v0  ;;  %v2723_v52 = vsel %vm2600_vm15, %v7257_v23, %v2722_v40  ;;  %v2650_v15 = vsel %vm2598_vm14, %v7245_v20, %v2649_v42  ;;  %v2645_v58 = vsel %vm2602_vm0, %v7164_v41, %v2644_v28  ;;  %v8454_v0 = vld [vmem:[#allocation21_spill] sm:$0xff]  ;;  %v8457_v40 = vld [vmem:[#allocation4_spill] sm:$0xff] }
 0x282   :  { %v2715_v35 = vsel %vm2598_vm14, %v7152_v50, %v2714_v46  ;;  %v2724_v55 = vsel %vm2602_vm0, %v7341_v56, %v2723_v52  ;;  %v2651_v10 = vsel %vm2600_vm15, %v7247_v59, %v2650_v15  ;;  %v8452_v9 = vrot.slane %v8451_v45, 1  ;;  %v8460_v52 = vld [vmem:[#allocation16_spill] sm:$0xff] }
 0x283   :  { %v2716_v14 = vsel %vm2600_vm15, %v7164_v41, %v2715_v35  ;;  %v2652_v3 = vsel %vm2602_vm0, %v7257_v23, %v2651_v10  ;;  %v1673_v1 = vrot.slane %v8453_v29, 1  ;;  %v8455_v32 = vrot.slane %v8454_v0, 1  ;;  %v8461_v28 = vld [vmem:[#allocation8_spill] sm:$0xff] }
 0x284   :  { %v2717_v60 = vsel %vm2602_vm0, %v7320_v11, %v2716_v14  ;;  %v1667_v5 = vmax.f32 %v8451_v45, %v8452_v9  ;;  %v1757_v25 = vrot.slane %v8456_v48, 1  ;;  %v3048_v8 = vpack.c.b16 %v2652_v3, %v2645_v58  ;;  %v8459_v14 = vld [vmem:[#allocation14_spill] sm:$0xff]  ;;  %v8463_v45 = vld [vmem:[#allocation17_spill] sm:$0xff] }
 0x285   :  { %v3049_v61 = vpack.c.b16 %v2724_v55, %v2717_v60  ;;  %v1751_v46 = vmax.f32 %v8454_v0, %v8455_v32  ;;  %v2813_v19 = vsel %vm2590_vm10, %v8458_v27, %v8457_v40  ;;  %v2820_v57 = vsel %vm2590_vm10, %v8460_v52, %v8459_v14  ;;  %v8465_v32 = vld [vmem:[#allocation55_spill] sm:$0xff]  ;;  %v8467_v40 = vld [vmem:[#allocation18_spill] sm:$0xff] }
 0x286   :  { %v2279_v35 = vmax.f32 %v1667_v5, 0.0  ;;  %v1674_v42 = vmax.f32 %v8453_v29, %v1673_v1  ;;  %v1758_v60 = vmax.f32 %v8456_v48, %v1757_v25  ;;  %v2814_v15 = vsel %vm2592_vm11, %v8461_v28, %v2813_v19  ;;  %v8464_v5 = vld [vmem:[#allocation7_spill] sm:$0xff]  ;;  %v8466_v25 = vld [vmem:[#allocation57_spill] sm:$0xff] }
 0x287   :  { %3535 = vmatprep.mubr.bf16.mxu1 %v3049_v61  ;;  %v2291_v55 = vmax.f32 %v1751_v46, 0.0  ;;  %v8462_v61 = vld [vmem:[#allocation6_spill] sm:$0xff]  ;;  %v2821_v9 = vsel %vm2592_vm11, %v8463_v45, %v2820_v57  ;;  %v2742_v3 = vsel %vm2592_vm11, %v8458_v27, %v8464_v5 }
 0x288   :  { %v2375_v10 = vpack.c.bf16 %v2279_v35, %v2279_v35  ;;  %v2815_v58 = vsel %vm2594_vm12, %v8462_v61, %v2814_v15  ;;  %3536 = vmatmul.mubr.bf16.gmra.mrb[12].mxu1 %v3048_v8  ;;  %v2280_v0 = vmax.f32 %v1674_v42, 0.0  ;;  %v2292_v29 = vmax.f32 %v1758_v60, 0.0  ;;  %v8468_v8 = vld [vmem:[#allocation56_spill] sm:$0xff] }
 0x289   :  { %v2387_v1 = vpack.c.bf16 %v2291_v55, %v2291_v55  ;;  %v2816_v46 = vsel %vm2596_vm13, %v8465_v32, %v2815_v58  ;;  %v2822_v19 = vsel %vm2594_vm12, %v8467_v40, %v2821_v9  ;;  %v2743_v14 = vsel %vm2594_vm12, %v8461_v28, %v2742_v3  ;;  %v8469_v55 = vld [vmem:[#allocation58_spill] sm:$0xff]  ;;  %v8470_v58 = vld [vmem:[#allocation59_spill] sm:$0xff]  ;;  %v8471_v3 = vld [vmem:[#allocation60_spill] sm:$0xff] }
 0x28a   :  { %v2733_v48 = vunpack.c.l.b16 %v2375_v10  ;;  %v2817_v35 = vsel %vm2598_vm14, %v8466_v25, %v2816_v46  ;;  %v2376_v57 = vpack.c.bf16 %v2280_v0, %v2280_v0  ;;  %v2388_v15 = vpack.c.bf16 %v2292_v29, %v2292_v29 }
 0x28b   :  { %v2734_v27 = vunpack.c.l.b16 %v2387_v1  ;;  %v2823_v42 = vsel %vm2596_vm13, %v8468_v8, %v2822_v19  ;;  %v2744_v9 = vsel %vm2596_vm13, %v8462_v61, %v2743_v14  ;;  %v8472_v1 = vld [vmem:[#allocation15_spill] sm:$0xff]  ;;  %v8473_v19 = vld [vmem:[#allocation38_spill] sm:$0xff]  ;;  %v1841_v61 = vrot.slane %v8475_v21, 1 }
 0x28c   :  { %v2818_v60 = vsel %vm2600_vm15, %v2733_v48, %v2817_v35  ;;  %v2824_v10 = vsel %vm2598_vm14, %v8469_v55, %v2823_v42  ;;  %v2889_v5 = vsel %vm2598_vm14, %v2733_v48, %v8470_v58  ;;  %v2805_v46 = vunpack.c.l.b16 %v2376_v57 }
 0x28d   :  { %v2806_v37 = vunpack.c.l.b16 %v2388_v15  ;;  %v2825_v28 = vsel %vm2600_vm15, %v2734_v27, %v2824_v10  ;;  %v2896_v0 = vsel %vm2598_vm14, %v2734_v27, %v8471_v3  ;;  %v2745_v29 = vsel %vm2598_vm14, %v8465_v32, %v2744_v9 }
 0x28e   :  { %v2749_v35 = vsel %vm2592_vm11, %v8460_v52, %v8472_v1  ;;  %v8474_v42 = vrot.slane %v8473_v19, 1  ;;  %v2819_v14 = vsel %vm2602_vm0, %v2805_v46, %v2818_v60  ;;  %v7443_v15 = vsel %vm2600_vm15, %v2805_v46, %v2889_v5 }
 0x28f   :  { %v2826_v57 = vsel %vm2602_vm0, %v2806_v37, %v2825_v28  ;;  %v7446_v10 = vsel %vm2600_vm15, %v2806_v37, %v2896_v0  ;;  %v2746_v52 = vsel %vm2600_vm15, %v8466_v25, %v2745_v29  ;;  %v2750_v9 = vsel %vm2594_vm12, %v8463_v45, %v2749_v35  ;;  %v8476_v28 = vld [vmem:[#allocation49_spill] sm:$0xff]  ;;  %v8478_v37 = vld [vmem:[#allocation51_spill] sm:$0xff] }
 0x290   :  { %v1835_v58 = vmax.f32 %v8473_v19, %v8474_v42  ;;  %v3036_v32 = vpack.c.b16 %v2826_v57, %v2819_v14  ;;  %v1842_v3 = vmax.f32 %v8475_v21, %v1841_v61  ;;  %v2747_v1 = vsel %vm2602_vm0, %v2733_v48, %v2746_v52  ;;  %v5426_v42 = vld [vmem:[%s8244_s3 + $0x200] ss:$8 sps:$4 sm:$0xff]  }
 0x291   :  { %v2751_v60 = vsel %vm2596_vm13, %v8467_v40, %v2750_v9  ;;  %v8477_v5 = vrot.slane %v8476_v28, 1  ;;  %v1925_v0 = vrot.slane %v8478_v37, 1  ;;  %v2827_v21 = vsel %vm2590_vm10, %v6619_v62, %v6621_v39  ;;  %v8480_v14 = vld [vmem:[#allocation34_spill] sm:$0xff]  ;;  %v8481_v9 = vld [vmem:[#allocation35_spill] sm:$0xff] }
 0x292   :  { %3578 = vmatprep.mubr.bf16.mxu1 %v3036_v32  ;;  %v2752_v25 = vsel %vm2598_vm14, %v8468_v8, %v2751_v60  ;;  %v2303_v29 = vmax.f32 %v1835_v58, 0.0  ;;  %v2304_v19 = vmax.f32 %v1842_v3, 0.0  ;;  %v2828_v35 = vsel %vm2592_vm11, %v6631_v44, %v2827_v21  ;;  %v5431_v60 = vld [vmem:[%s8244_s3 + $0x214] ss:$8 sps:$4 sm:$0xff]  }
 0x293   :  { %v1919_v46 = vmax.f32 %v8476_v28, %v8477_v5  ;;  %v2753_v45 = vsel %vm2600_vm15, %v8469_v55, %v2752_v25  ;;  %v1926_v48 = vmax.f32 %v8478_v37, %v1925_v0  ;;  %v2829_v57 = vsel %vm2594_vm12, %v8480_v14, %v2828_v35  ;;  %v8482_v5 = vld [vmem:[#allocation25_spill] sm:$0xff]  ;;  %v8483_v37 = vld [vmem:[#allocation43_spill] sm:$0xff]  ;;  %v8484_v0 = vld [vmem:[#allocation44_spill] sm:$0xff] }
 0x294   :  { %v2754_v8 = vsel %vm2602_vm0, %v2734_v27, %v2753_v45  ;;  %v2399_v58 = vpack.c.bf16 %v2303_v29, %v2303_v29  ;;  %v7474_v61 = vpack.c.bf16 %v2304_v19, %v2304_v19  ;;  %v2830_v3 = vsel %vm2596_vm13, %v8481_v9, %v2829_v57  ;;  %v8486_v19 = vld [vmem:[#allocation45_spill] sm:$0xff]  ;;  %v8487_v45 = vld [vmem:[#allocation32_spill] sm:$0xff]  ;;  %v8488_v35 = vld [vmem:[#allocation46_spill] sm:$0xff] }
 0x295   :  { %v2315_v40 = vmax.f32 %v1919_v46, 0.0  ;;  %v3035_v32 = vpack.c.b16 %v2754_v8, %v2747_v1  ;;  %v2316_v55 = vmax.f32 %v1926_v48, 0.0  ;;  %v2831_v46 = vsel %vm2598_vm14, %v8482_v5, %v2830_v3 }
 0x296   :  { %8479 = vst [vmem:[#allocation33_spill] sm:$0xff] %v7474_v61  ;;  %v7483_v28 = vunpack.c.l.b16 %v2399_v58  ;;  %v8336_v27 = vunpack.c.l.b16 %v7474_v61  ;;  %v2834_v1 = vsel %vm2590_vm10, %v8484_v0, %v8483_v37  ;;  %v2755_v48 = vsel %vm2590_vm10, %v6621_v39, %v8487_v45  ;;  %v5429_v58 = vld [vmem:[%s8244_s3 + $0x210] ss:$8 sps:$4 sm:$0xff]  }
 0x297   :  { %v2411_v52 = vpack.c.bf16 %v2315_v40, %v2315_v40  ;;  %3579 = vmatmul.mubr.bf16.vlgmr.msra.gmra.mrb[0].mxu1 %v3035_v32  ;;  %v7491_v25 = vpack.c.bf16 %v2316_v55, %v2316_v55  ;;  %v2835_v21 = vsel %vm2592_vm11, %v8486_v19, %v2834_v1  ;;  %v2756_v57 = vsel %vm2592_vm11, %v6619_v62, %v2755_v48  ;;  %v8489_v32 = vld [vmem:[#allocation40_spill] sm:$0xff] }
 0x298   :  { %3620 = vmatpush1.bf16.msra.mxu1 %v5426_v42  ;;  %v2832_v40 = vsel %vm2600_vm15, %v7483_v28, %v2831_v46  ;;  %v2836_v8 = vsel %vm2594_vm12, %v8488_v35, %v2835_v21  ;;  %v2762_v55 = vsel %vm2590_vm10, %v8483_v37, %v8489_v32  ;;  %v5434_v46 = vld [vmem:[%s8244_s3 + $0x224] ss:$8 sps:$4 sm:$0xff]   ;;  %v2757_v1 = vsel %vm2594_vm12, %v6631_v44, %v2756_v57 }
 0x299   :  { %8485 = vst [vmem:[#allocation42_spill] sm:$0xff] %v7491_v25  ;;  %v7493_v29 = vunpack.c.l.b16 %v2411_v52  ;;  %v2833_v42 = vsel %vm2602_vm0, %v8336_v27, %v2832_v40  ;;  %v8490_v52 = vld [vmem:[#allocation47_spill] sm:$0xff]  ;;  %3621 = vmatprep.subr.bf16.mxu1 %v5431_v60  ;;  %v8491_v21 = vld [vmem:[#allocation26_spill] sm:$0xff]  ;;  %v2758_v45 = vsel %vm2596_vm13, %v8480_v14, %v2757_v1  ;;  %v2763_v48 = vsel %vm2592_vm11, %v8484_v0, %v2762_v55  ;;  %v8492_v40 = vld [vmem:[#allocation13_spill] sm:$0xff] }
 0x29a   :  { %v2837_v3 = vsel %vm2596_vm13, %v8490_v52, %v2836_v8  ;;  %v8493_v32 = vrot.slane %v8492_v40, 1  ;;  %v2759_v27 = vsel %vm2598_vm14, %v8481_v9, %v2758_v45  ;;  %v2764_v57 = vsel %vm2594_vm12, %v8486_v19, %v2763_v48  ;;  %v5432_v55 = vld [vmem:[%s8244_s3 + $0x220] ss:$8 sps:$4 sm:$0xff]  }
 0x29b   :  { %v2838_v37 = vsel %vm2598_vm14, %v8491_v21, %v2837_v3  ;;  %v8494_v3 = vld [vmem:[#allocation19_spill] sm:$0xff]  ;;  %v8495_v1 = vunpack.c.l.b16 %v7491_v25  ;;  %v2765_v45 = vsel %vm2596_vm13, %v8488_v35, %v2764_v57  ;;  %v8498_v25 = vld [vmem:[#allocation24_spill] sm:$0xff] }
 0x29c   :  { %v2003_v60 = vmax.f32 %v8492_v40, %v8493_v32  ;;  %v2839_v8 = vsel %vm2600_vm15, %v7493_v29, %v2838_v37  ;;  %v2009_v39 = vrot.slane %v8494_v3, 1  ;;  %3622 = vmatpush1.bf16.msra.mxu1 %v5429_v58  ;;  %v2760_v37 = vsel %vm2600_vm15, %v8482_v5, %v2759_v27  ;;  %v8496_v40 = vld [vmem:[#allocation23_spill] sm:$0xff]  ;;  %v5437_v27 = vld [vmem:[%s8244_s3 + $0x234] ss:$8 sps:$4 sm:$0xff]  }
 0x29d   :  { %v2840_v33 = vsel %vm2602_vm0, %v8495_v1, %v2839_v8  ;;  %v8497_v32 = vrot.slane %v8496_v40, 1  ;;  %3623 = vmatprep.subr.bf16.mxu1 %v5434_v46  ;;  %v2761_v8 = vsel %vm2602_vm0, %v7483_v28, %v2760_v37  ;;  %v2766_v58 = vsel %vm2598_vm14, %v8490_v52, %v2765_v45 }
 0x29e   :  { %v3041_v22 = vpack.c.b16 %v2840_v33, %v2833_v42  ;;  %v2010_v1 = vmax.f32 %v8494_v3, %v2009_v39  ;;  %v2767_v57 = vsel %vm2600_vm15, %v8491_v21, %v2766_v58  ;;  %v2093_v61 = vrot.slane %v8498_v25, 1 }
 0x29f   :  { %v2087_v48 = vmax.f32 %v8496_v40, %v8497_v32  ;;  %v2327_v40 = vmax.f32 %v2003_v60, 0.0  ;;  %v2768_v42 = vsel %vm2602_vm0, %v7493_v29, %v2767_v57  ;;  %v2841_v39 = vsel %vm2590_vm10, %v6773_v54, %v6762_v63 }
 0x2a0   :  { %3588 = vmatprep.mubr.bf16.mxu1 %v3041_v22  ;;  %v2328_v46 = vmax.f32 %v2010_v1, 0.0  ;;  %v2848_v3 = vsel %vm2590_vm10, %v7008_v38, %v6987_v18  ;;  %v3040_v37 = vpack.c.b16 %v2768_v42, %v2761_v8  ;;  %3624 = vmatpush1.bf16.msra.mxu1 %v5432_v55  ;;  %v2094_v45 = vmax.f32 %v8498_v25, %v2093_v61  ;;  %v5435_v22 = vld [vmem:[%s8244_s3 + $0x230] ss:$8 sps:$4 sm:$0xff]   ;;  %v5440_v55 = vld [vmem:[%s8244_s3 + $0x244] ss:$8 sps:$4 sm:$0xff]  }
 0x2a1   :  { %v2339_v33 = vmax.f32 %v2087_v48, 0.0  ;;  %v2423_v32 = vpack.c.bf16 %v2327_v40, %v2327_v40  ;;  %v2842_v58 = vsel %vm2592_vm11, %v6782_v17, %v2841_v39  ;;  %v2849_v1 = vsel %vm2592_vm11, %v7018_v4, %v2848_v3  ;;  %3625 = vmatprep.subr.bf16.mxu1 %v5437_v27  ;;  %v5438_v3 = vld [vmem:[%s8244_s3 + $0x240] ss:$8 sps:$4 sm:$0xff]  }
 0x2a2   :  { %v7575_v48 = vpack.c.bf16 %v2328_v46, %v2328_v46  ;;  %v2769_v61 = vsel %vm2590_vm10, %v6762_v63, %v6759_v12  ;;  %3589 = vmatmul.mubr.bf16.gmra.mrb[4].mxu1 %v3040_v37  ;;  %v2340_v25 = vmax.f32 %v2094_v45, 0.0  ;;  %v2843_v40 = vsel %vm2594_vm12, %v6784_v31, %v2842_v58  ;;  %v5443_v58 = vld [vmem:[%s8244_s3 + $0x254] ss:$8 sps:$4 sm:$0xff]  }
 0x2a3   :  { %v2435_v60 = vpack.c.bf16 %v2339_v33, %v2339_v33  ;;  %v7587_v8 = vunpack.c.l.b16 %v2423_v32  ;;  %v2844_v27 = vsel %vm2596_vm13, %v6786_v51, %v2843_v40  ;;  %v2850_v42 = vsel %vm2594_vm12, %v7020_v2, %v2849_v1 }
 0x2a4   :  { %v2809_v33 = vunpack.c.l.b16 %v7575_v48  ;;  %v2770_v12 = vsel %vm2592_vm11, %v6773_v54, %v2769_v61  ;;  %v7600_v63 = vpack.c.bf16 %v2340_v25, %v2340_v25  ;;  %v2845_v46 = vsel %vm2598_vm14, %v7250_v13, %v2844_v27  ;;  %3626 = vmatpush1.bf16.msra.mxu1 %v5435_v22 }
 0x2a5   :  { %v7589_v57 = vunpack.c.l.b16 %v2435_v60  ;;  %v2851_v39 = vsel %vm2596_vm13, %v7029_v47, %v2850_v42  ;;  %v2771_v37 = vsel %vm2594_vm12, %v6782_v17, %v2770_v12  ;;  %v2846_v45 = vsel %vm2600_vm15, %v7587_v8, %v2845_v46  ;;  %3627 = vmatprep.subr.bf16.mxu1 %v5440_v55  ;;  %v8501_v12 = vld [vmem:[#allocation30_spill] sm:$0xff] }
 0x2a6   :  { %v2852_v32 = vsel %vm2598_vm14, %v7253_v36, %v2851_v39  ;;  %v2772_v60 = vsel %vm2596_vm13, %v6784_v31, %v2771_v37  ;;  %v2776_v22 = vsel %vm2590_vm10, %v6987_v18, %v6980_v6  ;;  %v2810_v1 = vunpack.c.l.b16 %v7600_v63  ;;  %v8499_v18 = vld [vmem:[#allocation29_spill] sm:$0xff] }
 0x2a7   :  { %v2847_v61 = vsel %vm2602_vm0, %v2809_v33, %v2846_v45  ;;  %v2853_v55 = vsel %vm2600_vm15, %v7589_v57, %v2852_v32  ;;  %v2773_v25 = vsel %vm2598_vm14, %v6786_v51, %v2772_v60  ;;  %v2777_v6 = vsel %vm2592_vm11, %v7008_v38, %v2776_v22  ;;  %v5441_v22 = vld [vmem:[%s8244_s3 + $0x250] ss:$8 sps:$4 sm:$0xff]  }
 0x2a8   :  { %v2774_v40 = vsel %vm2600_vm15, %v7250_v13, %v2773_v25  ;;  %v8500_v27 = vrot.slane %v8499_v18, 1  ;;  %v2177_v46 = vrot.slane %v8501_v12, 1  ;;  %v2854_v39 = vsel %vm2602_vm0, %v2810_v1, %v2853_v55  ;;  %3628 = vmatpush1.bf16.msra.mxu1 %v5438_v3  ;;  %v5446_v3 = vld [vmem:[%s8244_s3 + $0x264] ss:$8 sps:$4 sm:$0xff]  }
 0x2a9   :  { %v2775_v37 = vsel %vm2602_vm0, %v7587_v8, %v2774_v40  ;;  %v2778_v45 = vsel %vm2594_vm12, %v7018_v4, %v2777_v6  ;;  %v8502_v32 = vrot.slane %v7282_v43, 1  ;;  %v3046_v25 = vpack.c.b16 %v2854_v39, %v2847_v61  ;;  %3629 = vmatprep.subr.bf16.mxu1 %v5443_v58 }
 0x2aa   :  { %v2171_v42 = vmax.f32 %v8499_v18, %v8500_v27  ;;  %v2779_v18 = vsel %vm2596_vm13, %v7020_v2, %v2778_v45  ;;  %v2178_v55 = vmax.f32 %v8501_v12, %v2177_v46  ;;  %v2261_v40 = vrot.slane %v7270_v49, 1 }
 0x2ab   :  { %v2255_v60 = vmax.f32 %v7282_v43, %v8502_v32  ;;  %v2780_v43 = vsel %vm2598_vm14, %v7029_v47, %v2779_v18  ;;  %v2855_v61 = vsel %vm2590_vm10, %v7130_v26, %v7117_v53  ;;  %3598 = vmatprep.mubr.bf16.mxu1 %v3046_v25  ;;  %v5444_v25 = vld [vmem:[%s8244_s3 + $0x260] ss:$8 sps:$4 sm:$0xff]  }
 0x2ac   :  { %v2351_v6 = vmax.f32 %v2171_v42, 0.0  ;;  %v2781_v12 = vsel %vm2600_vm15, %v7253_v36, %v2780_v43  ;;  %v2262_v46 = vmax.f32 %v7270_v49, %v2261_v40  ;;  %v2352_v58 = vmax.f32 %v2178_v55, 0.0  ;;  %3630 = vmatpush1.bf16.msra.mxu1 %v5441_v22  ;;  %v5449_v40 = vld [vmem:[%s8244_s3 + $0x274] ss:$8 sps:$4 sm:$0xff]  }
 0x2ad   :  { %v2363_v27 = vmax.f32 %v2255_v60, 0.0  ;;  %v2856_v39 = vsel %vm2592_vm11, %v7150_v30, %v2855_v61  ;;  %v2782_v45 = vsel %vm2602_vm0, %v7589_v57, %v2781_v12  ;;  %3631 = vmatprep.subr.bf16.mxu1 %v5446_v3 }
 0x2ae   :  { %v2447_v32 = vpack.c.bf16 %v2351_v6, %v2351_v6  ;;  %v2857_v60 = vsel %vm2594_vm12, %v7152_v50, %v2856_v39  ;;  %v3045_v18 = vpack.c.b16 %v2782_v45, %v2775_v37  ;;  %v2364_v43 = vmax.f32 %v2262_v46, 0.0 }
 0x2af   :  { %v2459_v42 = vpack.c.bf16 %v2363_v27, %v2363_v27  ;;  %v7676_v49 = vpack.c.bf16 %v2352_v58, %v2352_v58  ;;  %v2858_v55 = vsel %vm2596_vm13, %v7164_v41, %v2857_v60  ;;  %v2862_v37 = vsel %vm2590_vm10, %v7243_v24, %v7229_v16 }
 0x2b0   :  { %v7683_v6 = vunpack.c.l.b16 %v2447_v32  ;;  %v2859_v22 = vsel %vm2598_vm14, %v7320_v11, %v2858_v55  ;;  %3599 = vmatmul.mubr.bf16.gmra.mrb[8].mxu1 %v3045_v18  ;;  %v7692_v61 = vpack.c.bf16 %v2364_v43, %v2364_v43  ;;  %v2863_v12 = vsel %vm2592_vm11, %v7245_v20, %v2862_v37 }
 0x2b1   :  { %v7685_v27 = vunpack.c.l.b16 %v2459_v42  ;;  %v2811_v3 = vunpack.c.l.b16 %v7676_v49  ;;  %v2783_v46 = vsel %vm2590_vm10, %v7117_v53, %v7102_v7  ;;  %v2864_v39 = vsel %vm2594_vm12, %v7247_v59, %v2863_v12  ;;  %3632 = vmatpush1.bf16.msra.mxu1 %v5444_v25  ;;  %v5447_v42 = vld [vmem:[%s8244_s3 + $0x270] ss:$8 sps:$4 sm:$0xff]   ;;  %v5454_v49 = vld [vmem:[%s8246_s5 + $0x60] sm:$0xff]  }
 0x2b2   :  { %v2860_v58 = vsel %vm2600_vm15, %v7683_v6, %v2859_v22  ;;  %v2784_v45 = vsel %vm2592_vm11, %v7130_v26, %v2783_v46  ;;  %v2790_v32 = vsel %vm2590_vm10, %v7229_v16, %v7225_v34  ;;  %v2812_v7 = vunpack.c.l.b16 %v7692_v61  ;;  %3633 = vmatprep.subr.bf16.mxu1 %v5449_v40  ;;  %v8503_v40 = vld [vmem:[#allocation11_spill] sm:$0xff] }
 0x2b3   :  { %v2861_v53 = vsel %vm2602_vm0, %v2811_v3, %v2860_v58  ;;  %v2865_v60 = vsel %vm2596_vm13, %v7257_v23, %v2864_v39  ;;  %v2785_v18 = vsel %vm2594_vm12, %v7150_v30, %v2784_v45  ;;  %v2791_v25 = vsel %vm2592_vm11, %v7243_v24, %v2790_v32  ;;  %v8505_v45 = vld [vmem:[#allocation27_spill] sm:$0xff] }
 0x2b4   :  { %v2866_v34 = vsel %vm2598_vm14, %v7341_v56, %v2865_v60  ;;  %v2786_v16 = vsel %vm2596_vm13, %v7152_v50, %v2785_v18  ;;  %v2792_v22 = vsel %vm2594_vm12, %v7245_v20, %v2791_v25  ;;  %v8504_v37 = vunpack.c.l.b16 %v8503_v40  ;;  %v5455_v61 = vld [vmem:[%s8246_s5 + $0x68] sm:$0xff]  }
 0x2b5   :  { %v2867_v43 = vsel %vm2600_vm15, %v7685_v27, %v2866_v34  ;;  %v2787_v55 = vsel %vm2598_vm14, %v7164_v41, %v2786_v16  ;;  %v2793_v39 = vsel %vm2596_vm13, %v7247_v59, %v2792_v22  ;;  %3634 = vmatpush1.bf16.msra.mxu1 %v5447_v42  ;;  %v8506_v32 = vunpack.c.l.b16 %v8505_v45  ;;  %v8509_v22 = vld [vmem:[#allocation48_spill] sm:$0xff] }
 0x2b6   :  { %v7736_v12 = vsel %vm2602_vm0, %v8504_v37, %v7443_v15  ;;  %v2868_v46 = vsel %vm2602_vm0, %v2812_v7, %v2867_v43  ;;  %v2788_v58 = vsel %vm2600_vm15, %v7320_v11, %v2787_v55  ;;  %v2794_v34 = vsel %vm2598_vm14, %v7257_v23, %v2793_v39  ;;  %v8507_v43 = vld [vmem:[#allocation36_spill] sm:$0xff] }
 0x2b7   :  { %v2898_v60 = vsel %vm2602_vm0, %v8506_v32, %v7446_v10  ;;  %v3051_v18 = vpack.c.b16 %v2868_v46, %v2861_v53  ;;  %v2789_v15 = vsel %vm2602_vm0, %v7683_v6, %v2788_v58  ;;  %v2795_v25 = vsel %vm2600_vm15, %v7341_v56, %v2794_v34  ;;  %v8511_v58 = vld [vmem:[#allocation12_spill] sm:$0xff] }
 0x2b8   :  { %v3037_v16 = vpack.c.b16 %v2898_v60, %v7736_v12  ;;  %v8508_v55 = vrot.slane %v8507_v43, 2  ;;  %v8510_v40 = vrot.slane %v8509_v22, 2  ;;  %v2899_v53 = vsel %vm2590_vm10, %v6631_v44, %v6619_v62 }
 0x2b9   :  { %3608 = vmatprep.mubr.bf16.mxu1 %v3051_v18  ;;  %v2796_v37 = vsel %vm2602_vm0, %v7685_v27, %v2795_v25  ;;  %v2900_v12 = vsel %vm2592_vm11, %v8480_v14, %v2899_v53  ;;  %v2906_v46 = vsel %vm2590_vm10, %v8486_v19, %v8484_v0  ;;  %v8512_v39 = vrot.slane %v8511_v58, 2  ;;  %v8513_v25 = vld [vmem:[#allocation20_spill] sm:$0xff] }
 0x2ba   :  { %v1847_v42 = vmax.f32 %v8507_v43, %v8508_v55  ;;  %v1931_v10 = vmax.f32 %v8509_v22, %v8510_v40  ;;  %v3050_v32 = vpack.c.b16 %v2796_v37, %v2789_v15  ;;  %v2901_v62 = vsel %vm2594_vm12, %v8481_v9, %v2900_v12 }
 0x2bb   :  { %v2015_v45 = vmax.f32 %v8511_v58, %v8512_v39  ;;  %v2902_v44 = vsel %vm2596_vm13, %v8482_v5, %v2901_v62  ;;  %v2907_v14 = vsel %vm2592_vm11, %v8488_v35, %v2906_v46  ;;  %v8514_v43 = vrot.slane %v8513_v25, 2  ;;  %v8515_v5 = vld [vmem:[#allocation33_spill] sm:$0xff]  ;;  %v8517_v46 = vld [vmem:[#allocation42_spill] sm:$0xff] }
 0x2bc   :  { %v1848_v60 = vrot.slane %v1847_v42, 1  ;;  %v1932_v34 = vrot.slane %v1931_v10, 1  ;;  %3609 = vmatmul.mubr.bf16.gmra.mrb[12].mxu1 %v3050_v32  ;;  %v2903_v15 = vsel %vm2598_vm14, %v7483_v28, %v2902_v44  ;;  %v2908_v9 = vsel %vm2594_vm12, %v8490_v52, %v2907_v14 }
 0x2bd   :  { %v2016_v18 = vrot.slane %v2015_v45, 1  ;;  %v2099_v0 = vmax.f32 %v8513_v25, %v8514_v43  ;;  %v5497_v22 = vmov 0   ;;  %v8516_v40 = vunpack.c.l.b16 %v8515_v5 }
 0x2be   :  { %v1849_v19 = vmax.f32 %v1847_v42, %v1848_v60  ;;  %v1933_v55 = vmax.f32 %v1931_v10, %v1932_v34  ;;  %3651 = vmatprep.mubr.bf16.mxu1 %v5497_v22  ;;  %v2909_v53 = vsel %vm2596_vm13, %v8491_v21, %v2908_v9  ;;  %v2913_v52 = vsel %vm2590_vm10, %v6782_v17, %v6773_v54 }
 0x2bf   :  { %v2904_v35 = vsel %vm2600_vm15, %v8516_v40, %v2903_v15  ;;  %v2017_v37 = vmax.f32 %v2015_v45, %v2016_v18  ;;  %v2100_v12 = vrot.slane %v2099_v0, 1  ;;  %v2910_v28 = vsel %vm2598_vm14, %v7493_v29, %v2909_v53 }
 0x2c0   :  { %v2305_v42 = vmax.f32 %v1849_v19, 0.0  ;;  %v2317_v10 = vmax.f32 %v1933_v55, 0.0  ;;  %v8518_v58 = vunpack.c.l.b16 %v8517_v46  ;;  %v2914_v21 = vsel %vm2592_vm11, %v6784_v31, %v2913_v52  ;;  %v8519_v19 = vld [vmem:[#allocation28_spill] sm:$0xff] }
 0x2c1   :  { %v2101_v32 = vmax.f32 %v2099_v0, %v2100_v12  ;;  %v2329_v60 = vmax.f32 %v2017_v37, 0.0  ;;  %v2915_v62 = vsel %vm2594_vm12, %v6786_v51, %v2914_v21  ;;  %v2920_v29 = vsel %vm2590_vm10, %v7018_v4, %v7008_v38 }
 0x2c2   :  { %v2911_v39 = vsel %vm2600_vm15, %v8518_v58, %v2910_v28  ;;  %v2401_v45 = vpack.c.bf16 %v2305_v42, %v2305_v42  ;;  %v2413_v34 = vpack.c.bf16 %v2317_v10, %v2317_v10  ;;  %v2916_v17 = vsel %vm2596_vm13, %v7250_v13, %v2915_v62  ;;  %v5452_v58 = vld [vmem:[%s8246_s5 + $0x50] sm:$0xff]   ;;  %v5462_v62 = vld [vmem:[%s8246_s5 + $0x78] sm:$0xff]  }
 0x2c3   :  { %v2341_v44 = vmax.f32 %v2101_v32, 0.0  ;;  %v2425_v54 = vpack.c.bf16 %v2329_v60, %v2329_v60  ;;  %v2921_v14 = vsel %vm2592_vm11, %v7020_v2, %v2920_v29  ;;  %v2917_v31 = vsel %vm2598_vm14, %v7587_v8, %v2916_v17  ;;  %v5453_v60 = vld [vmem:[%s8246_s5 + $0x58] sm:$0xff]   ;;  %v5459_v29 = vld [vmem:[%s8246_s5 + $0x90] sm:$0xff]   ;;  %v3021_v17 = vld [vmem:[%s8247_s4] sm:$0x3] }
 0x2c4   :  { %v2879_v18 = vunpack.c.l.b16 %v2401_v45  ;;  %v2880_v25 = vunpack.c.l.b16 %v2413_v34  ;;  %v2922_v51 = vsel %vm2594_vm12, %v7029_v47, %v2921_v14  ;;  %v2918_v38 = vsel %vm2600_vm15, %v2809_v33, %v2917_v31  ;;  %3652 = vmatmul.mubr.bf16.vlgmr.msra.gmra.mrb[0].mxu1 %v3037_v16  ;;  %v5450_v16 = vld [vmem:[%s8246_s5 + $0x40] sm:$0xff]   ;;  %v5463_v31 = vld [vmem:[%s8246_s5 + $0xa8] sm:$0xff]  }
 0x2c5   :  { %v2437_v43 = vpack.c.bf16 %v2341_v44, %v2341_v44  ;;  %v2881_v0 = vunpack.c.l.b16 %v2425_v54  ;;  %v2923_v4 = vsel %vm2596_vm13, %v7253_v36, %v2922_v51  ;;  %v8520_v55 = vrot.slane %v8519_v19, 2  ;;  %3661 = vmatprep.mubr.bf16.mxu1 %v5497_v22  ;;  %v5460_v44 = vld [vmem:[%s8246_s5 + $0x98] sm:$0xff]   ;;  %v5461_v54 = vld [vmem:[%s8246_s5 + $0xa0] sm:$0xff]  }
 0x2c6   :  { %v2905_v2 = vsel %vm2602_vm0, %v2879_v18, %v2904_v35  ;;  %v2912_v13 = vsel %vm2602_vm0, %v2880_v25, %v2911_v39  ;;  %v2924_v8 = vsel %vm2598_vm14, %v7589_v57, %v2923_v4  ;;  %v8521_v57 = vld [vmem:[#allocation31_spill] sm:$0xff]  ;;  %v2927_v35 = vsel %vm2590_vm10, %v7150_v30, %v7130_v26  ;;  %v8523_v14 = vld [vmem:[#allocation2_spill] sm:$0xff] }
 0x2c7   :  { %v2183_v47 = vmax.f32 %v8519_v19, %v8520_v55  ;;  %v3042_v48 = vpack.c.b16 %v2912_v13, %v2905_v2  ;;  %v2882_v15 = vunpack.c.l.b16 %v2437_v43  ;;  %v2919_v33 = vsel %vm2602_vm0, %v2881_v0, %v2918_v38  ;;  %v5464_v2 = vld [vmem:[%s8246_s5 + $0xb0] sm:$0xff]  }
 0x2c8   :  { %v2925_v36 = vsel %vm2600_vm15, %v2810_v1, %v2924_v8  ;;  %v8522_v5 = vrot.slane %v8521_v57, 2  ;;  %v2934_v53 = vsel %vm2590_vm10, %v7245_v20, %v7243_v24  ;;  %v2928_v1 = vsel %vm2592_vm11, %v7152_v50, %v2927_v35  ;;  %v5451_v50 = vld [vmem:[%s8246_s5 + $0x48] sm:$0xff]  }
 0x2c9   :  { %v2184_v9 = vrot.slane %v2183_v47, 1  ;;  %v2926_v63 = vsel %vm2602_vm0, %v2882_v15, %v2925_v36  ;;  %v2935_v37 = vsel %vm2592_vm11, %v7247_v59, %v2934_v53  ;;  %v2929_v28 = vsel %vm2594_vm12, %v7164_v41, %v2928_v1  ;;  %v5465_v15 = vld [vmem:[%s8246_s5 + $0xb8] sm:$0xff]   ;;  %v8526_v36 = vld [vmem:[#allocation3_spill] sm:$0xff] }
 0x2ca   :  { %v2267_v40 = vmax.f32 %v8521_v57, %v8522_v5  ;;  %v3047_v12 = vpack.c.b16 %v2926_v63, %v2919_v33  ;;  %v5498_v52 = vmov 0.0   ;;  %v2930_v26 = vsel %vm2596_vm13, %v7320_v11, %v2929_v28 }
 0x2cb   :  { %v2185_v42 = vmax.f32 %v2183_v47, %v2184_v9  ;;  %4927 = vmatprep.subr.bf16.mxu0 %v5498_v52  ;;  %4967 = vmatprep.subr.bf16.mxu1 %v5498_v52  ;;  %v2936_v30 = vsel %vm2594_vm12, %v7257_v23, %v2935_v37  ;;  %v2931_v11 = vsel %vm2598_vm14, %v7683_v6, %v2930_v26  ;;  %v8524_v18 = vsub.s32 0, %v8523_v14 }
 0x2cc   :  { %v2268_v10 = vrot.slane %v2267_v40, 1  ;;  %4928 = vmatpush3.bf16.msra.mxu0 %v5450_v16  ;;  %v2937_v41 = vsel %vm2596_vm13, %v7341_v56, %v2936_v30  ;;  %3662 = vmatmul.mubr.bf16.gmra.mrb[4].mxu1 %v3042_v48  ;;  %v2932_v32 = vsel %vm2600_vm15, %v2811_v3, %v2931_v11  ;;  %v5456_v3 = vld [vmem:[%s8246_s5 + $0x80] sm:$0xff]   ;;  %v8525_v51 = vsub.s32 1, %v8523_v14 }
 0x2cd   :  { %v2353_v20 = vmax.f32 %v2185_v42, 0.0  ;;  %4929 = vmatprep.subr.bf16.mxu0 %v5498_v52  ;;  %v2938_v23 = vsel %vm2598_vm14, %v7685_v27, %v2937_v41  ;;  %3671 = vmatprep.mubr.bf16.mxu1 %v5497_v22  ;;  %v7932_v25 = vrot.slane %v3021_v17, %v8524_v18 }
 0x2ce   :  { %v2269_v24 = vmax.f32 %v2267_v40, %v2268_v10  ;;  %v2939_v6 = vsel %vm2600_vm15, %v2812_v7, %v2938_v23  ;;  %v5458_v7 = vld [vmem:[%s8246_s5 + $0x70] sm:$0xff]   ;;  %4943 = vmatprep.mubr.msk.bf16.mxu0 %vm5499_vm1, %v5498_v52  ;;  %4968 = vmatpush3.bf16.msra.mxu1 %v5456_v3  ;;  %v7939_v43 = vrot.slane %v3021_v17, %v8525_v51 }
 0x2cf   :  { %v2449_v46 = vpack.c.bf16 %v2353_v20, %v2353_v20  ;;  %4969 = vmatprep.subr.bf16.mxu1 %v5498_v52 }
 0x2d0   :  { %v2365_v59 = vmax.f32 %v2269_v24, 0.0  ;;  %4930 = vmatpush3.bf16.msra.mxu0 %v5451_v50 }
 0x2d1   :  { %v2883_v56 = vunpack.c.l.b16 %v2449_v46  ;;  %4931 = vmatprep.subr.bf16.mxu0 %v5498_v52 }
 0x2d2   :  { %v2461_v39 = vpack.c.bf16 %v2365_v59, %v2365_v59 }
 0x2d3   :  { %v2933_v21 = vsel %vm2602_vm0, %v2883_v56, %v2932_v32 }
 0x2d4   :  { %v2884_v27 = vunpack.c.l.b16 %v2461_v39  ;;  %4932 = vmatpush3.bf16.msra.mxu0 %v5452_v58  ;;  %3672 = vmatmul.mubr.bf16.gmra.mrb[8].mxu1 %v3047_v12 }
 0x2d5   :  { %4933 = vmatprep.subr.bf16.mxu0 %v5498_v52  ;;  %3681 = vmatprep.mubr.bf16.mxu1 %v5497_v22  ;;  %v5457_v22 = vld [vmem:[%s8246_s5 + $0x88] sm:$0xff]  }
 0x2d6   :  { %v2940_v45 = vsel %vm2602_vm0, %v2884_v27, %v2939_v6  ;;  %4970 = vmatpush3.bf16.msra.mxu1 %v5457_v22 }
 0x2d7   :  { %v3052_v34 = vpack.c.b16 %v2940_v45, %v2933_v21  ;;  %4971 = vmatprep.subr.bf16.mxu1 %v5498_v52 }
 0x2d8   :  { %4934 = vmatpush3.bf16.msra.mxu0 %v5453_v60 }
 0x2d9   :  { %4935 = vmatprep.subr.bf16.mxu0 %v5498_v52 }
 0x2da   :  { %4972 = vmatpush3.bf16.msra.mxu1 %v5459_v29 }
 0x2db   :  { %4973 = vmatprep.subr.bf16.mxu1 %v5498_v52 }
 0x2dc   :  { %3682 = vmatmul.mubr.bf16.gmra.mrb[12].mxu1 %v3052_v34  ;;  %4936 = vmatpush3.bf16.msra.mxu0 %v5454_v49 }
 0x2dd   :  { %4937 = vmatprep.subr.bf16.mxu0 %v5498_v52  ;;  %4983 = vmatprep.mubr.msk.bf16.mxu1 %vm5499_vm1, %v5498_v52 }
 0x2de   :  { %4974 = vmatpush3.bf16.msra.mxu1 %v5460_v44 }
 0x2df   :  { %4975 = vmatprep.subr.bf16.mxu1 %v5498_v52 }
 0x2e0   :  { %4938 = vmatpush3.bf16.msra.mxu0 %v5455_v61 }
 0x2e1   :  { %4939 = vmatprep.subr.bf16.mxu0 %v5498_v52 }
 0x2e2   :  { %4976 = vmatpush3.bf16.msra.mxu1 %v5461_v54 }
 0x2e3   :  { %4977 = vmatprep.subr.bf16.mxu1 %v5498_v52 }
 0x2e4   :  { %4940 = vmatpush3.bf16.msra.mxu0 %v5458_v7 }
 0x2e5   :  { %4941 = vmatprep.subr.bf16.mxu0 %v5498_v52 }
 0x2e6   :  { %4978 = vmatpush3.bf16.msra.mxu1 %v5463_v31 }
 0x2e7   :  { %4979 = vmatprep.subr.bf16.mxu1 %v5498_v52 }
 0x2e8   :  { %4942 = vmatpush3.bf16.msra.mxu0 %v5462_v62 }
 0x2e9   :  { %4947 = vmatprep.subr.bf16.mxu0 %v5498_v52 }
 0x2ea   :  { %4980 = vmatpush3.bf16.msra.mxu1 %v5464_v2 }
 0x2eb   :  { %4981 = vmatprep.subr.bf16.mxu1 %v5498_v52 }
 0x2ee   :  { %4982 = vmatpush3.bf16.msra.mxu1 %v5465_v15 }
 0x397   :  { %v3653_v0 = vpop.f32.mrb[0].mxu1 }
 0x398   :  { %v5007_v38 = vadd.f32 %v3653_v0, %v7932_v25  ;;  %v3655_v4 = vpop.f32.mrb[1].mxu1 }
 0x399   :  { %v5008_v13 = vadd.f32 %v3655_v4, %v7939_v43  ;;  %v3657_v8 = vpop.f32.mrb[2].mxu1 }
 0x39a   :  { %v5009_v19 = vadd.f32 %v3657_v8, %v7932_v25  ;;  %v3659_v55 = vpop.f32.mrb[3].mxu1 }
 0x39b   :  { %v3692_v47 = vmax.f32 %v5007_v38, %v5008_v13  ;;  %v5010_v48 = vadd.f32 %v3659_v55, %v7939_v43 }
 0x39d   :  { %v3708_v33 = vcombine.high %v3692_v47, %v3692_v47  ;;  %v3715_v16 = vrot.slane %v3692_v47, %v8526_v36  ;;  %v3693_v9 = vmax.f32 %v5009_v19, %v5010_v48 }
 0x39f   :  { %v3722_v57 = vrot.slane %v3708_v33, %v8526_v36  ;;  %v3723_v5 = vcombine.high %v3715_v16, %v3715_v16  ;;  %v3876_v40 = vsel %vm1597_vm9, %v3715_v16, -inf  ;;  %v3725_v35 = vcombine.high %v3693_v9, %v3693_v9  ;;  %v3663_v53 = vpop.f32.mrb[4].mxu1 }
 0x3a0   :  { %v3877_v63 = vrot.slane %v3876_v40, 4  ;;  %v3732_v1 = vrot.slane %v3693_v9, %v8526_v36  ;;  %v7959_v37 = vadd.f32 %v3663_v53, %v7932_v25  ;;  %v7961_v12 = vpop.f32.mrb[5].mxu1 }
 0x3a1   :  { %v3724_v42 = vcombine.high %v3722_v57, %v3722_v57  ;;  %v3883_v10 = vsel %vm1597_vm9, %v3723_v5, -inf  ;;  %v3890_v28 = vsel %vm1597_vm9, %v3722_v57, -inf  ;;  %v3739_v26 = vrot.slane %v3725_v35, %v8526_v36  ;;  %v7966_v30 = vpop.f32.mrb[6].mxu1 }
 0x3a2   :  { %v3878_v50 = vmax.f32 %v3876_v40, %v3877_v63  ;;  %v3884_v24 = vrot.slane %v3883_v10, 4  ;;  %v3891_v20 = vrot.slane %v3890_v28, 4  ;;  %v3740_v41 = vcombine.high %v3732_v1, %v3732_v1  ;;  %v7968_v59 = vpop.f32.mrb[7].mxu1 }
 0x3a3   :  { %v3897_v46 = vsel %vm1597_vm9, %v3724_v42, -inf  ;;  %v3741_v11 = vcombine.high %v3739_v26, %v3739_v26  ;;  %v3904_v23 = vsel %vm1597_vm9, %v3732_v1, -inf  ;;  %v3918_v58 = vsel %vm1597_vm9, %v3739_v26, -inf }
 0x3a4   :  { %v3879_v39 = vrot.slane %v3878_v50, 2  ;;  %v3885_v56 = vmax.f32 %v3883_v10, %v3884_v24  ;;  %v3892_v32 = vmax.f32 %v3890_v28, %v3891_v20  ;;  %v3898_v6 = vrot.slane %v3897_v46, 4 }
 0x3a5   :  { %v3905_v27 = vrot.slane %v3904_v23, 4  ;;  %v3911_v60 = vsel %vm1597_vm9, %v3740_v41, -inf  ;;  %v3919_v21 = vrot.slane %v3918_v58, 4  ;;  %v3925_v45 = vsel %vm1597_vm9, %v3741_v11, -inf }
 0x3a6   :  { %v3880_v34 = vmax.f32 %v3878_v50, %v3879_v39  ;;  %v3886_v49 = vrot.slane %v3885_v56, 2  ;;  %v3893_v61 = vrot.slane %v3892_v32, 2  ;;  %v3899_v3 = vmax.f32 %v3897_v46, %v3898_v6 }
 0x3a7   :  { %v3906_v7 = vmax.f32 %v3904_v23, %v3905_v27  ;;  %v3912_v22 = vrot.slane %v3911_v60, 4  ;;  %v3920_v62 = vmax.f32 %v3918_v58, %v3919_v21  ;;  %v3926_v29 = vrot.slane %v3925_v45, 4  ;;  %v7975_v44 = vpop.f32.mrb[8].mxu1 }
 0x3a8   :  { %v3881_v54 = vrot.slane %v3880_v34, 1  ;;  %v3887_v17 = vmax.f32 %v3885_v56, %v3886_v49  ;;  %v3894_v14 = vmax.f32 %v3892_v32, %v3893_v61  ;;  %v3900_v18 = vrot.slane %v3899_v3, 2  ;;  %v7977_v31 = vpop.f32.mrb[9].mxu1 }
 0x3a9   :  { %v3907_v51 = vrot.slane %v3906_v7, 2  ;;  %v3913_v0 = vmax.f32 %v3911_v60, %v3912_v22  ;;  %v3921_v38 = vrot.slane %v3920_v62, 2  ;;  %v3927_v4 = vmax.f32 %v3925_v45, %v3926_v29  ;;  %v7979_v2 = vpop.f32.mrb[10].mxu1 }
 0x3aa   :  { %v3882_v13 = vmax.f32 %v3880_v34, %v3881_v54  ;;  %v3888_v8 = vrot.slane %v3887_v17, 1  ;;  %v3895_v19 = vrot.slane %v3894_v14, 1  ;;  %v3901_v55 = vmax.f32 %v3899_v3, %v3900_v18  ;;  %v7981_v47 = vpop.f32.mrb[11].mxu1 }
 0x3ab   :  { %v3908_v48 = vmax.f32 %v3906_v7, %v3907_v51  ;;  %v3914_v15 = vrot.slane %v3913_v0, 2  ;;  %v3922_v33 = vmax.f32 %v3920_v62, %v3921_v38  ;;  %v3928_v16 = vrot.slane %v3927_v4, 2 }
 0x3ac   :  { %v3889_v9 = vmax.f32 %v3887_v17, %v3888_v8  ;;  %v3896_v57 = vmax.f32 %v3894_v14, %v3895_v19  ;;  %v3902_v5 = vrot.slane %v3901_v55, 1  ;;  %v4100_v40 = vmax.f32 %v3882_v13, 0.0 }
 0x3ad   :  { %v3909_v35 = vrot.slane %v3908_v48, 1  ;;  %v3915_v53 = vmax.f32 %v3913_v0, %v3914_v15  ;;  %v3923_v63 = vrot.slane %v3922_v33, 1  ;;  %v3929_v1 = vmax.f32 %v3927_v4, %v3928_v16 }
 0x3ae   :  { %v3903_v42 = vmax.f32 %v3901_v55, %v3902_v5  ;;  %v4101_v10 = vmax.f32 %v3889_v9, 0.0  ;;  %v4102_v28 = vmax.f32 %v3896_v57, 0.0  ;;  %v4132_v26 = vpack.c.bf16 %v4100_v40, %v4100_v40 }
 0x3af   :  { %v3910_v50 = vmax.f32 %v3908_v48, %v3909_v35  ;;  %v3916_v24 = vrot.slane %v3915_v53, 1  ;;  %v3924_v20 = vmax.f32 %v3922_v33, %v3923_v63  ;;  %v3930_v41 = vrot.slane %v3929_v1, 1  ;;  %v7983_v46 = vpop.f32.mrb[12].mxu1 }
 0x3b0   :  { %v4103_v11 = vmax.f32 %v3903_v42, 0.0  ;;  %v4133_v23 = vpack.c.bf16 %v4101_v10, %v4101_v10  ;;  %v4134_v58 = vpack.c.bf16 %v4102_v28, %v4102_v28  ;;  %v4318_v39 = vunpack.c.l.b16 %v4132_v26  ;;  %v7985_v56 = vpop.f32.mrb[13].mxu1 }
 0x3b1   :  { %v3917_v32 = vmax.f32 %v3915_v53, %v3916_v24  ;;  %v3931_v6 = vmax.f32 %v3929_v1, %v3930_v41  ;;  %v4104_v27 = vmax.f32 %v3910_v50, 0.0  ;;  %v4106_v60 = vmax.f32 %v3924_v20, 0.0  ;;  %v7987_v21 = vpop.f32.mrb[14].mxu1 }
 0x3b2   :  { %v7989_v45 = vpack.c.bf16 %v4103_v11, %v4103_v11  ;;  %v4205_v34 = vunpack.c.l.b16 %v4133_v23  ;;  %v4448_v49 = vunpack.c.l.b16 %v4134_v58  ;;  %v5012_v61 = vadd.f32 %v7961_v12, %v7939_v43  ;;  %v7993_v3 = vpop.f32.mrb[15].mxu1 }
 0x3b3   :  { %v4105_v7 = vmax.f32 %v3917_v32, 0.0  ;;  %v4107_v22 = vmax.f32 %v3931_v6, 0.0  ;;  %v4136_v62 = vpack.c.bf16 %v4104_v27, %v4104_v27  ;;  %v4138_v29 = vpack.c.bf16 %v4106_v60, %v4106_v60 }
 0x3b4   :  { %v4579_v54 = vunpack.c.l.b16 %v7989_v45  ;;  %v3694_v17 = vmax.f32 %v7959_v37, %v5012_v61  ;;  %v5013_v14 = vadd.f32 %v7966_v30, %v7932_v25  ;;  %v5014_v18 = vadd.f32 %v7968_v59, %v7939_v43 }
 0x3b5   :  { %v4137_v51 = vpack.c.bf16 %v4105_v7, %v4105_v7  ;;  %v8001_v0 = vpack.c.bf16 %v4107_v22, %v4107_v22  ;;  %v4319_v12 = vunpack.c.l.b16 %v4136_v62  ;;  %v4449_v38 = vunpack.c.l.b16 %v4138_v29 }
 0x3b6   :  { %v3742_v4 = vcombine.high %v3694_v17, %v3694_v17  ;;  %v3749_v13 = vrot.slane %v3694_v17, %v8526_v36  ;;  %v3695_v8 = vmax.f32 %v5013_v14, %v5014_v18  ;;  %v8006_v19 = vadd.f32 %v7975_v44, %v7932_v25 }
 0x3b7   :  { %v4206_v37 = vunpack.c.l.b16 %v4137_v51  ;;  %v8009_v55 = vsel %vm2590_vm10, %v4319_v12, %v4318_v39  ;;  %v8012_v30 = vsel %vm2590_vm10, %v4449_v38, %v4448_v49  ;;  %v4580_v59 = vunpack.c.l.b16 %v8001_v0 }
 0x3b8   :  { %v3756_v48 = vrot.slane %v3742_v4, %v8526_v36  ;;  %v3757_v15 = vcombine.high %v3749_v13, %v3749_v13  ;;  %v3932_v33 = vsel %vm1597_vm9, %v3749_v13, -inf  ;;  %v3759_v16 = vcombine.high %v3695_v8, %v3695_v8 }
 0x3b9   :  { %v8018_v9 = vsel %vm2590_vm10, %v4206_v37, %v4205_v34  ;;  %v3933_v44 = vrot.slane %v3932_v33, 4  ;;  %v3766_v57 = vrot.slane %v3695_v8, %v8526_v36  ;;  %v8023_v5 = vadd.f32 %v7977_v31, %v7939_v43 }
 0x3ba   :  { %v3758_v40 = vcombine.high %v3756_v48, %v3756_v48  ;;  %v3939_v35 = vsel %vm1597_vm9, %v3757_v15, -inf  ;;  %v3946_v53 = vsel %vm1597_vm9, %v3756_v48, -inf  ;;  %v3773_v63 = vrot.slane %v3759_v16, %v8526_v36 }
 0x3bb   :  { %v3934_v1 = vmax.f32 %v3932_v33, %v3933_v44  ;;  %v3940_v42 = vrot.slane %v3939_v35, 4  ;;  %v3947_v10 = vrot.slane %v3946_v53, 4  ;;  %v3774_v28 = vcombine.high %v3766_v57, %v3766_v57 }
 0x3bc   :  { %v3953_v26 = vsel %vm1597_vm9, %v3758_v40, -inf  ;;  %v3775_v50 = vcombine.high %v3773_v63, %v3773_v63  ;;  %v3960_v24 = vsel %vm1597_vm9, %v3766_v57, -inf  ;;  %v3974_v20 = vsel %vm1597_vm9, %v3773_v63, -inf }
 0x3bd   :  { %v3935_v31 = vrot.slane %v3934_v1, 2  ;;  %v3941_v41 = vmax.f32 %v3939_v35, %v3940_v42  ;;  %v3948_v11 = vmax.f32 %v3946_v53, %v3947_v10  ;;  %v3954_v23 = vrot.slane %v3953_v26, 4 }
 0x3be   :  { %v3961_v58 = vrot.slane %v3960_v24, 4  ;;  %v3967_v39 = vsel %vm1597_vm9, %v3774_v28, -inf  ;;  %v3975_v32 = vrot.slane %v3974_v20, 4  ;;  %v3981_v6 = vsel %vm1597_vm9, %v3775_v50, -inf }
 0x3bf   :  { %v3936_v27 = vmax.f32 %v3934_v1, %v3935_v31  ;;  %v3942_v60 = vrot.slane %v3941_v41, 2  ;;  %v3949_v34 = vrot.slane %v3948_v11, 2  ;;  %v3955_v49 = vmax.f32 %v3953_v26, %v3954_v23 }
 0x3c0   :  { %v3962_v61 = vmax.f32 %v3960_v24, %v3961_v58  ;;  %v3968_v7 = vrot.slane %v3967_v39, 4  ;;  %v3976_v22 = vmax.f32 %v3974_v20, %v3975_v32  ;;  %v3982_v62 = vrot.slane %v3981_v6, 4 }
 0x3c1   :  { %v3937_v29 = vrot.slane %v3936_v27, 1  ;;  %v3943_v17 = vmax.f32 %v3941_v41, %v3942_v60  ;;  %v3950_v14 = vmax.f32 %v3948_v11, %v3949_v34  ;;  %v3956_v18 = vrot.slane %v3955_v49, 2 }
 0x3c2   :  { %v3963_v51 = vrot.slane %v3962_v61, 2  ;;  %v3969_v12 = vmax.f32 %v3967_v39, %v3968_v7  ;;  %v3977_v38 = vrot.slane %v3976_v22, 2  ;;  %v3983_v4 = vmax.f32 %v3981_v6, %v3982_v62 }
 0x3c3   :  { %v3938_v13 = vmax.f32 %v3936_v27, %v3937_v29  ;;  %v3944_v8 = vrot.slane %v3943_v17, 1  ;;  %v3951_v37 = vrot.slane %v3950_v14, 1  ;;  %v3957_v48 = vmax.f32 %v3955_v49, %v3956_v18 }
 0x3c4   :  { %v3964_v15 = vmax.f32 %v3962_v61, %v3963_v51  ;;  %v3970_v33 = vrot.slane %v3969_v12, 2  ;;  %v3978_v16 = vmax.f32 %v3976_v22, %v3977_v38  ;;  %v3984_v44 = vrot.slane %v3983_v4, 2 }
 0x3c5   :  { %v3945_v57 = vmax.f32 %v3943_v17, %v3944_v8  ;;  %v3952_v40 = vmax.f32 %v3950_v14, %v3951_v37  ;;  %v3958_v35 = vrot.slane %v3957_v48, 1  ;;  %v4108_v53 = vmax.f32 %v3938_v13, 0.0 }
 0x3c6   :  { %v3965_v63 = vrot.slane %v3964_v15, 1  ;;  %v3971_v1 = vmax.f32 %v3969_v12, %v3970_v33  ;;  %v3979_v42 = vrot.slane %v3978_v16, 1  ;;  %v3985_v10 = vmax.f32 %v3983_v4, %v3984_v44 }
 0x3c7   :  { %v3959_v28 = vmax.f32 %v3957_v48, %v3958_v35  ;;  %v4109_v26 = vmax.f32 %v3945_v57, 0.0  ;;  %v4110_v50 = vmax.f32 %v3952_v40, 0.0  ;;  %v4140_v24 = vpack.c.bf16 %v4108_v53, %v4108_v53 }
 0x3c8   :  { %v3966_v20 = vmax.f32 %v3964_v15, %v3965_v63  ;;  %v3972_v31 = vrot.slane %v3971_v1, 1  ;;  %v3980_v41 = vmax.f32 %v3978_v16, %v3979_v42  ;;  %v3986_v11 = vrot.slane %v3985_v10, 1 }
 0x3c9   :  { %v4111_v23 = vmax.f32 %v3959_v28, 0.0  ;;  %v4141_v58 = vpack.c.bf16 %v4109_v26, %v4109_v26  ;;  %v4142_v39 = vpack.c.bf16 %v4110_v50, %v4110_v50  ;;  %v4320_v32 = vunpack.c.l.b16 %v4140_v24 }
 0x3ca   :  { %v3973_v6 = vmax.f32 %v3971_v1, %v3972_v31  ;;  %v3987_v27 = vmax.f32 %v3985_v10, %v3986_v11  ;;  %v4112_v60 = vmax.f32 %v3966_v20, 0.0  ;;  %v4114_v34 = vmax.f32 %v3980_v41, 0.0 }
 0x3cb   :  { %v8033_v49 = vpack.c.bf16 %v4111_v23, %v4111_v23  ;;  %v4207_v61 = vunpack.c.l.b16 %v4141_v58  ;;  %v8037_v7 = vsel %vm2592_vm11, %v4320_v32, %v8009_v55  ;;  %v4450_v22 = vunpack.c.l.b16 %v4142_v39 }
 0x3cc   :  { %v4113_v62 = vmax.f32 %v3973_v6, 0.0  ;;  %v4115_v29 = vmax.f32 %v3987_v27, 0.0  ;;  %v8039_v17 = vpack.c.bf16 %v4112_v60, %v4112_v60  ;;  %v4146_v14 = vpack.c.bf16 %v4114_v34, %v4114_v34 }
 0x3cd   :  { %v4214_v18 = vsel %vm2592_vm11, %v4207_v61, %v8018_v9  ;;  %v4457_v51 = vsel %vm2592_vm11, %v4450_v22, %v8012_v30  ;;  %v4581_v12 = vunpack.c.l.b16 %v8033_v49  ;;  %v3696_v38 = vmax.f32 %v8006_v19, %v8023_v5 }
 0x3ce   :  { %v4145_v4 = vpack.c.bf16 %v4113_v62, %v4113_v62  ;;  %v8048_v55 = vpack.c.bf16 %v4115_v29, %v4115_v29  ;;  %v4321_v13 = vunpack.c.l.b16 %v8039_v17  ;;  %v4451_v8 = vunpack.c.l.b16 %v4146_v14 }
 0x3cf   :  { %v3776_v37 = vcombine.high %v3696_v38, %v3696_v38  ;;  %v3783_v48 = vrot.slane %v3696_v38, %v8526_v36  ;;  %v5017_v9 = vadd.f32 %v7979_v2, %v7932_v25  ;;  %v5018_v30 = vadd.f32 %v7981_v47, %v7939_v43 }
 0x3d0   :  { %v4208_v15 = vunpack.c.l.b16 %v4145_v4  ;;  %v8057_v33 = vsel %vm2594_vm12, %v4451_v8, %v4457_v51  ;;  %v4582_v19 = vunpack.c.l.b16 %v8048_v55  ;;  %v5019_v5 = vadd.f32 %v7983_v46, %v7932_v25 }
 0x3d1   :  { %v3790_v16 = vrot.slane %v3776_v37, %v8526_v36  ;;  %v3791_v44 = vcombine.high %v3783_v48, %v3783_v48  ;;  %v3988_v57 = vsel %vm1597_vm9, %v3783_v48, -inf  ;;  %v3697_v40 = vmax.f32 %v5017_v9, %v5018_v30 }
 0x3d2   :  { %v8065_v2 = vsel %vm2594_vm12, %v4208_v15, %v4214_v18  ;;  %v3989_v35 = vrot.slane %v3988_v57, 4  ;;  %v5020_v47 = vadd.f32 %v7985_v56, %v7939_v43  ;;  %v8071_v53 = vadd.f32 %v7987_v21, %v7932_v25 }
 0x3d3   :  { %v3792_v63 = vcombine.high %v3790_v16, %v3790_v16  ;;  %v3995_v46 = vsel %vm1597_vm9, %v3791_v44, -inf  ;;  %v4002_v1 = vsel %vm1597_vm9, %v3790_v16, -inf  ;;  %v3793_v42 = vcombine.high %v3697_v40, %v3697_v40 }
 0x3d4   :  { %v3990_v10 = vmax.f32 %v3988_v57, %v3989_v35  ;;  %v3996_v28 = vrot.slane %v3995_v46, 4  ;;  %v4003_v26 = vrot.slane %v4002_v1, 4  ;;  %v3800_v50 = vrot.slane %v3697_v40, %v8526_v36 }
 0x3d5   :  { %v4009_v24 = vsel %vm1597_vm9, %v3792_v63, -inf  ;;  %v3807_v20 = vrot.slane %v3793_v42, %v8526_v36  ;;  %v8078_v56 = vmax.f32 %v5019_v5, %v5020_v47  ;;  %v8082_v25 = vadd.f32 %v7993_v3, %v7939_v43 }
 0x3d6   :  { %v3991_v21 = vrot.slane %v3990_v10, 2  ;;  %v3997_v31 = vmax.f32 %v3995_v46, %v3996_v28  ;;  %v4004_v41 = vmax.f32 %v4002_v1, %v4003_v26  ;;  %v4010_v11 = vrot.slane %v4009_v24, 4 }
 0x3d7   :  { %v3808_v23 = vcombine.high %v3800_v50, %v3800_v50  ;;  %v3809_v58 = vcombine.high %v3807_v20, %v3807_v20  ;;  %v4016_v39 = vsel %vm1597_vm9, %v3800_v50, -inf  ;;  %v4030_v32 = vsel %vm1597_vm9, %v3807_v20, -inf }
 0x3d8   :  { %v3992_v6 = vmax.f32 %v3990_v10, %v3991_v21  ;;  %v3998_v27 = vrot.slane %v3997_v31, 2  ;;  %v4005_v60 = vrot.slane %v4004_v41, 2  ;;  %v4011_v34 = vmax.f32 %v4009_v24, %v4010_v11 }
 0x3d9   :  { %v4017_v61 = vrot.slane %v4016_v39, 4  ;;  %v4023_v22 = vsel %vm1597_vm9, %v3808_v23, -inf  ;;  %v4031_v62 = vrot.slane %v4030_v32, 4  ;;  %v4037_v43 = vsel %vm1597_vm9, %v3809_v58, -inf }
 0x3da   :  { %v3993_v3 = vrot.slane %v3992_v6, 1  ;;  %v3999_v29 = vmax.f32 %v3997_v31, %v3998_v27  ;;  %v4006_v14 = vmax.f32 %v4004_v41, %v4005_v60  ;;  %v4012_v18 = vrot.slane %v4011_v34, 2 }
 0x3db   :  { %v4018_v51 = vmax.f32 %v4016_v39, %v4017_v61  ;;  %v4024_v38 = vrot.slane %v4023_v22, 4  ;;  %v4032_v4 = vmax.f32 %v4030_v32, %v4031_v62  ;;  %v4038_v8 = vrot.slane %v4037_v43, 4 }
 0x3dc   :  { %v3994_v37 = vmax.f32 %v3992_v6, %v3993_v3  ;;  %v4000_v48 = vrot.slane %v3999_v29, 1  ;;  %v4007_v9 = vrot.slane %v4006_v14, 1  ;;  %v4013_v30 = vmax.f32 %v4011_v34, %v4012_v18 }
 0x3dd   :  { %v4019_v15 = vrot.slane %v4018_v51, 2  ;;  %v4025_v5 = vmax.f32 %v4023_v22, %v4024_v38  ;;  %v4033_v16 = vrot.slane %v4032_v4, 2  ;;  %v4039_v44 = vmax.f32 %v4037_v43, %v4038_v8 }
 0x3de   :  { %v4001_v57 = vmax.f32 %v3999_v29, %v4000_v48  ;;  %v4008_v40 = vmax.f32 %v4006_v14, %v4007_v9  ;;  %v4014_v35 = vrot.slane %v4013_v30, 1  ;;  %v4116_v47 = vmax.f32 %v3994_v37, 0.0 }
 0x3df   :  { %v4020_v63 = vmax.f32 %v4018_v51, %v4019_v15  ;;  %v4026_v46 = vrot.slane %v4025_v5, 2  ;;  %v4034_v1 = vmax.f32 %v4032_v4, %v4033_v16  ;;  %v4040_v42 = vrot.slane %v4039_v44, 2 }
 0x3e0   :  { %v4015_v10 = vmax.f32 %v4013_v30, %v4014_v35  ;;  %v4117_v28 = vmax.f32 %v4001_v57, 0.0  ;;  %v4118_v26 = vmax.f32 %v4008_v40, 0.0  ;;  %v8088_v50 = vpack.c.bf16 %v4116_v47, %v4116_v47 }
 0x3e1   :  { %v4021_v24 = vrot.slane %v4020_v63, 1  ;;  %v4027_v20 = vmax.f32 %v4025_v5, %v4026_v46  ;;  %v4035_v21 = vrot.slane %v4034_v1, 1  ;;  %v4041_v31 = vmax.f32 %v4039_v44, %v4040_v42 }
 0x3e2   :  { %v4119_v41 = vmax.f32 %v4015_v10, 0.0  ;;  %v4149_v11 = vpack.c.bf16 %v4117_v28, %v4117_v28  ;;  %v8090_v23 = vpack.c.bf16 %v4118_v26, %v4118_v26  ;;  %v4322_v58 = vunpack.c.l.b16 %v8088_v50 }
 0x3e3   :  { %v4022_v39 = vmax.f32 %v4020_v63, %v4021_v24  ;;  %v4028_v32 = vrot.slane %v4027_v20, 1  ;;  %v4036_v6 = vmax.f32 %v4034_v1, %v4035_v21  ;;  %v4042_v27 = vrot.slane %v4041_v31, 1 }
 0x3e4   :  { %v8093_v60 = vpack.c.bf16 %v4119_v41, %v4119_v41  ;;  %v4209_v34 = vunpack.c.l.b16 %v4149_v11  ;;  %v4452_v61 = vunpack.c.l.b16 %v8090_v23  ;;  %v3810_v22 = vcombine.high %v8078_v56, %v8078_v56 }
 0x3e5   :  { %v4029_v62 = vmax.f32 %v4027_v20, %v4028_v32  ;;  %v4043_v43 = vmax.f32 %v4041_v31, %v4042_v27  ;;  %v4120_v3 = vmax.f32 %v4022_v39, 0.0  ;;  %v4122_v29 = vmax.f32 %v4036_v6, 0.0 }
 0x3e6   :  { %v4583_v14 = vunpack.c.l.b16 %v8093_v60  ;;  %v3817_v18 = vrot.slane %v8078_v56, %v8526_v36  ;;  %v3824_v51 = vrot.slane %v3810_v22, %v8526_v36  ;;  %v3699_v38 = vmax.f32 %v8071_v53, %v8082_v25  ;;  %v5467_v60 = vld [vmem:[%s8246_s5 + $0x8] sm:$0xff]  }
 0x3e7   :  { %v4121_v4 = vmax.f32 %v4029_v62, 0.0  ;;  %v4123_v8 = vmax.f32 %v4043_v43, 0.0  ;;  %v8104_v37 = vpack.c.bf16 %v4120_v3, %v4120_v3  ;;  %v8106_v48 = vpack.c.bf16 %v4122_v29, %v4122_v29 }
 0x3e8   :  { %v3825_v9 = vcombine.high %v3817_v18, %v3817_v18  ;;  %v3826_v30 = vcombine.high %v3824_v51, %v3824_v51  ;;  %v4044_v15 = vsel %vm1597_vm9, %v3817_v18, -inf  ;;  %v4058_v5 = vsel %vm1597_vm9, %v3824_v51, -inf }
 0x3e9   :  { %v4153_v16 = vpack.c.bf16 %v4121_v4, %v4121_v4  ;;  %v8110_v44 = vpack.c.bf16 %v4123_v8, %v4123_v8  ;;  %v4323_v56 = vunpack.c.l.b16 %v8104_v37  ;;  %v4453_v57 = vunpack.c.l.b16 %v8106_v48 }
 0x3ea   :  { %v4045_v53 = vrot.slane %v4044_v15, 4  ;;  %v4051_v25 = vsel %vm1597_vm9, %v3825_v9, -inf  ;;  %v4059_v40 = vrot.slane %v4058_v5, 4  ;;  %v4065_v35 = vsel %vm1597_vm9, %v3826_v30, -inf }
 0x3eb   :  { %v4210_v47 = vunpack.c.l.b16 %v4153_v16  ;;  %v4052_v63 = vrot.slane %v4051_v25, 4  ;;  %v4066_v46 = vrot.slane %v4065_v35, 4  ;;  %v3827_v1 = vcombine.high %v3699_v38, %v3699_v38 }
 0x3ec   :  { %v4046_v42 = vmax.f32 %v4044_v15, %v4045_v53  ;;  %v4060_v10 = vmax.f32 %v4058_v5, %v4059_v40  ;;  %v3834_v28 = vrot.slane %v3699_v38, %v8526_v36  ;;  %v4216_v26 = vsel %vm2596_vm13, %v4209_v34, %v8065_v2 }
 0x3ed   :  { %v4053_v24 = vmax.f32 %v4051_v25, %v4052_v63  ;;  %v4067_v20 = vmax.f32 %v4065_v35, %v4066_v46  ;;  %v3841_v21 = vrot.slane %v3827_v1, %v8526_v36  ;;  %v8121_v31 = vsel %vm2598_vm14, %v4210_v47, %v4216_v26 }
 0x3ee   :  { %v4047_v41 = vrot.slane %v4046_v42, 2  ;;  %v4061_v11 = vrot.slane %v4060_v10, 2  ;;  %v3842_v39 = vcombine.high %v3834_v28, %v3834_v28  ;;  %v4072_v32 = vsel %vm1597_vm9, %v3834_v28, -inf }
 0x3ef   :  { %v4054_v6 = vrot.slane %v4053_v24, 2  ;;  %v4068_v27 = vrot.slane %v4067_v20, 2  ;;  %v3843_v22 = vcombine.high %v3841_v21, %v3841_v21  ;;  %v4073_v62 = vrot.slane %v4072_v32, 4 }
 0x3f0   :  { %v4048_v43 = vmax.f32 %v4046_v42, %v4047_v41  ;;  %v4062_v3 = vmax.f32 %v4060_v10, %v4061_v11  ;;  %v4079_v2 = vsel %vm1597_vm9, %v3842_v39, -inf  ;;  %v4086_v34 = vsel %vm1597_vm9, %v3841_v21, -inf }
 0x3f1   :  { %v4055_v29 = vmax.f32 %v4053_v24, %v4054_v6  ;;  %v4069_v36 = vmax.f32 %v4067_v20, %v4068_v27  ;;  %v4074_v18 = vmax.f32 %v4072_v32, %v4073_v62  ;;  %v4080_v51 = vrot.slane %v4079_v2, 4 }
 0x3f2   :  { %v4049_v38 = vrot.slane %v4048_v43, 1  ;;  %v4063_v4 = vrot.slane %v4062_v3, 1  ;;  %v4087_v8 = vrot.slane %v4086_v34, 4  ;;  %v4093_v9 = vsel %vm1597_vm9, %v3843_v22, -inf }
 0x3f3   :  { %v4056_v30 = vrot.slane %v4055_v29, 1  ;;  %v4070_v15 = vrot.slane %v4069_v36, 1  ;;  %v4075_v5 = vrot.slane %v4074_v18, 2  ;;  %v4081_v16 = vmax.f32 %v4079_v2, %v4080_v51 }
 0x3f4   :  { %v4050_v53 = vmax.f32 %v4048_v43, %v4049_v38  ;;  %v4064_v25 = vmax.f32 %v4062_v3, %v4063_v4  ;;  %v4088_v40 = vmax.f32 %v4086_v34, %v4087_v8  ;;  %v4094_v35 = vrot.slane %v4093_v9, 4 }
 0x3f5   :  { %v4057_v47 = vmax.f32 %v4055_v29, %v4056_v30  ;;  %v4071_v63 = vmax.f32 %v4069_v36, %v4070_v15  ;;  %v4076_v46 = vmax.f32 %v4074_v18, %v4075_v5  ;;  %v4082_v1 = vrot.slane %v4081_v16, 2 }
 0x3f6   :  { %v4124_v42 = vmax.f32 %v4050_v53, 0.0  ;;  %v4126_v10 = vmax.f32 %v4064_v25, 0.0  ;;  %v4089_v28 = vrot.slane %v4088_v40, 2  ;;  %v4095_v26 = vmax.f32 %v4093_v9, %v4094_v35 }
 0x3f7   :  { %v4125_v24 = vmax.f32 %v4057_v47, 0.0  ;;  %v4077_v20 = vrot.slane %v4076_v46, 1  ;;  %v4083_v21 = vmax.f32 %v4081_v16, %v4082_v1  ;;  %v4459_v41 = vsel %vm2596_vm13, %v4452_v61, %v8057_v33  ;;  %v5469_v1 = vld [vmem:[%s8246_s5 + $0x18] sm:$0xff]  }
 0x3f8   :  { %v4156_v11 = vpack.c.bf16 %v4124_v42, %v4124_v42  ;;  %v4158_v39 = vpack.c.bf16 %v4126_v10, %v4126_v10  ;;  %v4090_v32 = vmax.f32 %v4088_v40, %v4089_v28  ;;  %v4096_v6 = vrot.slane %v4095_v26, 2  ;;  %v5470_v42 = vld [vmem:[%s8246_s5 + $0x20] sm:$0xff]   ;;  %v5471_v10 = vld [vmem:[%s8246_s5 + $0x28] sm:$0xff]   ;;  %v5472_v28 = vld [vmem:[%s8246_s5 + $0x30] sm:$0xff]  }
 0x3f9   :  { %v4157_v27 = vpack.c.bf16 %v4125_v24, %v4125_v24  ;;  %v4078_v22 = vmax.f32 %v4076_v46, %v4077_v20  ;;  %v4084_v62 = vrot.slane %v4083_v21, 1  ;;  %v4460_v43 = vsel %vm2598_vm14, %v4453_v57, %v4459_v41  ;;  %v5474_v24 = vld [vmem:[%s8246_s5 + $0xc0] sm:$0xff]   ;;  %v5476_v41 = vld [vmem:[%s8246_s5 + $0xd0] sm:$0xff]  }
 0x3fa   :  { %v4324_v3 = vunpack.c.l.b16 %v4156_v11  ;;  %v4454_v2 = vunpack.c.l.b16 %v4158_v39  ;;  %v4091_v34 = vrot.slane %v4090_v32, 1  ;;  %v4097_v29 = vmax.f32 %v4095_v26, %v4096_v6  ;;  %v5473_v26 = vld [vmem:[%s8246_s5 + $0x38] sm:$0xff]   ;;  %v5478_v39 = vld [vmem:[%s8246_s5 + $0xe0] sm:$0xff]   ;;  %v5480_v6 = vld [vmem:[%s8246_s5 + $0xf0] sm:$0xff]  }
 0x3fb   :  { %v4211_v36 = vunpack.c.l.b16 %v4157_v27  ;;  %v4085_v18 = vmax.f32 %v4083_v21, %v4084_v62  ;;  %v4128_v23 = vmax.f32 %v4078_v22, 0.0  ;;  %v4328_v33 = vsel %vm2594_vm12, %v4321_v13, %v8037_v7  ;;  %v5475_v21 = vld [vmem:[%s8246_s5 + $0xc8] sm:$0xff]   ;;  %v5477_v11 = vld [vmem:[%s8246_s5 + $0xd8] sm:$0xff]  }
 0x3fc   :  { %v4092_v61 = vmax.f32 %v4090_v32, %v4091_v34  ;;  %v4098_v51 = vrot.slane %v4097_v29, 1  ;;  %v4461_v38 = vsel %vm2600_vm15, %v4454_v2, %v4460_v43  ;;  %v4329_v48 = vsel %vm2596_vm13, %v4322_v58, %v4328_v33  ;;  %v5479_v32 = vld [vmem:[%s8246_s5 + $0xe8] sm:$0xff]   ;;  %v5481_v27 = vld [vmem:[%s8246_s5 + $0xf8] sm:$0xff]  }
 0x3fd   :  { %v4129_v57 = vmax.f32 %v4085_v18, 0.0  ;;  %v4160_v4 = vpack.c.bf16 %v4128_v23, %v4128_v23  ;;  %v4218_v8 = vsel %vm2600_vm15, %v4211_v36, %v8121_v31  ;;  %v4330_v9 = vsel %vm2598_vm14, %v4323_v56, %v4329_v48 }
 0x3fe   :  { %v4130_v17 = vmax.f32 %v4092_v61, 0.0  ;;  %v4331_v7 = vsel %vm2600_vm15, %v4324_v3, %v4330_v9  ;;  %v4099_v13 = vmax.f32 %v4097_v29, %v4098_v51  ;;  %v4127_v30 = vmax.f32 %v4071_v63, 0.0 }
 0x3ff   :  { %v4161_v15 = vpack.c.bf16 %v4129_v57, %v4129_v57  ;;  %v4325_v5 = vunpack.c.l.b16 %v4160_v4  ;;  %v4584_v50 = vunpack.c.l.b16 %v8110_v44  ;;  %v4587_v58 = vsel %vm2590_vm10, %v4580_v59, %v4579_v54  ;;  %v5466_v54 = vld [vmem:[%s8246_s5] sm:$0xff]  }
 0x400   :  { %v4162_v31 = vpack.c.bf16 %v4130_v17, %v4130_v17  ;;  %v4131_v16 = vmax.f32 %v4099_v13, 0.0  ;;  %v4159_v37 = vpack.c.bf16 %v4127_v30, %v4127_v30  ;;  %v4588_v56 = vsel %vm2592_vm11, %v4581_v12, %v4587_v58 }
 0x401   :  { %v4212_v53 = vunpack.c.l.b16 %v4161_v15  ;;  %v4332_v25 = vsel %vm2602_vm0, %v4325_v5, %v4331_v7  ;;  %v4589_v44 = vsel %vm2594_vm12, %v4582_v19, %v4588_v56 }
 0x402   :  { %v4455_v40 = vunpack.c.l.b16 %v4162_v31  ;;  %v4163_v45 = vpack.c.bf16 %v4131_v16, %v4131_v16  ;;  %v4585_v35 = vunpack.c.l.b16 %v4159_v37  ;;  %v4590_v59 = vsel %vm2596_vm13, %v4583_v14, %v4589_v44  ;;  %v5468_v14 = vld [vmem:[%s8246_s5 + $0x10] sm:$0xff]  }
 0x403   :  { %v4219_v0 = vsel %vm2602_vm0, %v4212_v53, %v4218_v8  ;;  %v4591_v55 = vsel %vm2598_vm14, %v4584_v50, %v4590_v59  ;;  %v4333_v20 = vpack.c.b16 %v4332_v25, %v4332_v25 }
 0x404   :  { %v4220_v49 = vpack.c.b16 %v4219_v0, %v4219_v0  ;;  %v4462_v12 = vsel %vm2602_vm0, %v4455_v40, %v4461_v38  ;;  %v4586_v47 = vunpack.c.l.b16 %v4163_v45  ;;  %v4592_v63 = vsel %vm2600_vm15, %v4585_v35, %v4591_v55 }
 0x405   :  { %v4463_v19 = vpack.c.b16 %v4462_v12, %v4462_v12 }
 0x406   :  { %4944 = vmatmul.mubr.bf16.vlgmr.msra.gmra.mrb[48].mxu0 %v4220_v49  ;;  %v4593_v46 = vsel %vm2602_vm0, %v4586_v47, %v4592_v63 }
 0x407   :  { %4948 = vmatpush3.bf16.msra.mxu0 %v5466_v54  ;;  %4984 = vmatmul.mubr.bf16.vlgmr.msra.gmra.mrb[16].mxu1 %v4463_v19  ;;  %v4594_v22 = vpack.c.b16 %v4593_v46, %v4593_v46 }
 0x408   :  { %4949 = vmatprep.subr.bf16.mxu0 %v5498_v52  ;;  %4963 = vmatprep.mubr.msk.bf16.mxu0 %vm5499_vm1, %v5498_v52 }
 0x40b   :  { %4950 = vmatpush3.bf16.msra.mxu0 %v5467_v60 }
 0x40c   :  { %4951 = vmatprep.subr.bf16.mxu0 %v5498_v52 }
 0x40f   :  { %4952 = vmatpush3.bf16.msra.mxu0 %v5468_v14 }
 0x410   :  { %4953 = vmatprep.subr.bf16.mxu0 %v5498_v52 }
 0x413   :  { %4954 = vmatpush3.bf16.msra.mxu0 %v5469_v1 }
 0x414   :  { %4955 = vmatprep.subr.bf16.mxu0 %v5498_v52 }
 0x417   :  { %4956 = vmatpush3.bf16.msra.mxu0 %v5470_v42 }
 0x418   :  { %4957 = vmatprep.subr.bf16.mxu0 %v5498_v52 }
 0x41b   :  { %4958 = vmatpush3.bf16.msra.mxu0 %v5471_v10 }
 0x41c   :  { %4959 = vmatprep.subr.bf16.mxu0 %v5498_v52 }
 0x41f   :  { %4960 = vmatpush3.bf16.msra.mxu0 %v5472_v28 }
 0x420   :  { %4961 = vmatprep.subr.bf16.mxu0 %v5498_v52 }
 0x423   :  { %4962 = vmatpush3.bf16.msra.mxu0 %v5473_v26 }
 0x424   :  { %4987 = vmatprep.subr.bf16.mxu0 %v5498_v52 }
 0x426   :  { %4964 = vmatmul.mubr.bf16.vlgmr.msra.gmra.mrb[52].mxu0 %v4333_v20 }
 0x427   :  { %4988 = vmatpush3.bf16.msra.mxu0 %v5474_v24  ;;  %5003 = vmatprep.mubr.msk.bf16.mxu0 %vm5499_vm1, %v5498_v52 }
 0x428   :  { %4989 = vmatprep.subr.bf16.mxu0 %v5498_v52 }
 0x42b   :  { %4990 = vmatpush3.bf16.msra.mxu0 %v5475_v21 }
 0x42c   :  { %4991 = vmatprep.subr.bf16.mxu0 %v5498_v52 }
 0x42f   :  { %4992 = vmatpush3.bf16.msra.mxu0 %v5476_v41 }
 0x430   :  { %4993 = vmatprep.subr.bf16.mxu0 %v5498_v52 }
 0x433   :  { %4994 = vmatpush3.bf16.msra.mxu0 %v5477_v11 }
 0x434   :  { %4995 = vmatprep.subr.bf16.mxu0 %v5498_v52 }
 0x437   :  { %4996 = vmatpush3.bf16.msra.mxu0 %v5478_v39 }
 0x438   :  { %4997 = vmatprep.subr.bf16.mxu0 %v5498_v52 }
 0x43b   :  { %4998 = vmatpush3.bf16.msra.mxu0 %v5479_v32 }
 0x43c   :  { %4999 = vmatprep.subr.bf16.mxu0 %v5498_v52 }
 0x43f   :  { %5000 = vmatpush3.bf16.msra.mxu0 %v5480_v6 }
 0x440   :  { %5001 = vmatprep.subr.bf16.mxu0 %v5498_v52  ;;  %v4890_v52 = vld [vmem:[%s8248_s6] ss:$0 sm:$0xff] }
 0x443   :  { %5002 = vmatpush3.bf16.msra.mxu0 %v5481_v27 }
 0x446   :  { %5004 = vmatmul.mubr.bf16.vlgmr.msra.gmra.mrb[56].mxu0 %v4594_v22 }
 0x4d9   :  { %v4304_v62 = vpop.f32.mrb[48].mxu0 }
 0x4da   :  { %v4547_v43 = vpop.f32.mrb[16].mxu1  ;;  %v4945_v3 = vpop.f32.mrb[49].mxu0 }
 0x4db   :  { %v4985_v2 = vpop.f32.mrb[17].mxu1  ;;  %v4307_v34 = vpop.f32.mrb[50].mxu0 }
 0x4dc   :  { %v4550_v29 = vpop.f32.mrb[18].mxu1  ;;  %v4946_v36 = vpop.f32.mrb[51].mxu0 }
 0x4dd   :  { %v4986_v18 = vpop.f32.mrb[19].mxu1 }
 0x4f9   :  { %v4417_v23 = vpop.f32.mrb[52].mxu0 }
 0x4fa   :  { %v4418_v33 = vadd.f32 %v4417_v23, %v4304_v62  ;;  %v4965_v61 = vpop.f32.mrb[53].mxu0 }
 0x4fb   :  { %v4420_v51 = vpop.f32.mrb[54].mxu0 }
 0x4fc   :  { %v4966_v38 = vpop.f32.mrb[55].mxu0  ;;  %v4553_v48 = vadd.f32 %v4547_v43, %v4418_v33 }
 0x519   :  { %v4678_v57 = vpop.f32.mrb[56].mxu0 }
 0x51a   :  { %v4684_v4 = vadd.f32 %v4678_v57, %v4553_v48  ;;  %v5005_v8 = vpop.f32.mrb[57].mxu0 }
 0x51b   :  { %v4681_v9 = vpop.f32.mrb[58].mxu0 }
 0x51c   :  { %v4692_v17 = vadd.f32 %v4890_v52, %v4684_v4  ;;  %v5006_v7 = vpop.f32.mrb[59].mxu0 }
 0x51e   :  { %4694 = vst.msk [vmem:[%s8249_s7] sm:$0xff] %vm4693_vm2, %v4692_v17 }

</bundles_post_ra>
